<compile_context>
chip_gen: v6e
topology: v6e:2x2x1
jax: 0.10.0
libtpu: 0.0.40
codegen_flags: <defaults>
</compile_context>

<pallas_src>
import jax
import jax.numpy as jnp
import numpy as np
from jax.experimental import pallas as pl
from jax.experimental.pallas import tpu as pltpu


def _fused_upsample_kernel(x_ref, enc_ref, a_ref, b_ref, w_ref, bias_ref, o_ref):
    # x_ref:    (1, C_in, H, W)        original-resolution input tile (VMEM)
    # enc_ref:  (1, C_out, Ho, Wo)     encoded feature (pass-through half)
    # a_ref:    (3, Ho, H)             A[kh] = row-shift(kh-1) of bilinear U_h
    # b_ref:    (3, W, Wo)             B[kw] = (col-shift(kw-1) of bilinear U_w)^T
    # w_ref:    (C_out*C_in*9,) SMEM   conv weights (scalar broadcast)
    # bias_ref: (C_out,)        SMEM   conv bias
    # o_ref:    (1, 2*C_out, Ho, Wo)   output slab: [encoded_feature | conv path]
    C_in = x_ref.shape[1]
    C_out = enc_ref.shape[1]
    H, W = x_ref.shape[2], x_ref.shape[3]
    Ho, Wo = o_ref.shape[2], o_ref.shape[3]

    # Channel concat, first half: straight copy of the encoded feature.
    o_ref[0, :C_out, :, :] = enc_ref[0, :, :, :].astype(o_ref.dtype)

    x = x_ref[0].astype(jnp.float32)                      # (C_in, H, W)
    inv_hw = 1.0 / float(Ho * Wo)

    for co in range(C_out):
        acc = jnp.zeros((Ho, Wo), jnp.float32)
        for kh in range(3):
            a_kh = a_ref[kh]                              # (Ho, H)
            for kw in range(3):
                # Channel mix at LOW resolution (VPU scalar-broadcast FMA).
                mixed = jnp.zeros((H, W), jnp.float32)
                for ci in range(C_in):
                    w = w_ref[(co * C_in + ci) * 9 + kh * 3 + kw]
                    mixed = mixed + w * x[ci]
                # Fused bilinear-2x upsample + zero-padded conv-tap shift:
                #   A[kh] @ mixed @ B[kw]  ->  (Ho, Wo)
                t = jnp.dot(a_kh, mixed, preferred_element_type=jnp.float32)
                acc = acc + jnp.dot(t, b_ref[kw],
                                    preferred_element_type=jnp.float32)
        acc = acc + bias_ref[co]

        # InstanceNorm2d (affine=False, eps=1e-5) over the full (Ho, Wo) plane.
        mean = jnp.sum(acc) * inv_hw
        centered = acc - mean
        var = jnp.sum(centered * centered) * inv_hw
        y = centered * jax.lax.rsqrt(var + 1e-5)
        # LeakyReLU(0.1)
        y = jnp.where(y >= 0, y, 0.1 * y)
        o_ref[0, C_out + co, :, :] = y.astype(o_ref.dtype)


def _bilinear_matrix_2x(size):
    """(2*size, size) operator for 2x bilinear upsample, align_corners=False."""
    out = 2 * size
    o = np.arange(out, dtype=np.float64)
    src = np.clip((o + 0.5) / 2.0 - 0.5, 0.0, float(size - 1))
    i0 = np.floor(src).astype(np.int64)
    i1 = np.minimum(i0 + 1, size - 1)
    f = src - i0
    u = np.zeros((out, size), dtype=np.float64)
    rows = np.arange(out)
    u[rows, i0] += 1.0 - f
    u[rows, i1] += f
    return u


def _conv_tap_operators(size):
    """Fold the 2x bilinear upsample with the 3x3 conv shift (zero pad 1).

    Returns ops of shape (3, 2*size, size) where ops[k][p, :] = U[p + k - 1, :]
    (zero for out-of-range rows), so ops[k] @ x is the upsampled signal shifted
    by (k - 1) with zero padding — exactly the conv-tap access pattern.
    """
    u = _bilinear_matrix_2x(size)
    out = 2 * size
    ops = np.zeros((3, out, size), dtype=np.float64)
    for k in range(3):
        d = k - 1
        p_lo, p_hi = max(0, -d), min(out, out - d)
        ops[k, p_lo:p_hi, :] = u[p_lo + d:p_hi + d, :]
    return ops


def upsample_forward(in_tensor, encoded_feature, conv_w, conv_b):
    """Pallas implementation of Upsample.forward (NCHW in / NCHW out)."""
    N, C_in, H, W = in_tensor.shape
    C_out = conv_w.shape[0]
    Ho, Wo = 2 * H, 2 * W
    assert encoded_feature.shape == (N, C_out, Ho, Wo)

    out_dtype = jnp.promote_types(in_tensor.dtype, encoded_feature.dtype)

    # Tiny fused upsample+tap operators, built on host once per shape.
    a_ops = jnp.asarray(_conv_tap_operators(H), dtype=jnp.float32)          # (3, Ho, H)
    b_ops = jnp.asarray(np.transpose(_conv_tap_operators(W), (0, 2, 1)),
                        dtype=jnp.float32)                                  # (3, W, Wo)

    w_flat = conv_w.astype(jnp.float32).reshape(C_out * C_in * 9)
    bias = conv_b.astype(jnp.float32)

    # TODO(synk): at production HACA3 resolutions, add a spatial grid axis with
    # a two-pass (sum / sum-of-squares) InstanceNorm to stay within v7x/v5e VMEM.
    return pl.pallas_call(
        _fused_upsample_kernel,
        out_shape=jax.ShapeDtypeStruct((N, 2 * C_out, Ho, Wo), out_dtype),
        grid=(N,),
        in_specs=[
            pl.BlockSpec((1, C_in, H, W), lambda n: (n, 0, 0, 0)),
            pl.BlockSpec((1, C_out, Ho, Wo), lambda n: (n, 0, 0, 0)),
            pl.BlockSpec((3, Ho, H), lambda n: (0, 0, 0)),
            pl.BlockSpec((3, W, Wo), lambda n: (0, 0, 0)),
            pl.BlockSpec(memory_space=pltpu.MemorySpace.SMEM),
            pl.BlockSpec(memory_space=pltpu.MemorySpace.SMEM),
        ],
        out_specs=pl.BlockSpec((1, 2 * C_out, Ho, Wo), lambda n: (n, 0, 0, 0)),
        compiler_params=pltpu.CompilerParams(dimension_semantics=("parallel",)),
    )(in_tensor, encoded_feature, a_ops, b_ops, w_flat, bias)


# ----------------------------- pure-JAX reference -----------------------------

def bilinear_upsample_2x(x):
    # matches F.interpolate(scale_factor=2, mode='bilinear', align_corners=False)
    N, C, H, W = x.shape

    def idx(size):
        o = jnp.arange(2 * size, dtype=jnp.float32)
        src = jnp.clip((o + 0.5) / 2.0 - 0.5, 0.0, float(size - 1))
        i0 = jnp.floor(src).astype(jnp.int32)
        i1 = jnp.minimum(i0 + 1, size - 1)
        f = src - i0.astype(jnp.float32)
        return i0, i1, f

    h0, h1, fh = idx(H)
    w0, w1, fw = idx(W)
    xh = (x[:, :, h0, :] * (1.0 - fh)[None, None, :, None]
          + x[:, :, h1, :] * fh[None, None, :, None])
    xw = (xh[:, :, :, w0] * (1.0 - fw)[None, None, None, :]
          + xh[:, :, :, w1] * fw[None, None, None, :])
    return xw


def upsample_reference(in_tensor, encoded_feature, conv_w, conv_b):
    up = bilinear_upsample_2x(in_tensor.astype(jnp.float32))
    y = jax.lax.conv_general_dilated(
        up, conv_w, window_strides=(1, 1), padding=((1, 1), (1, 1)),
        dimension_numbers=("NCHW", "OIHW", "NCHW"))
    y = y + conv_b[None, :, None, None]
    mean = jnp.mean(y, axis=(2, 3), keepdims=True)
    var = jnp.mean((y - mean) ** 2, axis=(2, 3), keepdims=True)
    y = (y - mean) * jax.lax.rsqrt(var + 1e-5)
    y = jnp.where(y >= 0, y, 0.1 * y)
    return jnp.concatenate([encoded_feature.astype(jnp.float32), y], axis=1)


if __name__ == "__main__":
    key = jax.random.PRNGKey(0)
    k1, k2, k3, k4 = jax.random.split(key, 4)

    N, in_ch, H, W = 2, 4, 16, 16
    out_ch = in_ch // 2

    in_tensor = jax.random.normal(k1, (N, in_ch, H, W), dtype=jnp.float32)
    encoded_feature = jax.random.normal(k2, (N, out_ch, 2 * H, 2 * W), dtype=jnp.float32)

    # Deterministic synthetic parameters for nn.Conv2d(in_ch, out_ch, 3, 1, 1).
    fan_in = in_ch * 3 * 3
    bound = 1.0 / np.sqrt(fan_in)
    conv_w = jax.random.uniform(k3, (out_ch, in_ch, 3, 3), jnp.float32, -bound, bound)
    conv_b = jax.random.uniform(k4, (out_ch,), jnp.float32, -bound, bound)

    out = jax.block_until_ready(
        upsample_forward(in_tensor, encoded_feature, conv_w, conv_b))
    ref = jax.block_until_ready(
        upsample_reference(in_tensor, encoded_feature, conv_w, conv_b))

    assert out.shape == (N, 2 * out_ch, 2 * H, 2 * W), out.shape
    if not np.allclose(np.asarray(out), np.asarray(ref), rtol=1e-3, atol=1e-3):
        raise AssertionError("Pallas kernel mismatch vs JAX reference")
    print("KERNEL_OK")
</pallas_src>

<mosaic_0001>
module attributes {stable_mosaic.version = 11 : i64} {
  func.func @_fused_upsample_kernel(%arg0: i32, %arg1: memref<1x4x16x16xf32, #tpu.memory_space<vmem>>, %arg2: memref<1x2x32x32xf32, #tpu.memory_space<vmem>>, %arg3: memref<3x32x16xf32, #tpu.memory_space<vmem>>, %arg4: memref<3x16x32xf32, #tpu.memory_space<vmem>>, %arg5: memref<72xf32, #tpu.memory_space<smem>>, %arg6: memref<2xf32, #tpu.memory_space<smem>>, %arg7: memref<1x4x32x32xf32, #tpu.memory_space<vmem>>) attributes {dimension_semantics = [#tpu.dimension_semantics<parallel>], iteration_bounds = array<i64: 2>, scalar_prefetch = 0 : i64, scratch_operands = 0 : i64, tpu.core_type = #tpu.core_type<tc>, window_params = [{transform_indices = @transform_0, window_bounds = array<i64: 1, 4, 16, 16>}, {transform_indices = @transform_1, window_bounds = array<i64: 1, 2, 32, 32>}, {pipeline_mode = #tpu.pipeline_mode<synchronous>, transform_indices = @transform_2, window_bounds = array<i64: 3, 32, 16>}, {pipeline_mode = #tpu.pipeline_mode<synchronous>, transform_indices = @transform_3, window_bounds = array<i64: 3, 16, 32>}, {transform_indices = @transform_4, window_bounds = array<i64: 72>}, {transform_indices = @transform_5, window_bounds = array<i64: 2>}, {transform_indices = @transform_6, window_bounds = array<i64: 1, 4, 32, 32>}]} {
    %c0 = arith.constant 0 : index
    %c0_0 = arith.constant 0 : index
    %c0_1 = arith.constant 0 : index
    %c0_2 = arith.constant 0 : index
    %0 = vector.load %arg2[%c0, %c0_0, %c0_1, %c0_2] : memref<1x2x32x32xf32, #tpu.memory_space<vmem>>, vector<1x2x32x32xf32>
    %1 = vector.shape_cast %0 : vector<1x2x32x32xf32> to vector<2x32x32xf32>
    %c0_3 = arith.constant 0 : index
    %c0_4 = arith.constant 0 : index
    %c0_5 = arith.constant 0 : index
    %c0_6 = arith.constant 0 : index
    %2 = vector.load %arg7[%c0_3, %c0_4, %c0_5, %c0_6] : memref<1x4x32x32xf32, #tpu.memory_space<vmem>>, vector<1x2x32x32xf32>
    %3 = vector.shape_cast %2 : vector<1x2x32x32xf32> to vector<2x32x32xf32>
    %4 = vector.shape_cast %1 : vector<2x32x32xf32> to vector<1x2x32x32xf32>
    tpu.vector_store %arg7[%c0_3, %c0_4, %c0_5, %c0_6], %4 {strides = array<i32>} : memref<1x4x32x32xf32, #tpu.memory_space<vmem>>, vector<1x2x32x32xf32>,
    %c0_7 = arith.constant 0 : index
    %c0_8 = arith.constant 0 : index
    %c0_9 = arith.constant 0 : index
    %c0_10 = arith.constant 0 : index
    %5 = vector.load %arg1[%c0_7, %c0_8, %c0_9, %c0_10] : memref<1x4x16x16xf32, #tpu.memory_space<vmem>>, vector<1x4x16x16xf32>
    %6 = vector.shape_cast %5 : vector<1x4x16x16xf32> to vector<4x16x16xf32>
    %cst = arith.constant 0.000000e+00 : f32
    %7 = vector.broadcast %cst : f32 to vector<32x32xf32>
    %c0_11 = arith.constant 0 : index
    %c0_12 = arith.constant 0 : index
    %c0_13 = arith.constant 0 : index
    %8 = vector.load %arg3[%c0_11, %c0_12, %c0_13] : memref<3x32x16xf32, #tpu.memory_space<vmem>>, vector<1x32x16xf32>
    %9 = vector.shape_cast %8 : vector<1x32x16xf32> to vector<32x16xf32>
    %cst_14 = arith.constant 0.000000e+00 : f32
    %10 = vector.broadcast %cst_14 : f32 to vector<16x16xf32>
    %c0_15 = arith.constant 0 : index
    %11 = memref.load %arg5[%c0_15] : memref<72xf32, #tpu.memory_space<smem>>
    %12 = vector.extract_strided_slice %6 {offsets = [0, 0, 0], sizes = [1, 16, 16], strides = [1, 1, 1]} : vector<4x16x16xf32> to vector<1x16x16xf32>
    %13 = vector.shape_cast %12 : vector<1x16x16xf32> to vector<16x16xf32>
    %14 = vector.broadcast %11 : f32 to vector<16x16xf32>
    %15 = arith.mulf %14, %13 : vector<16x16xf32>
    %16 = arith.addf %10, %15 : vector<16x16xf32>
    %c9 = arith.constant 9 : index
    %17 = memref.load %arg5[%c9] : memref<72xf32, #tpu.memory_space<smem>>
    %18 = vector.extract_strided_slice %6 {offsets = [1, 0, 0], sizes = [1, 16, 16], strides = [1, 1, 1]} : vector<4x16x16xf32> to vector<1x16x16xf32>
    %19 = vector.shape_cast %18 : vector<1x16x16xf32> to vector<16x16xf32>
    %20 = vector.broadcast %17 : f32 to vector<16x16xf32>
    %21 = arith.mulf %20, %19 : vector<16x16xf32>
    %22 = arith.addf %16, %21 : vector<16x16xf32>
    %c18 = arith.constant 18 : index
    %23 = memref.load %arg5[%c18] : memref<72xf32, #tpu.memory_space<smem>>
    %24 = vector.extract_strided_slice %6 {offsets = [2, 0, 0], sizes = [1, 16, 16], strides = [1, 1, 1]} : vector<4x16x16xf32> to vector<1x16x16xf32>
    %25 = vector.shape_cast %24 : vector<1x16x16xf32> to vector<16x16xf32>
    %26 = vector.broadcast %23 : f32 to vector<16x16xf32>
    %27 = arith.mulf %26, %25 : vector<16x16xf32>
    %28 = arith.addf %22, %27 : vector<16x16xf32>
    %c27 = arith.constant 27 : index
    %29 = memref.load %arg5[%c27] : memref<72xf32, #tpu.memory_space<smem>>
    %30 = vector.extract_strided_slice %6 {offsets = [3, 0, 0], sizes = [1, 16, 16], strides = [1, 1, 1]} : vector<4x16x16xf32> to vector<1x16x16xf32>
    %31 = vector.shape_cast %30 : vector<1x16x16xf32> to vector<16x16xf32>
    %32 = vector.broadcast %29 : f32 to vector<16x16xf32>
    %33 = arith.mulf %32, %31 : vector<16x16xf32>
    %34 = arith.addf %28, %33 : vector<16x16xf32>
    %cst_16 = arith.constant dense<0.000000e+00> : vector<32x16xf32>
    %35 = tpu.matmul %9, %34, %cst_16 {dimension_numbers = #tpu.dot_dimension_numbers<[1], [0], [0], [1], [0, 0, 1, 1], [], []>} : vector<32x16xf32>, vector<16x16xf32>, vector<32x16xf32> -> vector<32x16xf32>
    %c0_17 = arith.constant 0 : index
    %c0_18 = arith.constant 0 : index
    %c0_19 = arith.constant 0 : index
    %36 = vector.load %arg4[%c0_17, %c0_18, %c0_19] : memref<3x16x32xf32, #tpu.memory_space<vmem>>, vector<1x16x32xf32>
    %37 = vector.shape_cast %36 : vector<1x16x32xf32> to vector<16x32xf32>
    %cst_20 = arith.constant dense<0.000000e+00> : vector<32x32xf32>
    %38 = tpu.matmul %35, %37, %cst_20 {dimension_numbers = #tpu.dot_dimension_numbers<[1], [0], [0], [1], [0, 0, 1, 1], [], []>} : vector<32x16xf32>, vector<16x32xf32>, vector<32x32xf32> -> vector<32x32xf32>
    %39 = arith.addf %7, %38 : vector<32x32xf32>
    %cst_21 = arith.constant 0.000000e+00 : f32
    %40 = vector.broadcast %cst_21 : f32 to vector<16x16xf32>
    %c1 = arith.constant 1 : index
    %41 = memref.load %arg5[%c1] : memref<72xf32, #tpu.memory_space<smem>>
    %42 = vector.extract_strided_slice %6 {offsets = [0, 0, 0], sizes = [1, 16, 16], strides = [1, 1, 1]} : vector<4x16x16xf32> to vector<1x16x16xf32>
    %43 = vector.shape_cast %42 : vector<1x16x16xf32> to vector<16x16xf32>
    %44 = vector.broadcast %41 : f32 to vector<16x16xf32>
    %45 = arith.mulf %44, %43 : vector<16x16xf32>
    %46 = arith.addf %40, %45 : vector<16x16xf32>
    %c10 = arith.constant 10 : index
    %47 = memref.load %arg5[%c10] : memref<72xf32, #tpu.memory_space<smem>>
    %48 = vector.extract_strided_slice %6 {offsets = [1, 0, 0], sizes = [1, 16, 16], strides = [1, 1, 1]} : vector<4x16x16xf32> to vector<1x16x16xf32>
    %49 = vector.shape_cast %48 : vector<1x16x16xf32> to vector<16x16xf32>
    %50 = vector.broadcast %47 : f32 to vector<16x16xf32>
    %51 = arith.mulf %50, %49 : vector<16x16xf32>
    %52 = arith.addf %46, %51 : vector<16x16xf32>
    %c19 = arith.constant 19 : index
    %53 = memref.load %arg5[%c19] : memref<72xf32, #tpu.memory_space<smem>>
    %54 = vector.extract_strided_slice %6 {offsets = [2, 0, 0], sizes = [1, 16, 16], strides = [1, 1, 1]} : vector<4x16x16xf32> to vector<1x16x16xf32>
    %55 = vector.shape_cast %54 : vector<1x16x16xf32> to vector<16x16xf32>
    %56 = vector.broadcast %53 : f32 to vector<16x16xf32>
    %57 = arith.mulf %56, %55 : vector<16x16xf32>
    %58 = arith.addf %52, %57 : vector<16x16xf32>
    %c28 = arith.constant 28 : index
    %59 = memref.load %arg5[%c28] : memref<72xf32, #tpu.memory_space<smem>>
    %60 = vector.extract_strided_slice %6 {offsets = [3, 0, 0], sizes = [1, 16, 16], strides = [1, 1, 1]} : vector<4x16x16xf32> to vector<1x16x16xf32>
    %61 = vector.shape_cast %60 : vector<1x16x16xf32> to vector<16x16xf32>
    %62 = vector.broadcast %59 : f32 to vector<16x16xf32>
    %63 = arith.mulf %62, %61 : vector<16x16xf32>
    %64 = arith.addf %58, %63 : vector<16x16xf32>
    %cst_22 = arith.constant dense<0.000000e+00> : vector<32x16xf32>
    %65 = tpu.matmul %9, %64, %cst_22 {dimension_numbers = #tpu.dot_dimension_numbers<[1], [0], [0], [1], [0, 0, 1, 1], [], []>} : vector<32x16xf32>, vector<16x16xf32>, vector<32x16xf32> -> vector<32x16xf32>
    %c1_23 = arith.constant 1 : index
    %c0_24 = arith.constant 0 : index
    %c0_25 = arith.constant 0 : index
    %66 = vector.load %arg4[%c1_23, %c0_24, %c0_25] : memref<3x16x32xf32, #tpu.memory_space<vmem>>, vector<1x16x32xf32>
    %67 = vector.shape_cast %66 : vector<1x16x32xf32> to vector<16x32xf32>
    %cst_26 = arith.constant dense<0.000000e+00> : vector<32x32xf32>
    %68 = tpu.matmul %65, %67, %cst_26 {dimension_numbers = #tpu.dot_dimension_numbers<[1], [0], [0], [1], [0, 0, 1, 1], [], []>} : vector<32x16xf32>, vector<16x32xf32>, vector<32x32xf32> -> vector<32x32xf32>
    %69 = arith.addf %39, %68 : vector<32x32xf32>
    %cst_27 = arith.constant 0.000000e+00 : f32
    %70 = vector.broadcast %cst_27 : f32 to vector<16x16xf32>
    %c2 = arith.constant 2 : index
    %71 = memref.load %arg5[%c2] : memref<72xf32, #tpu.memory_space<smem>>
    %72 = vector.extract_strided_slice %6 {offsets = [0, 0, 0], sizes = [1, 16, 16], strides = [1, 1, 1]} : vector<4x16x16xf32> to vector<1x16x16xf32>
    %73 = vector.shape_cast %72 : vector<1x16x16xf32> to vector<16x16xf32>
    %74 = vector.broadcast %71 : f32 to vector<16x16xf32>
    %75 = arith.mulf %74, %73 : vector<16x16xf32>
    %76 = arith.addf %70, %75 : vector<16x16xf32>
    %c11 = arith.constant 11 : index
    %77 = memref.load %arg5[%c11] : memref<72xf32, #tpu.memory_space<smem>>
    %78 = vector.extract_strided_slice %6 {offsets = [1, 0, 0], sizes = [1, 16, 16], strides = [1, 1, 1]} : vector<4x16x16xf32> to vector<1x16x16xf32>
    %79 = vector.shape_cast %78 : vector<1x16x16xf32> to vector<16x16xf32>
    %80 = vector.broadcast %77 : f32 to vector<16x16xf32>
    %81 = arith.mulf %80, %79 : vector<16x16xf32>
    %82 = arith.addf %76, %81 : vector<16x16xf32>
    %c20 = arith.constant 20 : index
    %83 = memref.load %arg5[%c20] : memref<72xf32, #tpu.memory_space<smem>>
    %84 = vector.extract_strided_slice %6 {offsets = [2, 0, 0], sizes = [1, 16, 16], strides = [1, 1, 1]} : vector<4x16x16xf32> to vector<1x16x16xf32>
    %85 = vector.shape_cast %84 : vector<1x16x16xf32> to vector<16x16xf32>
    %86 = vector.broadcast %83 : f32 to vector<16x16xf32>
    %87 = arith.mulf %86, %85 : vector<16x16xf32>
    %88 = arith.addf %82, %87 : vector<16x16xf32>
    %c29 = arith.constant 29 : index
    %89 = memref.load %arg5[%c29] : memref<72xf32, #tpu.memory_space<smem>>
    %90 = vector.extract_strided_slice %6 {offsets = [3, 0, 0], sizes = [1, 16, 16], strides = [1, 1, 1]} : vector<4x16x16xf32> to vector<1x16x16xf32>
    %91 = vector.shape_cast %90 : vector<1x16x16xf32> to vector<16x16xf32>
    %92 = vector.broadcast %89 : f32 to vector<16x16xf32>
    %93 = arith.mulf %92, %91 : vector<16x16xf32>
    %94 = arith.addf %88, %93 : vector<16x16xf32>
    %cst_28 = arith.constant dense<0.000000e+00> : vector<32x16xf32>
    %95 = tpu.matmul %9, %94, %cst_28 {dimension_numbers = #tpu.dot_dimension_numbers<[1], [0], [0], [1], [0, 0, 1, 1], [], []>} : vector<32x16xf32>, vector<16x16xf32>, vector<32x16xf32> -> vector<32x16xf32>
    %c2_29 = arith.constant 2 : index
    %c0_30 = arith.constant 0 : index
    %c0_31 = arith.constant 0 : index
    %96 = vector.load %arg4[%c2_29, %c0_30, %c0_31] : memref<3x16x32xf32, #tpu.memory_space<vmem>>, vector<1x16x32xf32>
    %97 = vector.shape_cast %96 : vector<1x16x32xf32> to vector<16x32xf32>
    %cst_32 = arith.constant dense<0.000000e+00> : vector<32x32xf32>
    %98 = tpu.matmul %95, %97, %cst_32 {dimension_numbers = #tpu.dot_dimension_numbers<[1], [0], [0], [1], [0, 0, 1, 1], [], []>} : vector<32x16xf32>, vector<16x32xf32>, vector<32x32xf32> -> vector<32x32xf32>
    %99 = arith.addf %69, %98 : vector<32x32xf32>
    %c1_33 = arith.constant 1 : index
    %c0_34 = arith.constant 0 : index
    %c0_35 = arith.constant 0 : index
    %100 = vector.load %arg3[%c1_33, %c0_34, %c0_35] : memref<3x32x16xf32, #tpu.memory_space<vmem>>, vector<1x32x16xf32>
    %101 = vector.shape_cast %100 : vector<1x32x16xf32> to vector<32x16xf32>
    %cst_36 = arith.constant 0.000000e+00 : f32
    %102 = vector.broadcast %cst_36 : f32 to vector<16x16xf32>
    %c3 = arith.constant 3 : index
    %103 = memref.load %arg5[%c3] : memref<72xf32, #tpu.memory_space<smem>>
    %104 = vector.extract_strided_slice %6 {offsets = [0, 0, 0], sizes = [1, 16, 16], strides = [1, 1, 1]} : vector<4x16x16xf32> to vector<1x16x16xf32>
    %105 = vector.shape_cast %104 : vector<1x16x16xf32> to vector<16x16xf32>
    %106 = vector.broadcast %103 : f32 to vector<16x16xf32>
    %107 = arith.mulf %106, %105 : vector<16x16xf32>
    %108 = arith.addf %102, %107 : vector<16x16xf32>
    %c12 = arith.constant 12 : index
    %109 = memref.load %arg5[%c12] : memref<72xf32, #tpu.memory_space<smem>>
    %110 = vector.extract_strided_slice %6 {offsets = [1, 0, 0], sizes = [1, 16, 16], strides = [1, 1, 1]} : vector<4x16x16xf32> to vector<1x16x16xf32>
    %111 = vector.shape_cast %110 : vector<1x16x16xf32> to vector<16x16xf32>
    %112 = vector.broadcast %109 : f32 to vector<16x16xf32>
    %113 = arith.mulf %112, %111 : vector<16x16xf32>
    %114 = arith.addf %108, %113 : vector<16x16xf32>
    %c21 = arith.constant 21 : index
    %115 = memref.load %arg5[%c21] : memref<72xf32, #tpu.memory_space<smem>>
    %116 = vector.extract_strided_slice %6 {offsets = [2, 0, 0], sizes = [1, 16, 16], strides = [1, 1, 1]} : vector<4x16x16xf32> to vector<1x16x16xf32>
    %117 = vector.shape_cast %116 : vector<1x16x16xf32> to vector<16x16xf32>
    %118 = vector.broadcast %115 : f32 to vector<16x16xf32>
    %119 = arith.mulf %118, %117 : vector<16x16xf32>
    %120 = arith.addf %114, %119 : vector<16x16xf32>
    %c30 = arith.constant 30 : index
    %121 = memref.load %arg5[%c30] : memref<72xf32, #tpu.memory_space<smem>>
    %122 = vector.extract_strided_slice %6 {offsets = [3, 0, 0], sizes = [1, 16, 16], strides = [1, 1, 1]} : vector<4x16x16xf32> to vector<1x16x16xf32>
    %123 = vector.shape_cast %122 : vector<1x16x16xf32> to vector<16x16xf32>
    %124 = vector.broadcast %121 : f32 to vector<16x16xf32>
    %125 = arith.mulf %124, %123 : vector<16x16xf32>
    %126 = arith.addf %120, %125 : vector<16x16xf32>
    %cst_37 = arith.constant dense<0.000000e+00> : vector<32x16xf32>
    %127 = tpu.matmul %101, %126, %cst_37 {dimension_numbers = #tpu.dot_dimension_numbers<[1], [0], [0], [1], [0, 0, 1, 1], [], []>} : vector<32x16xf32>, vector<16x16xf32>, vector<32x16xf32> -> vector<32x16xf32>
    %c0_38 = arith.constant 0 : index
    %c0_39 = arith.constant 0 : index
    %c0_40 = arith.constant 0 : index
    %128 = vector.load %arg4[%c0_38, %c0_39, %c0_40] : memref<3x16x32xf32, #tpu.memory_space<vmem>>, vector<1x16x32xf32>
    %129 = vector.shape_cast %128 : vector<1x16x32xf32> to vector<16x32xf32>
    %cst_41 = arith.constant dense<0.000000e+00> : vector<32x32xf32>
    %130 = tpu.matmul %127, %129, %cst_41 {dimension_numbers = #tpu.dot_dimension_numbers<[1], [0], [0], [1], [0, 0, 1, 1], [], []>} : vector<32x16xf32>, vector<16x32xf32>, vector<32x32xf32> -> vector<32x32xf32>
    %131 = arith.addf %99, %130 : vector<32x32xf32>
    %cst_42 = arith.constant 0.000000e+00 : f32
    %132 = vector.broadcast %cst_42 : f32 to vector<16x16xf32>
    %c4 = arith.constant 4 : index
    %133 = memref.load %arg5[%c4] : memref<72xf32, #tpu.memory_space<smem>>
    %134 = vector.extract_strided_slice %6 {offsets = [0, 0, 0], sizes = [1, 16, 16], strides = [1, 1, 1]} : vector<4x16x16xf32> to vector<1x16x16xf32>
    %135 = vector.shape_cast %134 : vector<1x16x16xf32> to vector<16x16xf32>
    %136 = vector.broadcast %133 : f32 to vector<16x16xf32>
    %137 = arith.mulf %136, %135 : vector<16x16xf32>
    %138 = arith.addf %132, %137 : vector<16x16xf32>
    %c13 = arith.constant 13 : index
    %139 = memref.load %arg5[%c13] : memref<72xf32, #tpu.memory_space<smem>>
    %140 = vector.extract_strided_slice %6 {offsets = [1, 0, 0], sizes = [1, 16, 16], strides = [1, 1, 1]} : vector<4x16x16xf32> to vector<1x16x16xf32>
    %141 = vector.shape_cast %140 : vector<1x16x16xf32> to vector<16x16xf32>
    %142 = vector.broadcast %139 : f32 to vector<16x16xf32>
    %143 = arith.mulf %142, %141 : vector<16x16xf32>
    %144 = arith.addf %138, %143 : vector<16x16xf32>
    %c22 = arith.constant 22 : index
    %145 = memref.load %arg5[%c22] : memref<72xf32, #tpu.memory_space<smem>>
    %146 = vector.extract_strided_slice %6 {offsets = [2, 0, 0], sizes = [1, 16, 16], strides = [1, 1, 1]} : vector<4x16x16xf32> to vector<1x16x16xf32>
    %147 = vector.shape_cast %146 : vector<1x16x16xf32> to vector<16x16xf32>
    %148 = vector.broadcast %145 : f32 to vector<16x16xf32>
    %149 = arith.mulf %148, %147 : vector<16x16xf32>
    %150 = arith.addf %144, %149 : vector<16x16xf32>
    %c31 = arith.constant 31 : index
    %151 = memref.load %arg5[%c31] : memref<72xf32, #tpu.memory_space<smem>>
    %152 = vector.extract_strided_slice %6 {offsets = [3, 0, 0], sizes = [1, 16, 16], strides = [1, 1, 1]} : vector<4x16x16xf32> to vector<1x16x16xf32>
    %153 = vector.shape_cast %152 : vector<1x16x16xf32> to vector<16x16xf32>
    %154 = vector.broadcast %151 : f32 to vector<16x16xf32>
    %155 = arith.mulf %154, %153 : vector<16x16xf32>
    %156 = arith.addf %150, %155 : vector<16x16xf32>
    %cst_43 = arith.constant dense<0.000000e+00> : vector<32x16xf32>
    %157 = tpu.matmul %101, %156, %cst_43 {dimension_numbers = #tpu.dot_dimension_numbers<[1], [0], [0], [1], [0, 0, 1, 1], [], []>} : vector<32x16xf32>, vector<16x16xf32>, vector<32x16xf32> -> vector<32x16xf32>
    %c1_44 = arith.constant 1 : index
    %c0_45 = arith.constant 0 : index
    %c0_46 = arith.constant 0 : index
    %158 = vector.load %arg4[%c1_44, %c0_45, %c0_46] : memref<3x16x32xf32, #tpu.memory_space<vmem>>, vector<1x16x32xf32>
    %159 = vector.shape_cast %158 : vector<1x16x32xf32> to vector<16x32xf32>
    %cst_47 = arith.constant dense<0.000000e+00> : vector<32x32xf32>
    %160 = tpu.matmul %157, %159, %cst_47 {dimension_numbers = #tpu.dot_dimension_numbers<[1], [0], [0], [1], [0, 0, 1, 1], [], []>} : vector<32x16xf32>, vector<16x32xf32>, vector<32x32xf32> -> vector<32x32xf32>
    %161 = arith.addf %131, %160 : vector<32x32xf32>
    %cst_48 = arith.constant 0.000000e+00 : f32
    %162 = vector.broadcast %cst_48 : f32 to vector<16x16xf32>
    %c5 = arith.constant 5 : index
    %163 = memref.load %arg5[%c5] : memref<72xf32, #tpu.memory_space<smem>>
    %164 = vector.extract_strided_slice %6 {offsets = [0, 0, 0], sizes = [1, 16, 16], strides = [1, 1, 1]} : vector<4x16x16xf32> to vector<1x16x16xf32>
    %165 = vector.shape_cast %164 : vector<1x16x16xf32> to vector<16x16xf32>
    %166 = vector.broadcast %163 : f32 to vector<16x16xf32>
    %167 = arith.mulf %166, %165 : vector<16x16xf32>
    %168 = arith.addf %162, %167 : vector<16x16xf32>
    %c14 = arith.constant 14 : index
    %169 = memref.load %arg5[%c14] : memref<72xf32, #tpu.memory_space<smem>>
    %170 = vector.extract_strided_slice %6 {offsets = [1, 0, 0], sizes = [1, 16, 16], strides = [1, 1, 1]} : vector<4x16x16xf32> to vector<1x16x16xf32>
    %171 = vector.shape_cast %170 : vector<1x16x16xf32> to vector<16x16xf32>
    %172 = vector.broadcast %169 : f32 to vector<16x16xf32>
    %173 = arith.mulf %172, %171 : vector<16x16xf32>
    %174 = arith.addf %168, %173 : vector<16x16xf32>
    %c23 = arith.constant 23 : index
    %175 = memref.load %arg5[%c23] : memref<72xf32, #tpu.memory_space<smem>>
    %176 = vector.extract_strided_slice %6 {offsets = [2, 0, 0], sizes = [1, 16, 16], strides = [1, 1, 1]} : vector<4x16x16xf32> to vector<1x16x16xf32>
    %177 = vector.shape_cast %176 : vector<1x16x16xf32> to vector<16x16xf32>
    %178 = vector.broadcast %175 : f32 to vector<16x16xf32>
    %179 = arith.mulf %178, %177 : vector<16x16xf32>
    %180 = arith.addf %174, %179 : vector<16x16xf32>
    %c32 = arith.constant 32 : index
    %181 = memref.load %arg5[%c32] : memref<72xf32, #tpu.memory_space<smem>>
    %182 = vector.extract_strided_slice %6 {offsets = [3, 0, 0], sizes = [1, 16, 16], strides = [1, 1, 1]} : vector<4x16x16xf32> to vector<1x16x16xf32>
    %183 = vector.shape_cast %182 : vector<1x16x16xf32> to vector<16x16xf32>
    %184 = vector.broadcast %181 : f32 to vector<16x16xf32>
    %185 = arith.mulf %184, %183 : vector<16x16xf32>
    %186 = arith.addf %180, %185 : vector<16x16xf32>
    %cst_49 = arith.constant dense<0.000000e+00> : vector<32x16xf32>
    %187 = tpu.matmul %101, %186, %cst_49 {dimension_numbers = #tpu.dot_dimension_numbers<[1], [0], [0], [1], [0, 0, 1, 1], [], []>} : vector<32x16xf32>, vector<16x16xf32>, vector<32x16xf32> -> vector<32x16xf32>
    %c2_50 = arith.constant 2 : index
    %c0_51 = arith.constant 0 : index
    %c0_52 = arith.constant 0 : index
    %188 = vector.load %arg4[%c2_50, %c0_51, %c0_52] : memref<3x16x32xf32, #tpu.memory_space<vmem>>, vector<1x16x32xf32>
    %189 = vector.shape_cast %188 : vector<1x16x32xf32> to vector<16x32xf32>
    %cst_53 = arith.constant dense<0.000000e+00> : vector<32x32xf32>
    %190 = tpu.matmul %187, %189, %cst_53 {dimension_numbers = #tpu.dot_dimension_numbers<[1], [0], [0], [1], [0, 0, 1, 1], [], []>} : vector<32x16xf32>, vector<16x32xf32>, vector<32x32xf32> -> vector<32x32xf32>
    %191 = arith.addf %161, %190 : vector<32x32xf32>
    %c2_54 = arith.constant 2 : index
    %c0_55 = arith.constant 0 : index
    %c0_56 = arith.constant 0 : index
    %192 = vector.load %arg3[%c2_54, %c0_55, %c0_56] : memref<3x32x16xf32, #tpu.memory_space<vmem>>, vector<1x32x16xf32>
    %193 = vector.shape_cast %192 : vector<1x32x16xf32> to vector<32x16xf32>
    %cst_57 = arith.constant 0.000000e+00 : f32
    %194 = vector.broadcast %cst_57 : f32 to vector<16x16xf32>
    %c6 = arith.constant 6 : index
    %195 = memref.load %arg5[%c6] : memref<72xf32, #tpu.memory_space<smem>>
    %196 = vector.extract_strided_slice %6 {offsets = [0, 0, 0], sizes = [1, 16, 16], strides = [1, 1, 1]} : vector<4x16x16xf32> to vector<1x16x16xf32>
    %197 = vector.shape_cast %196 : vector<1x16x16xf32> to vector<16x16xf32>
    %198 = vector.broadcast %195 : f32 to vector<16x16xf32>
    %199 = arith.mulf %198, %197 : vector<16x16xf32>
    %200 = arith.addf %194, %199 : vector<16x16xf32>
    %c15 = arith.constant 15 : index
    %201 = memref.load %arg5[%c15] : memref<72xf32, #tpu.memory_space<smem>>
    %202 = vector.extract_strided_slice %6 {offsets = [1, 0, 0], sizes = [1, 16, 16], strides = [1, 1, 1]} : vector<4x16x16xf32> to vector<1x16x16xf32>
    %203 = vector.shape_cast %202 : vector<1x16x16xf32> to vector<16x16xf32>
    %204 = vector.broadcast %201 : f32 to vector<16x16xf32>
    %205 = arith.mulf %204, %203 : vector<16x16xf32>
    %206 = arith.addf %200, %205 : vector<16x16xf32>
    %c24 = arith.constant 24 : index
    %207 = memref.load %arg5[%c24] : memref<72xf32, #tpu.memory_space<smem>>
    %208 = vector.extract_strided_slice %6 {offsets = [2, 0, 0], sizes = [1, 16, 16], strides = [1, 1, 1]} : vector<4x16x16xf32> to vector<1x16x16xf32>
    %209 = vector.shape_cast %208 : vector<1x16x16xf32> to vector<16x16xf32>
    %210 = vector.broadcast %207 : f32 to vector<16x16xf32>
    %211 = arith.mulf %210, %209 : vector<16x16xf32>
    %212 = arith.addf %206, %211 : vector<16x16xf32>
    %c33 = arith.constant 33 : index
    %213 = memref.load %arg5[%c33] : memref<72xf32, #tpu.memory_space<smem>>
    %214 = vector.extract_strided_slice %6 {offsets = [3, 0, 0], sizes = [1, 16, 16], strides = [1, 1, 1]} : vector<4x16x16xf32> to vector<1x16x16xf32>
    %215 = vector.shape_cast %214 : vector<1x16x16xf32> to vector<16x16xf32>
    %216 = vector.broadcast %213 : f32 to vector<16x16xf32>
    %217 = arith.mulf %216, %215 : vector<16x16xf32>
    %218 = arith.addf %212, %217 : vector<16x16xf32>
    %cst_58 = arith.constant dense<0.000000e+00> : vector<32x16xf32>
    %219 = tpu.matmul %193, %218, %cst_58 {dimension_numbers = #tpu.dot_dimension_numbers<[1], [0], [0], [1], [0, 0, 1, 1], [], []>} : vector<32x16xf32>, vector<16x16xf32>, vector<32x16xf32> -> vector<32x16xf32>
    %c0_59 = arith.constant 0 : index
    %c0_60 = arith.constant 0 : index
    %c0_61 = arith.constant 0 : index
    %220 = vector.load %arg4[%c0_59, %c0_60, %c0_61] : memref<3x16x32xf32, #tpu.memory_space<vmem>>, vector<1x16x32xf32>
    %221 = vector.shape_cast %220 : vector<1x16x32xf32> to vector<16x32xf32>
    %cst_62 = arith.constant dense<0.000000e+00> : vector<32x32xf32>
    %222 = tpu.matmul %219, %221, %cst_62 {dimension_numbers = #tpu.dot_dimension_numbers<[1], [0], [0], [1], [0, 0, 1, 1], [], []>} : vector<32x16xf32>, vector<16x32xf32>, vector<32x32xf32> -> vector<32x32xf32>
    %223 = arith.addf %191, %222 : vector<32x32xf32>
    %cst_63 = arith.constant 0.000000e+00 : f32
    %224 = vector.broadcast %cst_63 : f32 to vector<16x16xf32>
    %c7 = arith.constant 7 : index
    %225 = memref.load %arg5[%c7] : memref<72xf32, #tpu.memory_space<smem>>
    %226 = vector.extract_strided_slice %6 {offsets = [0, 0, 0], sizes = [1, 16, 16], strides = [1, 1, 1]} : vector<4x16x16xf32> to vector<1x16x16xf32>
    %227 = vector.shape_cast %226 : vector<1x16x16xf32> to vector<16x16xf32>
    %228 = vector.broadcast %225 : f32 to vector<16x16xf32>
    %229 = arith.mulf %228, %227 : vector<16x16xf32>
    %230 = arith.addf %224, %229 : vector<16x16xf32>
    %c16 = arith.constant 16 : index
    %231 = memref.load %arg5[%c16] : memref<72xf32, #tpu.memory_space<smem>>
    %232 = vector.extract_strided_slice %6 {offsets = [1, 0, 0], sizes = [1, 16, 16], strides = [1, 1, 1]} : vector<4x16x16xf32> to vector<1x16x16xf32>
    %233 = vector.shape_cast %232 : vector<1x16x16xf32> to vector<16x16xf32>
    %234 = vector.broadcast %231 : f32 to vector<16x16xf32>
    %235 = arith.mulf %234, %233 : vector<16x16xf32>
    %236 = arith.addf %230, %235 : vector<16x16xf32>
    %c25 = arith.constant 25 : index
    %237 = memref.load %arg5[%c25] : memref<72xf32, #tpu.memory_space<smem>>
    %238 = vector.extract_strided_slice %6 {offsets = [2, 0, 0], sizes = [1, 16, 16], strides = [1, 1, 1]} : vector<4x16x16xf32> to vector<1x16x16xf32>
    %239 = vector.shape_cast %238 : vector<1x16x16xf32> to vector<16x16xf32>
    %240 = vector.broadcast %237 : f32 to vector<16x16xf32>
    %241 = arith.mulf %240, %239 : vector<16x16xf32>
    %242 = arith.addf %236, %241 : vector<16x16xf32>
    %c34 = arith.constant 34 : index
    %243 = memref.load %arg5[%c34] : memref<72xf32, #tpu.memory_space<smem>>
    %244 = vector.extract_strided_slice %6 {offsets = [3, 0, 0], sizes = [1, 16, 16], strides = [1, 1, 1]} : vector<4x16x16xf32> to vector<1x16x16xf32>
    %245 = vector.shape_cast %244 : vector<1x16x16xf32> to vector<16x16xf32>
    %246 = vector.broadcast %243 : f32 to vector<16x16xf32>
    %247 = arith.mulf %246, %245 : vector<16x16xf32>
    %248 = arith.addf %242, %247 : vector<16x16xf32>
    %cst_64 = arith.constant dense<0.000000e+00> : vector<32x16xf32>
    %249 = tpu.matmul %193, %248, %cst_64 {dimension_numbers = #tpu.dot_dimension_numbers<[1], [0], [0], [1], [0, 0, 1, 1], [], []>} : vector<32x16xf32>, vector<16x16xf32>, vector<32x16xf32> -> vector<32x16xf32>
    %c1_65 = arith.constant 1 : index
    %c0_66 = arith.constant 0 : index
    %c0_67 = arith.constant 0 : index
    %250 = vector.load %arg4[%c1_65, %c0_66, %c0_67] : memref<3x16x32xf32, #tpu.memory_space<vmem>>, vector<1x16x32xf32>
    %251 = vector.shape_cast %250 : vector<1x16x32xf32> to vector<16x32xf32>
    %cst_68 = arith.constant dense<0.000000e+00> : vector<32x32xf32>
    %252 = tpu.matmul %249, %251, %cst_68 {dimension_numbers = #tpu.dot_dimension_numbers<[1], [0], [0], [1], [0, 0, 1, 1], [], []>} : vector<32x16xf32>, vector<16x32xf32>, vector<32x32xf32> -> vector<32x32xf32>
    %253 = arith.addf %223, %252 : vector<32x32xf32>
    %cst_69 = arith.constant 0.000000e+00 : f32
    %254 = vector.broadcast %cst_69 : f32 to vector<16x16xf32>
    %c8 = arith.constant 8 : index
    %255 = memref.load %arg5[%c8] : memref<72xf32, #tpu.memory_space<smem>>
    %256 = vector.extract_strided_slice %6 {offsets = [0, 0, 0], sizes = [1, 16, 16], strides = [1, 1, 1]} : vector<4x16x16xf32> to vector<1x16x16xf32>
    %257 = vector.shape_cast %256 : vector<1x16x16xf32> to vector<16x16xf32>
    %258 = vector.broadcast %255 : f32 to vector<16x16xf32>
    %259 = arith.mulf %258, %257 : vector<16x16xf32>
    %260 = arith.addf %254, %259 : vector<16x16xf32>
    %c17 = arith.constant 17 : index
    %261 = memref.load %arg5[%c17] : memref<72xf32, #tpu.memory_space<smem>>
    %262 = vector.extract_strided_slice %6 {offsets = [1, 0, 0], sizes = [1, 16, 16], strides = [1, 1, 1]} : vector<4x16x16xf32> to vector<1x16x16xf32>
    %263 = vector.shape_cast %262 : vector<1x16x16xf32> to vector<16x16xf32>
    %264 = vector.broadcast %261 : f32 to vector<16x16xf32>
    %265 = arith.mulf %264, %263 : vector<16x16xf32>
    %266 = arith.addf %260, %265 : vector<16x16xf32>
    %c26 = arith.constant 26 : index
    %267 = memref.load %arg5[%c26] : memref<72xf32, #tpu.memory_space<smem>>
    %268 = vector.extract_strided_slice %6 {offsets = [2, 0, 0], sizes = [1, 16, 16], strides = [1, 1, 1]} : vector<4x16x16xf32> to vector<1x16x16xf32>
    %269 = vector.shape_cast %268 : vector<1x16x16xf32> to vector<16x16xf32>
    %270 = vector.broadcast %267 : f32 to vector<16x16xf32>
    %271 = arith.mulf %270, %269 : vector<16x16xf32>
    %272 = arith.addf %266, %271 : vector<16x16xf32>
    %c35 = arith.constant 35 : index
    %273 = memref.load %arg5[%c35] : memref<72xf32, #tpu.memory_space<smem>>
    %274 = vector.extract_strided_slice %6 {offsets = [3, 0, 0], sizes = [1, 16, 16], strides = [1, 1, 1]} : vector<4x16x16xf32> to vector<1x16x16xf32>
    %275 = vector.shape_cast %274 : vector<1x16x16xf32> to vector<16x16xf32>
    %276 = vector.broadcast %273 : f32 to vector<16x16xf32>
    %277 = arith.mulf %276, %275 : vector<16x16xf32>
    %278 = arith.addf %272, %277 : vector<16x16xf32>
    %cst_70 = arith.constant dense<0.000000e+00> : vector<32x16xf32>
    %279 = tpu.matmul %193, %278, %cst_70 {dimension_numbers = #tpu.dot_dimension_numbers<[1], [0], [0], [1], [0, 0, 1, 1], [], []>} : vector<32x16xf32>, vector<16x16xf32>, vector<32x16xf32> -> vector<32x16xf32>
    %c2_71 = arith.constant 2 : index
    %c0_72 = arith.constant 0 : index
    %c0_73 = arith.constant 0 : index
    %280 = vector.load %arg4[%c2_71, %c0_72, %c0_73] : memref<3x16x32xf32, #tpu.memory_space<vmem>>, vector<1x16x32xf32>
    %281 = vector.shape_cast %280 : vector<1x16x32xf32> to vector<16x32xf32>
    %cst_74 = arith.constant dense<0.000000e+00> : vector<32x32xf32>
    %282 = tpu.matmul %279, %281, %cst_74 {dimension_numbers = #tpu.dot_dimension_numbers<[1], [0], [0], [1], [0, 0, 1, 1], [], []>} : vector<32x16xf32>, vector<16x32xf32>, vector<32x32xf32> -> vector<32x32xf32>
    %283 = arith.addf %253, %282 : vector<32x32xf32>
    %c0_75 = arith.constant 0 : index
    %284 = memref.load %arg6[%c0_75] : memref<2xf32, #tpu.memory_space<smem>>
    %285 = vector.broadcast %284 : f32 to vector<32x32xf32>
    %286 = arith.addf %283, %285 : vector<32x32xf32>
    %287 = vector.shape_cast %286 : vector<32x32xf32> to vector<1x32x32xf32>
    %cst_76 = arith.constant dense<0.000000e+00> : vector<1xf32>
    %288 = vector.multi_reduction <add>, %287, %cst_76 [1, 2] : vector<1x32x32xf32> to vector<1xf32>
    %289 = vector.shape_cast %288 : vector<1xf32> to vector<1x1x1xf32>
    %290 = vector.extract %289[0, 0, 0] : f32 from vector<1x1x1xf32>
    %cst_77 = arith.constant 9.765625E-4 : f32
    %291 = arith.mulf %290, %cst_77 : f32
    %292 = vector.broadcast %291 : f32 to vector<32x32xf32>
    %293 = arith.subf %286, %292 : vector<32x32xf32>
    %294 = arith.mulf %293, %293 : vector<32x32xf32>
    %295 = vector.shape_cast %294 : vector<32x32xf32> to vector<1x32x32xf32>
    %cst_78 = arith.constant dense<0.000000e+00> : vector<1xf32>
    %296 = vector.multi_reduction <add>, %295, %cst_78 [1, 2] : vector<1x32x32xf32> to vector<1xf32>
    %297 = vector.shape_cast %296 : vector<1xf32> to vector<1x1x1xf32>
    %298 = vector.extract %297[0, 0, 0] : f32 from vector<1x1x1xf32>
    %cst_79 = arith.constant 9.765625E-4 : f32
    %299 = arith.mulf %298, %cst_79 : f32
    %cst_80 = arith.constant 9.99999974E-6 : f32
    %300 = arith.addf %299, %cst_80 : f32
    %301 = math.rsqrt %300 : f32
    %302 = vector.broadcast %301 : f32 to vector<32x32xf32>
    %303 = arith.mulf %293, %302 : vector<32x32xf32>
    %cst_81 = arith.constant 0.000000e+00 : f32
    %304 = vector.broadcast %cst_81 : f32 to vector<32x32xf32>
    %305 = arith.cmpf oge, %303, %304 : vector<32x32xf32>
    %cst_82 = arith.constant 1.000000e-01 : f32
    %306 = vector.broadcast %cst_82 : f32 to vector<32x32xf32>
    %307 = arith.mulf %306, %303 : vector<32x32xf32>
    %308 = arith.select %305, %303, %307 : vector<32x32xi1>, vector<32x32xf32>
    %c0_83 = arith.constant 0 : index
    %c2_84 = arith.constant 2 : index
    %c0_85 = arith.constant 0 : index
    %c0_86 = arith.constant 0 : index
    %309 = vector.load %arg7[%c0_83, %c2_84, %c0_85, %c0_86] : memref<1x4x32x32xf32, #tpu.memory_space<vmem>>, vector<1x1x32x32xf32>
    %310 = vector.shape_cast %309 : vector<1x1x32x32xf32> to vector<32x32xf32>
    %311 = vector.shape_cast %308 : vector<32x32xf32> to vector<1x1x32x32xf32>
    tpu.vector_store %arg7[%c0_83, %c2_84, %c0_85, %c0_86], %311 {strides = array<i32>} : memref<1x4x32x32xf32, #tpu.memory_space<vmem>>, vector<1x1x32x32xf32>,
    %cst_87 = arith.constant 0.000000e+00 : f32
    %312 = vector.broadcast %cst_87 : f32 to vector<32x32xf32>
    %c0_88 = arith.constant 0 : index
    %c0_89 = arith.constant 0 : index
    %c0_90 = arith.constant 0 : index
    %313 = vector.load %arg3[%c0_88, %c0_89, %c0_90] : memref<3x32x16xf32, #tpu.memory_space<vmem>>, vector<1x32x16xf32>
    %314 = vector.shape_cast %313 : vector<1x32x16xf32> to vector<32x16xf32>
    %cst_91 = arith.constant 0.000000e+00 : f32
    %315 = vector.broadcast %cst_91 : f32 to vector<16x16xf32>
    %c36 = arith.constant 36 : index
    %316 = memref.load %arg5[%c36] : memref<72xf32, #tpu.memory_space<smem>>
    %317 = vector.extract_strided_slice %6 {offsets = [0, 0, 0], sizes = [1, 16, 16], strides = [1, 1, 1]} : vector<4x16x16xf32> to vector<1x16x16xf32>
    %318 = vector.shape_cast %317 : vector<1x16x16xf32> to vector<16x16xf32>
    %319 = vector.broadcast %316 : f32 to vector<16x16xf32>
    %320 = arith.mulf %319, %318 : vector<16x16xf32>
    %321 = arith.addf %315, %320 : vector<16x16xf32>
    %c45 = arith.constant 45 : index
    %322 = memref.load %arg5[%c45] : memref<72xf32, #tpu.memory_space<smem>>
    %323 = vector.extract_strided_slice %6 {offsets = [1, 0, 0], sizes = [1, 16, 16], strides = [1, 1, 1]} : vector<4x16x16xf32> to vector<1x16x16xf32>
    %324 = vector.shape_cast %323 : vector<1x16x16xf32> to vector<16x16xf32>
    %325 = vector.broadcast %322 : f32 to vector<16x16xf32>
    %326 = arith.mulf %325, %324 : vector<16x16xf32>
    %327 = arith.addf %321, %326 : vector<16x16xf32>
    %c54 = arith.constant 54 : index
    %328 = memref.load %arg5[%c54] : memref<72xf32, #tpu.memory_space<smem>>
    %329 = vector.extract_strided_slice %6 {offsets = [2, 0, 0], sizes = [1, 16, 16], strides = [1, 1, 1]} : vector<4x16x16xf32> to vector<1x16x16xf32>
    %330 = vector.shape_cast %329 : vector<1x16x16xf32> to vector<16x16xf32>
    %331 = vector.broadcast %328 : f32 to vector<16x16xf32>
    %332 = arith.mulf %331, %330 : vector<16x16xf32>
    %333 = arith.addf %327, %332 : vector<16x16xf32>
    %c63 = arith.constant 63 : index
    %334 = memref.load %arg5[%c63] : memref<72xf32, #tpu.memory_space<smem>>
    %335 = vector.extract_strided_slice %6 {offsets = [3, 0, 0], sizes = [1, 16, 16], strides = [1, 1, 1]} : vector<4x16x16xf32> to vector<1x16x16xf32>
    %336 = vector.shape_cast %335 : vector<1x16x16xf32> to vector<16x16xf32>
    %337 = vector.broadcast %334 : f32 to vector<16x16xf32>
    %338 = arith.mulf %337, %336 : vector<16x16xf32>
    %339 = arith.addf %333, %338 : vector<16x16xf32>
    %cst_92 = arith.constant dense<0.000000e+00> : vector<32x16xf32>
    %340 = tpu.matmul %314, %339, %cst_92 {dimension_numbers = #tpu.dot_dimension_numbers<[1], [0], [0], [1], [0, 0, 1, 1], [], []>} : vector<32x16xf32>, vector<16x16xf32>, vector<32x16xf32> -> vector<32x16xf32>
    %c0_93 = arith.constant 0 : index
    %c0_94 = arith.constant 0 : index
    %c0_95 = arith.constant 0 : index
    %341 = vector.load %arg4[%c0_93, %c0_94, %c0_95] : memref<3x16x32xf32, #tpu.memory_space<vmem>>, vector<1x16x32xf32>
    %342 = vector.shape_cast %341 : vector<1x16x32xf32> to vector<16x32xf32>
    %cst_96 = arith.constant dense<0.000000e+00> : vector<32x32xf32>
    %343 = tpu.matmul %340, %342, %cst_96 {dimension_numbers = #tpu.dot_dimension_numbers<[1], [0], [0], [1], [0, 0, 1, 1], [], []>} : vector<32x16xf32>, vector<16x32xf32>, vector<32x32xf32> -> vector<32x32xf32>
    %344 = arith.addf %312, %343 : vector<32x32xf32>
    %cst_97 = arith.constant 0.000000e+00 : f32
    %345 = vector.broadcast %cst_97 : f32 to vector<16x16xf32>
    %c37 = arith.constant 37 : index
    %346 = memref.load %arg5[%c37] : memref<72xf32, #tpu.memory_space<smem>>
    %347 = vector.extract_strided_slice %6 {offsets = [0, 0, 0], sizes = [1, 16, 16], strides = [1, 1, 1]} : vector<4x16x16xf32> to vector<1x16x16xf32>
    %348 = vector.shape_cast %347 : vector<1x16x16xf32> to vector<16x16xf32>
    %349 = vector.broadcast %346 : f32 to vector<16x16xf32>
    %350 = arith.mulf %349, %348 : vector<16x16xf32>
    %351 = arith.addf %345, %350 : vector<16x16xf32>
    %c46 = arith.constant 46 : index
    %352 = memref.load %arg5[%c46] : memref<72xf32, #tpu.memory_space<smem>>
    %353 = vector.extract_strided_slice %6 {offsets = [1, 0, 0], sizes = [1, 16, 16], strides = [1, 1, 1]} : vector<4x16x16xf32> to vector<1x16x16xf32>
    %354 = vector.shape_cast %353 : vector<1x16x16xf32> to vector<16x16xf32>
    %355 = vector.broadcast %352 : f32 to vector<16x16xf32>
    %356 = arith.mulf %355, %354 : vector<16x16xf32>
    %357 = arith.addf %351, %356 : vector<16x16xf32>
    %c55 = arith.constant 55 : index
    %358 = memref.load %arg5[%c55] : memref<72xf32, #tpu.memory_space<smem>>
    %359 = vector.extract_strided_slice %6 {offsets = [2, 0, 0], sizes = [1, 16, 16], strides = [1, 1, 1]} : vector<4x16x16xf32> to vector<1x16x16xf32>
    %360 = vector.shape_cast %359 : vector<1x16x16xf32> to vector<16x16xf32>
    %361 = vector.broadcast %358 : f32 to vector<16x16xf32>
    %362 = arith.mulf %361, %360 : vector<16x16xf32>
    %363 = arith.addf %357, %362 : vector<16x16xf32>
    %c64 = arith.constant 64 : index
    %364 = memref.load %arg5[%c64] : memref<72xf32, #tpu.memory_space<smem>>
    %365 = vector.extract_strided_slice %6 {offsets = [3, 0, 0], sizes = [1, 16, 16], strides = [1, 1, 1]} : vector<4x16x16xf32> to vector<1x16x16xf32>
    %366 = vector.shape_cast %365 : vector<1x16x16xf32> to vector<16x16xf32>
    %367 = vector.broadcast %364 : f32 to vector<16x16xf32>
    %368 = arith.mulf %367, %366 : vector<16x16xf32>
    %369 = arith.addf %363, %368 : vector<16x16xf32>
    %cst_98 = arith.constant dense<0.000000e+00> : vector<32x16xf32>
    %370 = tpu.matmul %314, %369, %cst_98 {dimension_numbers = #tpu.dot_dimension_numbers<[1], [0], [0], [1], [0, 0, 1, 1], [], []>} : vector<32x16xf32>, vector<16x16xf32>, vector<32x16xf32> -> vector<32x16xf32>
    %c1_99 = arith.constant 1 : index
    %c0_100 = arith.constant 0 : index
    %c0_101 = arith.constant 0 : index
    %371 = vector.load %arg4[%c1_99, %c0_100, %c0_101] : memref<3x16x32xf32, #tpu.memory_space<vmem>>, vector<1x16x32xf32>
    %372 = vector.shape_cast %371 : vector<1x16x32xf32> to vector<16x32xf32>
    %cst_102 = arith.constant dense<0.000000e+00> : vector<32x32xf32>
    %373 = tpu.matmul %370, %372, %cst_102 {dimension_numbers = #tpu.dot_dimension_numbers<[1], [0], [0], [1], [0, 0, 1, 1], [], []>} : vector<32x16xf32>, vector<16x32xf32>, vector<32x32xf32> -> vector<32x32xf32>
    %374 = arith.addf %344, %373 : vector<32x32xf32>
    %cst_103 = arith.constant 0.000000e+00 : f32
    %375 = vector.broadcast %cst_103 : f32 to vector<16x16xf32>
    %c38 = arith.constant 38 : index
    %376 = memref.load %arg5[%c38] : memref<72xf32, #tpu.memory_space<smem>>
    %377 = vector.extract_strided_slice %6 {offsets = [0, 0, 0], sizes = [1, 16, 16], strides = [1, 1, 1]} : vector<4x16x16xf32> to vector<1x16x16xf32>
    %378 = vector.shape_cast %377 : vector<1x16x16xf32> to vector<16x16xf32>
    %379 = vector.broadcast %376 : f32 to vector<16x16xf32>
    %380 = arith.mulf %379, %378 : vector<16x16xf32>
    %381 = arith.addf %375, %380 : vector<16x16xf32>
    %c47 = arith.constant 47 : index
    %382 = memref.load %arg5[%c47] : memref<72xf32, #tpu.memory_space<smem>>
    %383 = vector.extract_strided_slice %6 {offsets = [1, 0, 0], sizes = [1, 16, 16], strides = [1, 1, 1]} : vector<4x16x16xf32> to vector<1x16x16xf32>
    %384 = vector.shape_cast %383 : vector<1x16x16xf32> to vector<16x16xf32>
    %385 = vector.broadcast %382 : f32 to vector<16x16xf32>
    %386 = arith.mulf %385, %384 : vector<16x16xf32>
    %387 = arith.addf %381, %386 : vector<16x16xf32>
    %c56 = arith.constant 56 : index
    %388 = memref.load %arg5[%c56] : memref<72xf32, #tpu.memory_space<smem>>
    %389 = vector.extract_strided_slice %6 {offsets = [2, 0, 0], sizes = [1, 16, 16], strides = [1, 1, 1]} : vector<4x16x16xf32> to vector<1x16x16xf32>
    %390 = vector.shape_cast %389 : vector<1x16x16xf32> to vector<16x16xf32>
    %391 = vector.broadcast %388 : f32 to vector<16x16xf32>
    %392 = arith.mulf %391, %390 : vector<16x16xf32>
    %393 = arith.addf %387, %392 : vector<16x16xf32>
    %c65 = arith.constant 65 : index
    %394 = memref.load %arg5[%c65] : memref<72xf32, #tpu.memory_space<smem>>
    %395 = vector.extract_strided_slice %6 {offsets = [3, 0, 0], sizes = [1, 16, 16], strides = [1, 1, 1]} : vector<4x16x16xf32> to vector<1x16x16xf32>
    %396 = vector.shape_cast %395 : vector<1x16x16xf32> to vector<16x16xf32>
    %397 = vector.broadcast %394 : f32 to vector<16x16xf32>
    %398 = arith.mulf %397, %396 : vector<16x16xf32>
    %399 = arith.addf %393, %398 : vector<16x16xf32>
    %cst_104 = arith.constant dense<0.000000e+00> : vector<32x16xf32>
    %400 = tpu.matmul %314, %399, %cst_104 {dimension_numbers = #tpu.dot_dimension_numbers<[1], [0], [0], [1], [0, 0, 1, 1], [], []>} : vector<32x16xf32>, vector<16x16xf32>, vector<32x16xf32> -> vector<32x16xf32>
    %c2_105 = arith.constant 2 : index
    %c0_106 = arith.constant 0 : index
    %c0_107 = arith.constant 0 : index
    %401 = vector.load %arg4[%c2_105, %c0_106, %c0_107] : memref<3x16x32xf32, #tpu.memory_space<vmem>>, vector<1x16x32xf32>
    %402 = vector.shape_cast %401 : vector<1x16x32xf32> to vector<16x32xf32>
    %cst_108 = arith.constant dense<0.000000e+00> : vector<32x32xf32>
    %403 = tpu.matmul %400, %402, %cst_108 {dimension_numbers = #tpu.dot_dimension_numbers<[1], [0], [0], [1], [0, 0, 1, 1], [], []>} : vector<32x16xf32>, vector<16x32xf32>, vector<32x32xf32> -> vector<32x32xf32>
    %404 = arith.addf %374, %403 : vector<32x32xf32>
    %c1_109 = arith.constant 1 : index
    %c0_110 = arith.constant 0 : index
    %c0_111 = arith.constant 0 : index
    %405 = vector.load %arg3[%c1_109, %c0_110, %c0_111] : memref<3x32x16xf32, #tpu.memory_space<vmem>>, vector<1x32x16xf32>
    %406 = vector.shape_cast %405 : vector<1x32x16xf32> to vector<32x16xf32>
    %cst_112 = arith.constant 0.000000e+00 : f32
    %407 = vector.broadcast %cst_112 : f32 to vector<16x16xf32>
    %c39 = arith.constant 39 : index
    %408 = memref.load %arg5[%c39] : memref<72xf32, #tpu.memory_space<smem>>
    %409 = vector.extract_strided_slice %6 {offsets = [0, 0, 0], sizes = [1, 16, 16], strides = [1, 1, 1]} : vector<4x16x16xf32> to vector<1x16x16xf32>
    %410 = vector.shape_cast %409 : vector<1x16x16xf32> to vector<16x16xf32>
    %411 = vector.broadcast %408 : f32 to vector<16x16xf32>
    %412 = arith.mulf %411, %410 : vector<16x16xf32>
    %413 = arith.addf %407, %412 : vector<16x16xf32>
    %c48 = arith.constant 48 : index
    %414 = memref.load %arg5[%c48] : memref<72xf32, #tpu.memory_space<smem>>
    %415 = vector.extract_strided_slice %6 {offsets = [1, 0, 0], sizes = [1, 16, 16], strides = [1, 1, 1]} : vector<4x16x16xf32> to vector<1x16x16xf32>
    %416 = vector.shape_cast %415 : vector<1x16x16xf32> to vector<16x16xf32>
    %417 = vector.broadcast %414 : f32 to vector<16x16xf32>
    %418 = arith.mulf %417, %416 : vector<16x16xf32>
    %419 = arith.addf %413, %418 : vector<16x16xf32>
    %c57 = arith.constant 57 : index
    %420 = memref.load %arg5[%c57] : memref<72xf32, #tpu.memory_space<smem>>
    %421 = vector.extract_strided_slice %6 {offsets = [2, 0, 0], sizes = [1, 16, 16], strides = [1, 1, 1]} : vector<4x16x16xf32> to vector<1x16x16xf32>
    %422 = vector.shape_cast %421 : vector<1x16x16xf32> to vector<16x16xf32>
    %423 = vector.broadcast %420 : f32 to vector<16x16xf32>
    %424 = arith.mulf %423, %422 : vector<16x16xf32>
    %425 = arith.addf %419, %424 : vector<16x16xf32>
    %c66 = arith.constant 66 : index
    %426 = memref.load %arg5[%c66] : memref<72xf32, #tpu.memory_space<smem>>
    %427 = vector.extract_strided_slice %6 {offsets = [3, 0, 0], sizes = [1, 16, 16], strides = [1, 1, 1]} : vector<4x16x16xf32> to vector<1x16x16xf32>
    %428 = vector.shape_cast %427 : vector<1x16x16xf32> to vector<16x16xf32>
    %429 = vector.broadcast %426 : f32 to vector<16x16xf32>
    %430 = arith.mulf %429, %428 : vector<16x16xf32>
    %431 = arith.addf %425, %430 : vector<16x16xf32>
    %cst_113 = arith.constant dense<0.000000e+00> : vector<32x16xf32>
    %432 = tpu.matmul %406, %431, %cst_113 {dimension_numbers = #tpu.dot_dimension_numbers<[1], [0], [0], [1], [0, 0, 1, 1], [], []>} : vector<32x16xf32>, vector<16x16xf32>, vector<32x16xf32> -> vector<32x16xf32>
    %c0_114 = arith.constant 0 : index
    %c0_115 = arith.constant 0 : index
    %c0_116 = arith.constant 0 : index
    %433 = vector.load %arg4[%c0_114, %c0_115, %c0_116] : memref<3x16x32xf32, #tpu.memory_space<vmem>>, vector<1x16x32xf32>
    %434 = vector.shape_cast %433 : vector<1x16x32xf32> to vector<16x32xf32>
    %cst_117 = arith.constant dense<0.000000e+00> : vector<32x32xf32>
    %435 = tpu.matmul %432, %434, %cst_117 {dimension_numbers = #tpu.dot_dimension_numbers<[1], [0], [0], [1], [0, 0, 1, 1], [], []>} : vector<32x16xf32>, vector<16x32xf32>, vector<32x32xf32> -> vector<32x32xf32>
    %436 = arith.addf %404, %435 : vector<32x32xf32>
    %cst_118 = arith.constant 0.000000e+00 : f32
    %437 = vector.broadcast %cst_118 : f32 to vector<16x16xf32>
    %c40 = arith.constant 40 : index
    %438 = memref.load %arg5[%c40] : memref<72xf32, #tpu.memory_space<smem>>
    %439 = vector.extract_strided_slice %6 {offsets = [0, 0, 0], sizes = [1, 16, 16], strides = [1, 1, 1]} : vector<4x16x16xf32> to vector<1x16x16xf32>
    %440 = vector.shape_cast %439 : vector<1x16x16xf32> to vector<16x16xf32>
    %441 = vector.broadcast %438 : f32 to vector<16x16xf32>
    %442 = arith.mulf %441, %440 : vector<16x16xf32>
    %443 = arith.addf %437, %442 : vector<16x16xf32>
    %c49 = arith.constant 49 : index
    %444 = memref.load %arg5[%c49] : memref<72xf32, #tpu.memory_space<smem>>
    %445 = vector.extract_strided_slice %6 {offsets = [1, 0, 0], sizes = [1, 16, 16], strides = [1, 1, 1]} : vector<4x16x16xf32> to vector<1x16x16xf32>
    %446 = vector.shape_cast %445 : vector<1x16x16xf32> to vector<16x16xf32>
    %447 = vector.broadcast %444 : f32 to vector<16x16xf32>
    %448 = arith.mulf %447, %446 : vector<16x16xf32>
    %449 = arith.addf %443, %448 : vector<16x16xf32>
    %c58 = arith.constant 58 : index
    %450 = memref.load %arg5[%c58] : memref<72xf32, #tpu.memory_space<smem>>
    %451 = vector.extract_strided_slice %6 {offsets = [2, 0, 0], sizes = [1, 16, 16], strides = [1, 1, 1]} : vector<4x16x16xf32> to vector<1x16x16xf32>
    %452 = vector.shape_cast %451 : vector<1x16x16xf32> to vector<16x16xf32>
    %453 = vector.broadcast %450 : f32 to vector<16x16xf32>
    %454 = arith.mulf %453, %452 : vector<16x16xf32>
    %455 = arith.addf %449, %454 : vector<16x16xf32>
    %c67 = arith.constant 67 : index
    %456 = memref.load %arg5[%c67] : memref<72xf32, #tpu.memory_space<smem>>
    %457 = vector.extract_strided_slice %6 {offsets = [3, 0, 0], sizes = [1, 16, 16], strides = [1, 1, 1]} : vector<4x16x16xf32> to vector<1x16x16xf32>
    %458 = vector.shape_cast %457 : vector<1x16x16xf32> to vector<16x16xf32>
    %459 = vector.broadcast %456 : f32 to vector<16x16xf32>
    %460 = arith.mulf %459, %458 : vector<16x16xf32>
    %461 = arith.addf %455, %460 : vector<16x16xf32>
    %cst_119 = arith.constant dense<0.000000e+00> : vector<32x16xf32>
    %462 = tpu.matmul %406, %461, %cst_119 {dimension_numbers = #tpu.dot_dimension_numbers<[1], [0], [0], [1], [0, 0, 1, 1], [], []>} : vector<32x16xf32>, vector<16x16xf32>, vector<32x16xf32> -> vector<32x16xf32>
    %c1_120 = arith.constant 1 : index
    %c0_121 = arith.constant 0 : index
    %c0_122 = arith.constant 0 : index
    %463 = vector.load %arg4[%c1_120, %c0_121, %c0_122] : memref<3x16x32xf32, #tpu.memory_space<vmem>>, vector<1x16x32xf32>
    %464 = vector.shape_cast %463 : vector<1x16x32xf32> to vector<16x32xf32>
    %cst_123 = arith.constant dense<0.000000e+00> : vector<32x32xf32>
    %465 = tpu.matmul %462, %464, %cst_123 {dimension_numbers = #tpu.dot_dimension_numbers<[1], [0], [0], [1], [0, 0, 1, 1], [], []>} : vector<32x16xf32>, vector<16x32xf32>, vector<32x32xf32> -> vector<32x32xf32>
    %466 = arith.addf %436, %465 : vector<32x32xf32>
    %cst_124 = arith.constant 0.000000e+00 : f32
    %467 = vector.broadcast %cst_124 : f32 to vector<16x16xf32>
    %c41 = arith.constant 41 : index
    %468 = memref.load %arg5[%c41] : memref<72xf32, #tpu.memory_space<smem>>
    %469 = vector.extract_strided_slice %6 {offsets = [0, 0, 0], sizes = [1, 16, 16], strides = [1, 1, 1]} : vector<4x16x16xf32> to vector<1x16x16xf32>
    %470 = vector.shape_cast %469 : vector<1x16x16xf32> to vector<16x16xf32>
    %471 = vector.broadcast %468 : f32 to vector<16x16xf32>
    %472 = arith.mulf %471, %470 : vector<16x16xf32>
    %473 = arith.addf %467, %472 : vector<16x16xf32>
    %c50 = arith.constant 50 : index
    %474 = memref.load %arg5[%c50] : memref<72xf32, #tpu.memory_space<smem>>
    %475 = vector.extract_strided_slice %6 {offsets = [1, 0, 0], sizes = [1, 16, 16], strides = [1, 1, 1]} : vector<4x16x16xf32> to vector<1x16x16xf32>
    %476 = vector.shape_cast %475 : vector<1x16x16xf32> to vector<16x16xf32>
    %477 = vector.broadcast %474 : f32 to vector<16x16xf32>
    %478 = arith.mulf %477, %476 : vector<16x16xf32>
    %479 = arith.addf %473, %478 : vector<16x16xf32>
    %c59 = arith.constant 59 : index
    %480 = memref.load %arg5[%c59] : memref<72xf32, #tpu.memory_space<smem>>
    %481 = vector.extract_strided_slice %6 {offsets = [2, 0, 0], sizes = [1, 16, 16], strides = [1, 1, 1]} : vector<4x16x16xf32> to vector<1x16x16xf32>
    %482 = vector.shape_cast %481 : vector<1x16x16xf32> to vector<16x16xf32>
    %483 = vector.broadcast %480 : f32 to vector<16x16xf32>
    %484 = arith.mulf %483, %482 : vector<16x16xf32>
    %485 = arith.addf %479, %484 : vector<16x16xf32>
    %c68 = arith.constant 68 : index
    %486 = memref.load %arg5[%c68] : memref<72xf32, #tpu.memory_space<smem>>
    %487 = vector.extract_strided_slice %6 {offsets = [3, 0, 0], sizes = [1, 16, 16], strides = [1, 1, 1]} : vector<4x16x16xf32> to vector<1x16x16xf32>
    %488 = vector.shape_cast %487 : vector<1x16x16xf32> to vector<16x16xf32>
    %489 = vector.broadcast %486 : f32 to vector<16x16xf32>
    %490 = arith.mulf %489, %488 : vector<16x16xf32>
    %491 = arith.addf %485, %490 : vector<16x16xf32>
    %cst_125 = arith.constant dense<0.000000e+00> : vector<32x16xf32>
    %492 = tpu.matmul %406, %491, %cst_125 {dimension_numbers = #tpu.dot_dimension_numbers<[1], [0], [0], [1], [0, 0, 1, 1], [], []>} : vector<32x16xf32>, vector<16x16xf32>, vector<32x16xf32> -> vector<32x16xf32>
    %c2_126 = arith.constant 2 : index
    %c0_127 = arith.constant 0 : index
    %c0_128 = arith.constant 0 : index
    %493 = vector.load %arg4[%c2_126, %c0_127, %c0_128] : memref<3x16x32xf32, #tpu.memory_space<vmem>>, vector<1x16x32xf32>
    %494 = vector.shape_cast %493 : vector<1x16x32xf32> to vector<16x32xf32>
    %cst_129 = arith.constant dense<0.000000e+00> : vector<32x32xf32>
    %495 = tpu.matmul %492, %494, %cst_129 {dimension_numbers = #tpu.dot_dimension_numbers<[1], [0], [0], [1], [0, 0, 1, 1], [], []>} : vector<32x16xf32>, vector<16x32xf32>, vector<32x32xf32> -> vector<32x32xf32>
    %496 = arith.addf %466, %495 : vector<32x32xf32>
    %c2_130 = arith.constant 2 : index
    %c0_131 = arith.constant 0 : index
    %c0_132 = arith.constant 0 : index
    %497 = vector.load %arg3[%c2_130, %c0_131, %c0_132] : memref<3x32x16xf32, #tpu.memory_space<vmem>>, vector<1x32x16xf32>
    %498 = vector.shape_cast %497 : vector<1x32x16xf32> to vector<32x16xf32>
    %cst_133 = arith.constant 0.000000e+00 : f32
    %499 = vector.broadcast %cst_133 : f32 to vector<16x16xf32>
    %c42 = arith.constant 42 : index
    %500 = memref.load %arg5[%c42] : memref<72xf32, #tpu.memory_space<smem>>
    %501 = vector.extract_strided_slice %6 {offsets = [0, 0, 0], sizes = [1, 16, 16], strides = [1, 1, 1]} : vector<4x16x16xf32> to vector<1x16x16xf32>
    %502 = vector.shape_cast %501 : vector<1x16x16xf32> to vector<16x16xf32>
    %503 = vector.broadcast %500 : f32 to vector<16x16xf32>
    %504 = arith.mulf %503, %502 : vector<16x16xf32>
    %505 = arith.addf %499, %504 : vector<16x16xf32>
    %c51 = arith.constant 51 : index
    %506 = memref.load %arg5[%c51] : memref<72xf32, #tpu.memory_space<smem>>
    %507 = vector.extract_strided_slice %6 {offsets = [1, 0, 0], sizes = [1, 16, 16], strides = [1, 1, 1]} : vector<4x16x16xf32> to vector<1x16x16xf32>
    %508 = vector.shape_cast %507 : vector<1x16x16xf32> to vector<16x16xf32>
    %509 = vector.broadcast %506 : f32 to vector<16x16xf32>
    %510 = arith.mulf %509, %508 : vector<16x16xf32>
    %511 = arith.addf %505, %510 : vector<16x16xf32>
    %c60 = arith.constant 60 : index
    %512 = memref.load %arg5[%c60] : memref<72xf32, #tpu.memory_space<smem>>
    %513 = vector.extract_strided_slice %6 {offsets = [2, 0, 0], sizes = [1, 16, 16], strides = [1, 1, 1]} : vector<4x16x16xf32> to vector<1x16x16xf32>
    %514 = vector.shape_cast %513 : vector<1x16x16xf32> to vector<16x16xf32>
    %515 = vector.broadcast %512 : f32 to vector<16x16xf32>
    %516 = arith.mulf %515, %514 : vector<16x16xf32>
    %517 = arith.addf %511, %516 : vector<16x16xf32>
    %c69 = arith.constant 69 : index
    %518 = memref.load %arg5[%c69] : memref<72xf32, #tpu.memory_space<smem>>
    %519 = vector.extract_strided_slice %6 {offsets = [3, 0, 0], sizes = [1, 16, 16], strides = [1, 1, 1]} : vector<4x16x16xf32> to vector<1x16x16xf32>
    %520 = vector.shape_cast %519 : vector<1x16x16xf32> to vector<16x16xf32>
    %521 = vector.broadcast %518 : f32 to vector<16x16xf32>
    %522 = arith.mulf %521, %520 : vector<16x16xf32>
    %523 = arith.addf %517, %522 : vector<16x16xf32>
    %cst_134 = arith.constant dense<0.000000e+00> : vector<32x16xf32>
    %524 = tpu.matmul %498, %523, %cst_134 {dimension_numbers = #tpu.dot_dimension_numbers<[1], [0], [0], [1], [0, 0, 1, 1], [], []>} : vector<32x16xf32>, vector<16x16xf32>, vector<32x16xf32> -> vector<32x16xf32>
    %c0_135 = arith.constant 0 : index
    %c0_136 = arith.constant 0 : index
    %c0_137 = arith.constant 0 : index
    %525 = vector.load %arg4[%c0_135, %c0_136, %c0_137] : memref<3x16x32xf32, #tpu.memory_space<vmem>>, vector<1x16x32xf32>
    %526 = vector.shape_cast %525 : vector<1x16x32xf32> to vector<16x32xf32>
    %cst_138 = arith.constant dense<0.000000e+00> : vector<32x32xf32>
    %527 = tpu.matmul %524, %526, %cst_138 {dimension_numbers = #tpu.dot_dimension_numbers<[1], [0], [0], [1], [0, 0, 1, 1], [], []>} : vector<32x16xf32>, vector<16x32xf32>, vector<32x32xf32> -> vector<32x32xf32>
    %528 = arith.addf %496, %527 : vector<32x32xf32>
    %cst_139 = arith.constant 0.000000e+00 : f32
    %529 = vector.broadcast %cst_139 : f32 to vector<16x16xf32>
    %c43 = arith.constant 43 : index
    %530 = memref.load %arg5[%c43] : memref<72xf32, #tpu.memory_space<smem>>
    %531 = vector.extract_strided_slice %6 {offsets = [0, 0, 0], sizes = [1, 16, 16], strides = [1, 1, 1]} : vector<4x16x16xf32> to vector<1x16x16xf32>
    %532 = vector.shape_cast %531 : vector<1x16x16xf32> to vector<16x16xf32>
    %533 = vector.broadcast %530 : f32 to vector<16x16xf32>
    %534 = arith.mulf %533, %532 : vector<16x16xf32>
    %535 = arith.addf %529, %534 : vector<16x16xf32>
    %c52 = arith.constant 52 : index
    %536 = memref.load %arg5[%c52] : memref<72xf32, #tpu.memory_space<smem>>
    %537 = vector.extract_strided_slice %6 {offsets = [1, 0, 0], sizes = [1, 16, 16], strides = [1, 1, 1]} : vector<4x16x16xf32> to vector<1x16x16xf32>
    %538 = vector.shape_cast %537 : vector<1x16x16xf32> to vector<16x16xf32>
    %539 = vector.broadcast %536 : f32 to vector<16x16xf32>
    %540 = arith.mulf %539, %538 : vector<16x16xf32>
    %541 = arith.addf %535, %540 : vector<16x16xf32>
    %c61 = arith.constant 61 : index
    %542 = memref.load %arg5[%c61] : memref<72xf32, #tpu.memory_space<smem>>
    %543 = vector.extract_strided_slice %6 {offsets = [2, 0, 0], sizes = [1, 16, 16], strides = [1, 1, 1]} : vector<4x16x16xf32> to vector<1x16x16xf32>
    %544 = vector.shape_cast %543 : vector<1x16x16xf32> to vector<16x16xf32>
    %545 = vector.broadcast %542 : f32 to vector<16x16xf32>
    %546 = arith.mulf %545, %544 : vector<16x16xf32>
    %547 = arith.addf %541, %546 : vector<16x16xf32>
    %c70 = arith.constant 70 : index
    %548 = memref.load %arg5[%c70] : memref<72xf32, #tpu.memory_space<smem>>
    %549 = vector.extract_strided_slice %6 {offsets = [3, 0, 0], sizes = [1, 16, 16], strides = [1, 1, 1]} : vector<4x16x16xf32> to vector<1x16x16xf32>
    %550 = vector.shape_cast %549 : vector<1x16x16xf32> to vector<16x16xf32>
    %551 = vector.broadcast %548 : f32 to vector<16x16xf32>
    %552 = arith.mulf %551, %550 : vector<16x16xf32>
    %553 = arith.addf %547, %552 : vector<16x16xf32>
    %cst_140 = arith.constant dense<0.000000e+00> : vector<32x16xf32>
    %554 = tpu.matmul %498, %553, %cst_140 {dimension_numbers = #tpu.dot_dimension_numbers<[1], [0], [0], [1], [0, 0, 1, 1], [], []>} : vector<32x16xf32>, vector<16x16xf32>, vector<32x16xf32> -> vector<32x16xf32>
    %c1_141 = arith.constant 1 : index
    %c0_142 = arith.constant 0 : index
    %c0_143 = arith.constant 0 : index
    %555 = vector.load %arg4[%c1_141, %c0_142, %c0_143] : memref<3x16x32xf32, #tpu.memory_space<vmem>>, vector<1x16x32xf32>
    %556 = vector.shape_cast %555 : vector<1x16x32xf32> to vector<16x32xf32>
    %cst_144 = arith.constant dense<0.000000e+00> : vector<32x32xf32>
    %557 = tpu.matmul %554, %556, %cst_144 {dimension_numbers = #tpu.dot_dimension_numbers<[1], [0], [0], [1], [0, 0, 1, 1], [], []>} : vector<32x16xf32>, vector<16x32xf32>, vector<32x32xf32> -> vector<32x32xf32>
    %558 = arith.addf %528, %557 : vector<32x32xf32>
    %cst_145 = arith.constant 0.000000e+00 : f32
    %559 = vector.broadcast %cst_145 : f32 to vector<16x16xf32>
    %c44 = arith.constant 44 : index
    %560 = memref.load %arg5[%c44] : memref<72xf32, #tpu.memory_space<smem>>
    %561 = vector.extract_strided_slice %6 {offsets = [0, 0, 0], sizes = [1, 16, 16], strides = [1, 1, 1]} : vector<4x16x16xf32> to vector<1x16x16xf32>
    %562 = vector.shape_cast %561 : vector<1x16x16xf32> to vector<16x16xf32>
    %563 = vector.broadcast %560 : f32 to vector<16x16xf32>
    %564 = arith.mulf %563, %562 : vector<16x16xf32>
    %565 = arith.addf %559, %564 : vector<16x16xf32>
    %c53 = arith.constant 53 : index
    %566 = memref.load %arg5[%c53] : memref<72xf32, #tpu.memory_space<smem>>
    %567 = vector.extract_strided_slice %6 {offsets = [1, 0, 0], sizes = [1, 16, 16], strides = [1, 1, 1]} : vector<4x16x16xf32> to vector<1x16x16xf32>
    %568 = vector.shape_cast %567 : vector<1x16x16xf32> to vector<16x16xf32>
    %569 = vector.broadcast %566 : f32 to vector<16x16xf32>
    %570 = arith.mulf %569, %568 : vector<16x16xf32>
    %571 = arith.addf %565, %570 : vector<16x16xf32>
    %c62 = arith.constant 62 : index
    %572 = memref.load %arg5[%c62] : memref<72xf32, #tpu.memory_space<smem>>
    %573 = vector.extract_strided_slice %6 {offsets = [2, 0, 0], sizes = [1, 16, 16], strides = [1, 1, 1]} : vector<4x16x16xf32> to vector<1x16x16xf32>
    %574 = vector.shape_cast %573 : vector<1x16x16xf32> to vector<16x16xf32>
    %575 = vector.broadcast %572 : f32 to vector<16x16xf32>
    %576 = arith.mulf %575, %574 : vector<16x16xf32>
    %577 = arith.addf %571, %576 : vector<16x16xf32>
    %c71 = arith.constant 71 : index
    %578 = memref.load %arg5[%c71] : memref<72xf32, #tpu.memory_space<smem>>
    %579 = vector.extract_strided_slice %6 {offsets = [3, 0, 0], sizes = [1, 16, 16], strides = [1, 1, 1]} : vector<4x16x16xf32> to vector<1x16x16xf32>
    %580 = vector.shape_cast %579 : vector<1x16x16xf32> to vector<16x16xf32>
    %581 = vector.broadcast %578 : f32 to vector<16x16xf32>
    %582 = arith.mulf %581, %580 : vector<16x16xf32>
    %583 = arith.addf %577, %582 : vector<16x16xf32>
    %cst_146 = arith.constant dense<0.000000e+00> : vector<32x16xf32>
    %584 = tpu.matmul %498, %583, %cst_146 {dimension_numbers = #tpu.dot_dimension_numbers<[1], [0], [0], [1], [0, 0, 1, 1], [], []>} : vector<32x16xf32>, vector<16x16xf32>, vector<32x16xf32> -> vector<32x16xf32>
    %c2_147 = arith.constant 2 : index
    %c0_148 = arith.constant 0 : index
    %c0_149 = arith.constant 0 : index
    %585 = vector.load %arg4[%c2_147, %c0_148, %c0_149] : memref<3x16x32xf32, #tpu.memory_space<vmem>>, vector<1x16x32xf32>
    %586 = vector.shape_cast %585 : vector<1x16x32xf32> to vector<16x32xf32>
    %cst_150 = arith.constant dense<0.000000e+00> : vector<32x32xf32>
    %587 = tpu.matmul %584, %586, %cst_150 {dimension_numbers = #tpu.dot_dimension_numbers<[1], [0], [0], [1], [0, 0, 1, 1], [], []>} : vector<32x16xf32>, vector<16x32xf32>, vector<32x32xf32> -> vector<32x32xf32>
    %588 = arith.addf %558, %587 : vector<32x32xf32>
    %c1_151 = arith.constant 1 : index
    %589 = memref.load %arg6[%c1_151] : memref<2xf32, #tpu.memory_space<smem>>
    %590 = vector.broadcast %589 : f32 to vector<32x32xf32>
    %591 = arith.addf %588, %590 : vector<32x32xf32>
    %592 = vector.shape_cast %591 : vector<32x32xf32> to vector<1x32x32xf32>
    %cst_152 = arith.constant dense<0.000000e+00> : vector<1xf32>
    %593 = vector.multi_reduction <add>, %592, %cst_152 [1, 2] : vector<1x32x32xf32> to vector<1xf32>
    %594 = vector.shape_cast %593 : vector<1xf32> to vector<1x1x1xf32>
    %595 = vector.extract %594[0, 0, 0] : f32 from vector<1x1x1xf32>
    %cst_153 = arith.constant 9.765625E-4 : f32
    %596 = arith.mulf %595, %cst_153 : f32
    %597 = vector.broadcast %596 : f32 to vector<32x32xf32>
    %598 = arith.subf %591, %597 : vector<32x32xf32>
    %599 = arith.mulf %598, %598 : vector<32x32xf32>
    %600 = vector.shape_cast %599 : vector<32x32xf32> to vector<1x32x32xf32>
    %cst_154 = arith.constant dense<0.000000e+00> : vector<1xf32>
    %601 = vector.multi_reduction <add>, %600, %cst_154 [1, 2] : vector<1x32x32xf32> to vector<1xf32>
    %602 = vector.shape_cast %601 : vector<1xf32> to vector<1x1x1xf32>
    %603 = vector.extract %602[0, 0, 0] : f32 from vector<1x1x1xf32>
    %cst_155 = arith.constant 9.765625E-4 : f32
    %604 = arith.mulf %603, %cst_155 : f32
    %cst_156 = arith.constant 9.99999974E-6 : f32
    %605 = arith.addf %604, %cst_156 : f32
    %606 = math.rsqrt %605 : f32
    %607 = vector.broadcast %606 : f32 to vector<32x32xf32>
    %608 = arith.mulf %598, %607 : vector<32x32xf32>
    %cst_157 = arith.constant 0.000000e+00 : f32
    %609 = vector.broadcast %cst_157 : f32 to vector<32x32xf32>
    %610 = arith.cmpf oge, %608, %609 : vector<32x32xf32>
    %cst_158 = arith.constant 1.000000e-01 : f32
    %611 = vector.broadcast %cst_158 : f32 to vector<32x32xf32>
    %612 = arith.mulf %611, %608 : vector<32x32xf32>
    %613 = arith.select %610, %608, %612 : vector<32x32xi1>, vector<32x32xf32>
    %c0_159 = arith.constant 0 : index
    %c3_160 = arith.constant 3 : index
    %c0_161 = arith.constant 0 : index
    %c0_162 = arith.constant 0 : index
    %614 = vector.load %arg7[%c0_159, %c3_160, %c0_161, %c0_162] : memref<1x4x32x32xf32, #tpu.memory_space<vmem>>, vector<1x1x32x32xf32>
    %615 = vector.shape_cast %614 : vector<1x1x32x32xf32> to vector<32x32xf32>
    %616 = vector.shape_cast %613 : vector<32x32xf32> to vector<1x1x32x32xf32>
    tpu.vector_store %arg7[%c0_159, %c3_160, %c0_161, %c0_162], %616 {strides = array<i32>} : memref<1x4x32x32xf32, #tpu.memory_space<vmem>>, vector<1x1x32x32xf32>,
    return
  }
  func.func @transform_0(%arg0: i32) -> (i32, i32, i32, i32) {
    %c0_i32 = arith.constant 0 : i32
    %c0_i32_0 = arith.constant 0 : i32
    %c0_i32_1 = arith.constant 0 : i32
    %c0_i32_2 = arith.constant 0 : i32
    return %arg0, %c0_i32, %c0_i32_0, %c0_i32_1 : i32, i32, i32, i32
  }
  func.func @transform_1(%arg0: i32) -> (i32, i32, i32, i32) {
    %c0_i32 = arith.constant 0 : i32
    %c0_i32_0 = arith.constant 0 : i32
    %c0_i32_1 = arith.constant 0 : i32
    %c0_i32_2 = arith.constant 0 : i32
    return %arg0, %c0_i32, %c0_i32_0, %c0_i32_1 : i32, i32, i32, i32
  }
  func.func @transform_2(%arg0: i32) -> (i32, i32, i32) {
    %c0_i32 = arith.constant 0 : i32
    %c0_i32_0 = arith.constant 0 : i32
    %c0_i32_1 = arith.constant 0 : i32
    %c0_i32_2 = arith.constant 0 : i32
    return %c0_i32, %c0_i32_0, %c0_i32_1 : i32, i32, i32
  }
  func.func @transform_3(%arg0: i32) -> (i32, i32, i32) {
    %c0_i32 = arith.constant 0 : i32
    %c0_i32_0 = arith.constant 0 : i32
    %c0_i32_1 = arith.constant 0 : i32
    %c0_i32_2 = arith.constant 0 : i32
    return %c0_i32, %c0_i32_0, %c0_i32_1 : i32, i32, i32
  }
  func.func @transform_4(%arg0: i32) -> i32 {
    %c0_i32 = arith.constant 0 : i32
    %c0_i32_0 = arith.constant 0 : i32
    return %c0_i32 : i32
  }
  func.func @transform_5(%arg0: i32) -> i32 {
    %c0_i32 = arith.constant 0 : i32
    %c0_i32_0 = arith.constant 0 : i32
    return %c0_i32 : i32
  }
  func.func @transform_6(%arg0: i32) -> (i32, i32, i32, i32) {
    %c0_i32 = arith.constant 0 : i32
    %c0_i32_0 = arith.constant 0 : i32
    %c0_i32_1 = arith.constant 0 : i32
    %c0_i32_2 = arith.constant 0 : i32
    return %arg0, %c0_i32, %c0_i32_0, %c0_i32_1 : i32, i32, i32, i32
  }
}

</mosaic_0001>

<bundles_post_ra>
// kernel: tpu_custom_call.1
= control target key start
LH: loop header
LB: loop body
LE: loop exit
PB: predicated region body
PF: predicated region fallthrough
CT: control target
= control target key end

     0   :  { %11 = vsyncpa [#allocation3], 0  ;;  %s6731_s0 = inlined_call_operand.vmem [shape: f32[2,4,16,16], index: 0, kind: input, shape index: {}]   ;;  %s6732_s1 = inlined_call_operand.hbm [shape: f32[2,2,32,32], index: 1, kind: input, shape index: {}]   ;;  %s6733_s2 = inlined_call_operand.vmem [shape: f32[3,32,16], index: 2, kind: input, shape index: {}]   ;;  %s6734_s3 = inlined_call_operand.hbm [shape: f32[3,16,32], index: 3, kind: input, shape index: {}]   ;;  %s6735_s4 = inlined_call_operand.vmem [shape: f32[72], index: 4, kind: input, shape index: {}]   ;;  %s6736_s5 = inlined_call_operand.vmem [shape: f32[2], index: 5, kind: input, shape index: {}]   ;;  %s6737_s6 = inlined_call_operand.hbm [shape: f32[2,4,32,32], index: 6, kind: output, shape index: {}]  }
   0x1   :  { %13 = vsyncpa [#allocation3 + $0x1], 0 }
   0x2   :  { %14 = vsyncpa [#allocation7], 0 }
   0x3   :  { %15 = vsyncpa [#allocation5], 0 }
   0x4   :  { %16 = vsyncpa [#allocation10], 0 }
   0x5   :  { %17 = vsyncpa [#allocation4], 0 }
   0x6   :  { %19 = vsyncpa [#allocation4 + $0x1], 0  ;;  %s5681_s21 = smov 0   ;;  %s5683_s22 = smov 0  }
   0x7   :  { %s5685_s23 = smov 0   ;;  %s5687_s24 = smov 0  }
   0x8 LB: > { %s5702_s25 = sadd.s32 4294967295, %s5635_s24   ;;  %s4515_s26 = sadd.s32 4294967294, %s5635_s24   ;;  %s5635_s24 = sphi %s5687_s24, %s6767_s24   ;;  %s5631_s23 = sphi %s5685_s23, %s6766_s23   ;;  %s5627_s22 = sphi %s5683_s22, %s6765_s22   ;;  %s5623_s21 = sphi %s5681_s21, %s6764_s21  }
   0x9   : > { %p71_p0 = scmp.ne.s32.totalorder %s5627_s22, %s5623_s21  ;;  %p6738_p1 = scmp.eq.s32.totalorder %s5702_s25, 0 }
   0xa   : > { %p185_p3 = scmp.eq.s32.totalorder %s4515_s26, 1  ;;  %p4516_p5 = scmp.ge.s32.totalorder %s5635_s24, 1 }
   0xb   : > { %p5711_p4 = por %p6738_p1, %p71_p0  ;;  %p192_p7 = scmp.lt.s32.totalorder %s5635_s24, 3 }
   0xc   : > { %p5716_p6 = por %p185_p3, %p71_p0  ;;  %s5637_s30 = smov [#allocation6]  }
   0xd   : > { %s6744_s27 = scalar_select %p5711_p4, 1, 0 }
   0xe   : > { %s6745_s28 = scalar_select %p5716_p6, 1, 0 }
   0xf   : > { %p5721_p8 = pnand %p4516_p5, %p192_p7  ;;  %s207_s7 = sshll.u32 %s5637_s30, 4  ;;  %s208_s7 = int_to_ptr.vmem [resolvable:$true] %s207_s7 }
  0x10   : > { %s221_s10 = sshll.u32 %s6735_s4, 4  ;;  %s232_s14 = sshll.u32 %s6736_s5, 4  ;;  %s222_s10 = int_to_ptr.vmem [resolvable:$true] %s221_s10  ;;  %s5740_s14 = int_to_ptr.vmem [resolvable:$true] %s232_s14 }
  0x11   : > { %s6746_s29 = scalar_select %p5721_p8, 1, 0 }
  0x12   : > { %p5384_p9 = pneg %p5721_p8  ;;  %s5486_s15 = scalar_lea.vmem %s208_s7, 768 }
  0x13   : > { %p5487_p13 = scmp.ne.s32.totalorder %s208_s7, %s5486_s15  ;;  %p5494_p5 = scmp.lt.s32.totalorder %s208_s7, %s208_s7 }
  0x14   : > { %p5733_p11 = pnand %p5384_p9, %p6738_p1  ;;  %p5495_p7 = scmp.lt.s32.totalorder %s5486_s15, %s5486_s15 }
  0x16   : > { %p5477_p12 = pneg %p5733_p11  ;;  %p5496_p9 = por %p5495_p7, %p5494_p5 }
  0x18   : > { %p5489_p0 = pnand %p5487_p13, %p5477_p12 }
  0x1a   : > { %p5490_p3 = pneg %p5489_p0 }
  0x1c   : > { %p5497_p10 = pnand %p5496_p9, %p5490_p3 }
  0x1e   : > { %5500 = shalt.err (!%p5497_p10)
}
  0x1f   : > { %s6739_s16 = smov 128   ;;  %s6740_s17 = smov 8  }
  0x20   : > { %5387 = dma.hbm_to_vmem [thread:$0]  (!%p5733_p11), %s6734_s3, 768, %s208_s7, [#allocation7], %s6739_s16, %s6739_s16, %s6740_s17  }
  0x21   : > { %s5501_s20 = scalar_lea.vmem %s222_s10, 16  ;;  %p5509_p3 = scmp.lt.s32.totalorder %s222_s10, %s222_s10 }
  0x22   : > { %p5502_p13 = scmp.ne.s32.totalorder %s222_s10, %s5501_s20  ;;  %p5510_p10 = scmp.lt.s32.totalorder %s5501_s20, %s5501_s20 }
  0x24   : > { %p5504_p0 = pnand %p5502_p13, %p5477_p12  ;;  %p5511_p7 = por %p5510_p10, %p5509_p3 }
  0x26   : > { %p5505_p5 = pneg %p5504_p0 }
  0x28   : > { %p5512_p9 = pnand %p5511_p7, %p5505_p5 }
  0x2a   : > { %5515 = shalt.err (!%p5512_p9)
}
  0x2b   : > { %s5640_s26 = smov [#allocation8]   ;;  %s5516_s30 = scalar_lea.vmem %s5740_s14, 16 }
  0x2c   : > { %5390 = dma.vmem_to_smem (!%p5733_p11), %s222_s10, 16, %s5640_s26, [#allocation5]  }
  0x2d   : > { %p5517_p1 = scmp.ne.s32.totalorder %s5740_s14, %s5516_s30  ;;  %p5524_p0 = scmp.lt.s32.totalorder %s5740_s14, %s5740_s14 }
  0x2e   : > { %p5525_p6 = scmp.lt.s32.totalorder %s5516_s30, %s5516_s30 }
  0x2f   : > { %p5519_p2 = pnand %p5517_p1, %p5477_p12 }
  0x30   : > { %p5526_p3 = por %p5525_p6, %p5524_p0 }
  0x31   : > { %p5520_p13 = pneg %p5519_p2 }
  0x33   : > { %p5527_p5 = pnand %p5526_p3, %p5520_p13 }
  0x35   : > { %5530 = shalt.err (!%p5527_p5)
}
  0x36   : > { %s5641_s7 = smov [#allocation9]   ;;  %s5771_s8 = sadd.s32 1, %s5635_s24  }
  0x37   : > { %5393 = dma.vmem_to_smem (!%p5733_p11), %s5740_s14, 16, %s5641_s7, [#allocation10]  }
  0x38   : > { %s55_s9 = ssub.s32 %s5635_s24, %s5771_s8  ;;  %s58_s10 = sadd.s32 1, %s5631_s23 }
  0x39   : > { %p56_p1 = scmp.eq.s32.totalorder %s55_s9, 0  ;;  %p65_p2 = scmp.ne.s32.totalorder %s5631_s23, %s5627_s22 }
  0x3a   : > { %p66_p6 = scmp.eq.s32.totalorder %s5635_s24, 0  ;;  %p5405_p12 = scmp.lt.s32.totalorder %s5635_s24, 2 }
  0x3b   : > { %s5781_s11 = scalar_select %p56_p1, %s5631_s23, %s58_s10  }
  0x3c   : > { %p67_p10 = por %p66_p6, %p65_p2  ;;  %p6748_p7 = scmp.eq.s32.totalorder %s5702_s25, 1 }
  0x3d   : > { %s251_s13 = sand.u32 1, %s5631_s23   ;;  %s4777_s15 = sshll.u32 %s5635_s24, 10 }
  0x3e   : > { %p5785_p9 = por %p6748_p7, %p65_p2  ;;  %s4521_s14 = sshll.u32 %s251_s13, 6 }
  0x3f   : > { %s5794_s20 = scalar_lea.hbm %s6732_s1, %s4777_s15  ;;  %s255_s26 = scalar_lea.vmem [#allocation2], %s4521_s14 }
  0x40   : > { %s6749_s12 = scalar_select %p5785_p9, 1, 0 }
  0x41   : > { %s262_s30 = sshll.u32 %s255_s26, 4  ;;  %p5796_p11 = pnand %p5405_p12, %p67_p10  ;;  %s5800_s30 = int_to_ptr.vmem [resolvable:$true] %s262_s30 }
  0x42   : > { %s5802_s9 = scalar_lea.sflag [#allocation3], %s251_s13  ;;  %s5531_s10 = scalar_lea.hbm %s5794_s20, 1024 }
  0x43   : > { %p5532_p13 = scmp.ne.s32.totalorder %s5794_s20, %s5531_s10  ;;  %p5533_p0 = pneg %p5796_p11 }
  0x44   : > { %s5536_s14 = scalar_lea.hbm %s6732_s1, 2048  ;;  %p5537_p1 = scmp.lt.s32.totalorder %s5794_s20, %s6732_s1 }
  0x45   : > { %p5534_p3 = pnand %p5533_p0, %p5532_p13  ;;  %p5538_p2 = scmp.lt.s32.totalorder %s5536_s14, %s5531_s10 }
  0x47   : > { %p5535_p5 = pneg %p5534_p3  ;;  %p5539_p6 = por %p5538_p2, %p5537_p1 }
  0x49   : > { %p5540_p12 = pnand %p5539_p6, %p5535_p5 }
  0x4b   : > { %5543 = shalt.err (!%p5540_p12)
}
  0x4c   : > { %s5544_s13 = scalar_lea.vmem %s5800_s30, 1024  ;;  %s5642_s16 = smov [#allocation2]  }
  0x4d   : > { %p5545_p10 = scmp.ne.s32.totalorder %s5800_s30, %s5544_s13  ;;  %s5549_s17 = sshll.u32 %s5642_s16, 4  ;;  %s5550_s17 = int_to_ptr.vmem [resolvable:$false] %s5549_s17 }
  0x4e   : > { %s5551_s15 = scalar_lea.vmem %s5550_s17, 2048  ;;  %p5552_p3 = scmp.lt.s32.totalorder %s5800_s30, %s5550_s17 }
  0x4f   : > { %p5547_p7 = pnand %p5545_p10, %p5533_p0  ;;  %p5553_p9 = scmp.lt.s32.totalorder %s5551_s15, %s5544_s13 }
  0x51   : > { %p5548_p13 = pneg %p5547_p7  ;;  %p5554_p4 = por %p5553_p9, %p5552_p3 }
  0x53   : > { %p5555_p8 = pnand %p5554_p4, %p5548_p13 }
  0x55   : > { %5558 = shalt.err (!%p5555_p8)
}
  0x56   : > { %s6751_s10 = smov 8   ;;  %s6752_s18 = smov 128  }
  0x57   : > { %5397 = dma.hbm_to_vmem [thread:$0]  (!%p5796_p11), %s5794_s20, 1024, %s5800_s30, %s5802_s9, %s6752_s18, %s6752_s18, %s6751_s10  }
  0x58   : > { %p6753_p0 = scmp.ne.s32.totalorder %s6746_s29, 0 }
  0x59   : > { %s5829_s16 = sand.u32 (!%p6753_p0), 1, %s5627_s22   ;;  %p6754_p4 = scmp.ne.s32.totalorder (!%p6753_p0), %s6744_s27, 0 }
  0x5a   : > { %274 = sbr.rel (%p6753_p0) target bundleno = 1751 (0x6d7), region = 44  ;;  %s4525_s17 = sshll.u32 (!%p6753_p0), %s5829_s16, 6 }
  0x5b   : > { %s277_s14 = scalar_lea.sflag (!%p6753_p0), [#allocation3], %s5829_s16  ;;  %s5833_s19 = scalar_lea.vmem (!%p6753_p0), [#allocation2], %s4525_s17 }
  0x5f   : > { %5602 = dma.done.wait (%p6754_p4), %s277_s14, 1024  }
  0x60   : > { %5604 = vsyncadd (%p6754_p4), %s277_s14, 4294966272  ;;  %p6755_p8 = scmp.eq.s32.totalorder %s5702_s25, 0 }
  0x62   : > { %5606 = dma.done.wait (%p6755_p8), [#allocation7], 768   ;;  %p6756_p9 = pmov %p6755_p8 }
  0x63   : > { %p6757_p11 = pmov %p6755_p8 }
  0x64   : > { %5608 = vsyncadd (%p6756_p9), [#allocation7], 4294966528 }
  0x65   : > { %5610 = dma.done.wait (%p6757_p11), [#allocation5], 16   ;;  %p6758_p5 = pmov %p6755_p8 }
  0x67   : > { %5612 = vsyncadd (%p6758_p5), [#allocation5], 4294967280  ;;  %p6759_p1 = pmov %p6758_p5 }
  0x69   : > { %5614 = dma.done.wait (%p6759_p1), [#allocation10], 16   ;;  %p6760_p2 = pmov %p6759_p1 }
  0x6b   : > { %5616 = vsyncadd (%p6760_p2), [#allocation10], 4294967280 }
  0x6c   : > { %297 = sfence }
  0x6d   : > { %p327_p6 = scmp.lt.s32.totalorder %s5702_s25, 1  ;;  %s361_s27 = sld [smem:[#allocation8]]  ;;  %v5855_v0 = vld [vmem:[%s6733_s2] sm:$0xff]  ;;  %vm385_vm0 = vcmask 130048   ;;  %v5910_v42 = vld [vmem:[%s6733_s2 + $0x8] sm:$0xff]  ;;  %v5912_v43 = vld [vmem:[#allocation6 + $0x18] sm:$0xff] }
  0x6e   : > { %s4532_s30 = sld [smem:[#allocation8 + $0x9]]  ;;  %5000 = vmatprep.mubr.msk.f32.mxu0 %vm385_vm0, %v5855_v0  ;;  %5010 = vmatprep.mubr.msk.f32.mxu1 %vm385_vm0, %v5855_v0  ;;  %v5917_v45 = vld [vmem:[%s6733_s2 + $0x10] sm:$0xff]  ;;  %v5929_v49 = vld [vmem:[%s6733_s2 + $0x18] sm:$0xff]  ;;  %v5942_v50 = vld [vmem:[#allocation6 + $0x8] sm:$0xff]  ;;  %vm340_vm1 = vcmask 261120   ;;  %p6761_p10 = scmp.ne.s32.totalorder %s6749_s12, 0 }
  0x6f   : > { %s328_s7 = scalar_select %p327_p6, %s5702_s25, 1  ;;  %v5922_v48 = vld [vmem:[#allocation6 + $0x10] sm:$0xff]  ;;  %v5947_v54 = vld [vmem:[#allocation6] sm:$0xff] }
  0x70   : > { %s4533_s9 = sld [smem:[#allocation8 + $0x12]] }
  0x71   : > { %s4778_s26 = sshll.u32 %s328_s7, 6  ;;  %s4534_s13 = sld [smem:[#allocation8 + $0x1b]] }
  0x72   : > { %s5865_s18 = scalar_lea.vmem %s6731_s0, %s4778_s26  ;;  %s4539_s17 = sld [smem:[#allocation8 + $0x1]] }
  0x73   : > { %v5868_v1 = vld [vmem:[%s5865_s18] sm:$0xff]  ;;  %v5871_v2 = vld [vmem:[%s5865_s18 + $0x8] sm:$0xff]  ;;  %v5874_v3 = vld [vmem:[%s5865_s18 + $0x10] sm:$0xff]  ;;  %v362_v4 = vstv %s361_s27  ;;  %s4540_s14 = sld [smem:[#allocation8 + $0xa]] }
  0x74   : > { %v5877_v5 = vld [vmem:[%s5865_s18 + $0x18] sm:$0xff]  ;;  %v5880_v6 = vld [vmem:[%s5865_s18 + $0x20] sm:$0xff]  ;;  %v5883_v7 = vld [vmem:[%s5865_s18 + $0x28] sm:$0xff]  ;;  %v363_v8 = vmul.f32 %v362_v4, %v5868_v1  ;;  %v364_v9 = vmul.f32 %v362_v4, %v5871_v2  ;;  %v368_v10 = vstv %s4532_s30  ;;  %s4541_s29 = sld [smem:[#allocation8 + $0x13]] }
  0x75   : > { %v5888_v11 = vld [vmem:[%s5865_s18 + $0x30] sm:$0xff]  ;;  %v5891_v12 = vld [vmem:[%s5865_s18 + $0x38] sm:$0xff]  ;;  %v369_v13 = vmul.f32 %v368_v10, %v5874_v3  ;;  %v370_v14 = vmul.f32 %v368_v10, %v5877_v5  ;;  %s4542_s27 = sld [smem:[#allocation8 + $0x1c]] }
  0x76   : > { %v374_v15 = vstv %s4533_s9  ;;  %s4555_s15 = sld [smem:[#allocation8 + $0x2]] }
  0x77   : > { %v372_v16 = vadd.f32 %v370_v14, %v364_v9  ;;  %v375_v17 = vmul.f32 %v374_v15, %v5880_v6  ;;  %v376_v18 = vmul.f32 %v374_v15, %v5883_v7  ;;  %v380_v19 = vstv %s4534_s13  ;;  %s4556_s10 = sld [smem:[#allocation8 + $0xb]] }
  0x78   : > { %v381_v20 = vmul.f32 %v380_v19, %v5888_v11  ;;  %v382_v21 = vmul.f32 %v380_v19, %v5891_v12  ;;  %v486_v22 = vstv %s4539_s17  ;;  %v371_v23 = vadd.f32 %v369_v13, %v363_v8  ;;  %s4557_s17 = sld [smem:[#allocation8 + $0x14]] }
  0x79   : > { %v378_v24 = vadd.f32 %v376_v18, %v372_v16  ;;  %v487_v25 = vmul.f32 %v486_v22, %v5868_v1  ;;  %v488_v26 = vmul.f32 %v486_v22, %v5871_v2  ;;  %v492_v27 = vstv %s4540_s14  ;;  %s4558_s14 = sld [smem:[#allocation8 + $0x1d]] }
  0x7a   : > { %v493_v28 = vmul.f32 %v492_v27, %v5874_v3  ;;  %v494_v29 = vmul.f32 %v492_v27, %v5877_v5  ;;  %v498_v30 = vstv %s4541_s29  ;;  %v377_v31 = vadd.f32 %v375_v17, %v371_v23  ;;  %s4571_s29 = sld [smem:[#allocation8 + $0x3]] }
  0x7b   : > { %v384_v32 = vadd.f32 %v382_v21, %v378_v24  ;;  %v499_v33 = vmul.f32 %v498_v30, %v5880_v6  ;;  %v500_v34 = vmul.f32 %v498_v30, %v5883_v7  ;;  %v504_v35 = vstv %s4542_s27  ;;  %s4572_s27 = sld [smem:[#allocation8 + $0xc]] }
  0x7c   : > { %v496_v36 = vadd.f32 %v494_v29, %v488_v26  ;;  %v506_v37 = vmul.f32 %v504_v35, %v5891_v12  ;;  %v383_v38 = vadd.f32 %v381_v20, %v377_v31  ;;  %v505_v39 = vmul.f32 %v504_v35, %v5888_v11  ;;  %s5958_s20 = sld [smem:[#allocation8 + $0x15]] }
  0x7d   : > { %4996 = vmatprep.subr.mxu0 %v384_v32  ;;  %v495_v40 = vadd.f32 %v493_v28, %v487_v25  ;;  %v792_v51 = vstv %s4555_s15  ;;  %v798_v53 = vstv %s4556_s10  ;;  %s5960_s30 = sld [smem:[#allocation8 + $0x1e]] }
  0x7e   : > { %v502_v41 = vadd.f32 %v500_v34, %v496_v36  ;;  %4997 = vmatpush3.msra.mxu0 %v384_v32  ;;  %v794_v52 = vmul.f32 %v792_v51, %v5871_v2  ;;  %v800_v55 = vmul.f32 %v798_v53, %v5877_v5  ;;  %v804_v56 = vstv %s4557_s17  ;;  %s5962_s7 = sld [smem:[#allocation8 + $0x4]] }
  0x7f   : > { %4998 = vmatprep.subr.mxu0 %v383_v38  ;;  %v501_v44 = vadd.f32 %v499_v33, %v495_v40  ;;  %v806_v57 = vmul.f32 %v804_v56, %v5883_v7  ;;  %v793_v58 = vmul.f32 %v792_v51, %v5868_v1  ;;  %v799_v59 = vmul.f32 %v798_v53, %v5874_v3  ;;  %s5964_s9 = sld [smem:[#allocation8 + $0xd]] }
  0x80   : > { %v508_v46 = vadd.f32 %v506_v37, %v502_v41  ;;  %4999 = vmatpush3.msra.mxu0 %v383_v38  ;;  %v802_v60 = vadd.f32 %v800_v55, %v794_v52  ;;  %v810_v61 = vstv %s4558_s14  ;;  %v805_v4 = vmul.f32 %v804_v56, %v5880_v6  ;;  %s5969_s26 = sld [smem:[#allocation8 + $0x16]] }
  0x81   : > { %v507_v47 = vadd.f32 %v505_v39, %v501_v44  ;;  %5001 = vmatmul.mubr.msk.f32.vlgmr.msra.gmra.mxu0 %vm385_vm0, %v5910_v42  ;;  %5016 = vmatprep.subr.mxu0 %v5912_v43  ;;  %v812_v62 = vmul.f32 %v810_v61, %v5891_v12  ;;  %v801_v63 = vadd.f32 %v799_v59, %v793_v58  ;;  %v1010_v15 = vstv %s4571_s29  ;;  %s5971_s13 = sld [smem:[#allocation8 + $0x1f]] }
  0x82   : > { %5006 = vmatprep.subr.mxu1 %v508_v46  ;;  %5003 = vmatprep.mubr.msk.f32.mxu0 %vm385_vm0, %v5917_v45  ;;  %v808_v8 = vadd.f32 %v806_v57, %v802_v60  ;;  %v811_v10 = vmul.f32 %v810_v61, %v5888_v11  ;;  %v1016_v16 = vstv %s4572_s27  ;;  %v1012_v17 = vmul.f32 %v1010_v15, %v5871_v2  ;;  %s5974_s15 = sld [smem:[#allocation8 + $0x5]] }
  0x83   : > { %5007 = vmatpush3.msra.mxu1 %v508_v46  ;;  %5017 = vmatpush3.msra.mxu0 %v5912_v43  ;;  %v807_v9 = vadd.f32 %v805_v4, %v801_v63  ;;  %v1018_v18 = vmul.f32 %v1016_v16, %v5877_v5  ;;  %v1022_v19 = vstv %s5958_s20  ;;  %v1028_v24 = vstv %s5960_s30  ;;  %s5979_s10 = sld [smem:[#allocation8 + $0xe]] }
  0x84   : > { %5008 = vmatprep.subr.mxu1 %v507_v47  ;;  %5018 = vmatprep.subr.mxu0 %v5922_v48  ;;  %v814_v13 = vadd.f32 %v812_v62, %v808_v8  ;;  %v1024_v22 = vmul.f32 %v1022_v19, %v5883_v7  ;;  %v1232_v25 = vstv %s5962_s7  ;;  %v1011_v27 = vmul.f32 %v1010_v15, %v5868_v1  ;;  %s5989_s17 = sld [smem:[#allocation8 + $0x17]] }
  0x85   : > { %5009 = vmatpush3.msra.mxu1 %v507_v47  ;;  %5004 = vmatmul.mubr.msk.f32.gmra.mxu0 %vm385_vm0, %v5929_v49  ;;  %v813_v14 = vadd.f32 %v811_v10, %v807_v9  ;;  %v1020_v21 = vadd.f32 %v1018_v18, %v1012_v17  ;;  %v1238_v26 = vstv %s5964_s9  ;;  %v1017_v28 = vmul.f32 %v1016_v16, %v5874_v3  ;;  %s5995_s14 = sld [smem:[#allocation8 + $0x20]]  ;;  %v6037_v18 = vld [vmem:[%s6733_s2 + $0x20] sm:$0xff] }
  0x86   : > { %5011 = vmatmul.mubr.msk.f32.vlgmr.msra.gmra.mxu1 %vm385_vm0, %v5910_v42  ;;  %5019 = vmatpush3.msra.mxu0 %v5922_v48  ;;  %v1030_v32 = vmul.f32 %v1028_v24, %v5891_v12  ;;  %v1234_v33 = vmul.f32 %v1232_v25, %v5871_v2  ;;  %v1240_v34 = vmul.f32 %v1238_v26, %v5877_v5  ;;  %v1244_v36 = vstv %s5969_s26  ;;  %s6000_s29 = sld [smem:[#allocation8 + $0x6]] }
  0x87   : > { %5013 = vmatprep.mubr.msk.f32.mxu1 %vm385_vm0, %v5917_v45  ;;  %5026 = vmatprep.subr.mxu1 %v5942_v50  ;;  %v1026_v31 = vadd.f32 %v1024_v22, %v1020_v21  ;;  %v1019_v38 = vadd.f32 %v1017_v28, %v1011_v27  ;;  %v1023_v39 = vmul.f32 %v1022_v19, %v5880_v6  ;;  %v1250_v47 = vstv %s5971_s13  ;;  %s6004_s27 = sld [smem:[#allocation8 + $0xf]]  ;;  %v6052_v27 = vld [vmem:[%s6733_s2 + $0x28] sm:$0xff] }
  0x88   : > { %5027 = vmatpush3.msra.mxu1 %v5942_v50  ;;  %5036 = vmatprep.subr.mxu0 %v814_v13  ;;  %v1242_v44 = vadd.f32 %v1240_v34, %v1234_v33  ;;  %v1246_v46 = vmul.f32 %v1244_v36, %v5883_v7  ;;  %v1442_v51 = vstv %s5974_s15  ;;  %v1029_v56 = vmul.f32 %v1028_v24, %v5888_v11  ;;  %s6017_s20 = sld [smem:[#allocation8 + $0x18]] }
  0x89   : > { %5028 = vmatprep.subr.mxu1 %v5947_v54  ;;  %v1032_v41 = vadd.f32 %v1030_v32, %v1026_v31  ;;  %v1448_v52 = vstv %s5979_s10  ;;  %v1025_v55 = vadd.f32 %v1023_v39, %v1019_v38  ;;  %v1233_v57 = vmul.f32 %v1232_v25, %v5868_v1  ;;  %s6020_s30 = sld [smem:[#allocation8 + $0x21]] }
  0x8a   : > { %5014 = vmatmul.mubr.msk.f32.gmra.mxu1 %vm385_vm0, %v5929_v49  ;;  %v1239_v58 = vmul.f32 %v1238_v26, %v5874_v3  ;;  %v1252_v59 = vmul.f32 %v1250_v47, %v5891_v12  ;;  %v1248_v60 = vadd.f32 %v1246_v46, %v1242_v44  ;;  %v1444_v61 = vmul.f32 %v1442_v51, %v5871_v2  ;;  %s6026_s7 = sld [smem:[#allocation8 + $0x7]] }
  0x8b   : > { %5029 = vmatpush3.msra.mxu1 %v5947_v54  ;;  %v1450_v62 = vmul.f32 %v1448_v52, %v5877_v5  ;;  %v1454_v63 = vstv %s5989_s17  ;;  %v1031_v4 = vadd.f32 %v1029_v56, %v1025_v55  ;;  %v1245_v9 = vmul.f32 %v1244_v36, %v5880_v6  ;;  %s6032_s9 = sld [smem:[#allocation8 + $0x10]] }
  0x8c   : > { %v1241_v8 = vadd.f32 %v1239_v58, %v1233_v57  ;;  %v1254_v10 = vadd.f32 %v1252_v59, %v1248_v60  ;;  %v1460_v15 = vstv %s5995_s14  ;;  %v1657_v16 = vstv %s6000_s29  ;;  %s6055_s17 = sld [smem:[#allocation8 + $0x19]] }
  0x8d   : > { %v1663_v17 = vstv %s6004_s27  ;;  %v1443_v21 = vmul.f32 %v1442_v51, %v5868_v1  ;;  %v1449_v22 = vmul.f32 %v1448_v52, %v5874_v3  ;;  %v1659_v25 = vmul.f32 %v1657_v16, %v5871_v2  ;;  %s6063_s27 = sld [smem:[#allocation8 + $0x22]] }
  0x8e   : > { %v1247_v19 = vadd.f32 %v1245_v9, %v1241_v8  ;;  %v1665_v26 = vmul.f32 %v1663_v17, %v5877_v5  ;;  %v1669_v28 = vstv %s6017_s20  ;;  %v1455_v32 = vmul.f32 %v1454_v63, %v5880_v6  ;;  %s6069_s20 = sld [smem:[#allocation8 + $0x8]] }
  0x8f   : > { %v1451_v31 = vadd.f32 %v1449_v22, %v1443_v21  ;;  %v1675_v36 = vstv %s6020_s30  ;;  %s6080_s15 = sld [smem:[#allocation8 + $0x11]]  ;;  %v1658_v44 = vmul.f32 %v1657_v16, %v5868_v1  ;;  %v1664_v46 = vmul.f32 %v1663_v17, %v5874_v3 }
  0x90   : > { %v1667_v34 = vadd.f32 %v1665_v26, %v1659_v25  ;;  %v1879_v38 = vstv %s6026_s7  ;;  %s6093_s30 = sld [smem:[#allocation8 + $0x1a]]  ;;  %v1670_v58 = vmul.f32 %v1669_v28, %v5880_v6  ;;  %v1676_v9 = vmul.f32 %v1675_v36, %v5888_v11 }
  0x91   : > { %v1885_v39 = vstv %s6032_s9  ;;  %v1881_v52 = vmul.f32 %v1879_v38, %v5871_v2  ;;  %v1666_v57 = vadd.f32 %v1664_v46, %v1658_v44  ;;  %s6104_s7 = sld [smem:[#allocation8 + $0x23]]  ;;  %v6155_v46 = vld [vmem:[%s6733_s2 + $0x58] sm:$0xff] }
  0x92   : > { %v1891_v55 = vstv %s6055_s17  ;;  %s4651_s13 = sld [smem:[#allocation8 + $0x24]] }
  0x93   : > { %v1672_v8 = vadd.f32 %v1670_v58, %v1666_v57  ;;  %v1892_v22 = vmul.f32 %v1891_v55, %v5880_v6  ;;  %s6231_s9 = sld [smem:[#allocation8 + $0x25]] }
  0x94   : > { %s6234_s10 = sld [smem:[#allocation8 + $0x2e]] }
  0x95   : > { %s6241_s17 = sld [smem:[#allocation8 + $0x37]] }
  0x96   : > { %s6248_s14 = sld [smem:[#allocation8 + $0x40]] }
  0x97   : > { %v2107_v26 = vstv %s6104_s7  ;;  %s4654_s7 = sld [smem:[#allocation8 + $0x3f]] }
  0x98   : > { %s4675_s29 = sld [smem:[#allocation8 + $0x26]] }
  0x99   : > { %s4678_s26 = sld [smem:[#allocation8 + $0x41]] }
 0x141   : > { %v5002_v20 = vpop.f32.mrf.mxu0 }
 0x143   : > { %v464_v23 = vpop.f32.mrf.mxu0 }
 0x144   : > { %5030 = vmatprep.mubr.msk.f32.mxu1 %vm385_vm0, %v464_v23  ;;  %v1462_v23 = vmul.f32 %v1460_v15, %v5891_v12 }
 0x145   : > { %v5005_v29 = vpop.f32.mrf.mxu0  ;;  %5031 = vmatmul.mubr.msk.f32.vlgmr.msra.gmra.mxu1 %vm385_vm0, %v5002_v20  ;;  %v1251_v20 = vmul.f32 %v1250_v47, %v5888_v11  ;;  %v1677_v47 = vmul.f32 %v1675_v36, %v5891_v12  ;;  %v6140_v36 = vld [vmem:[%s6733_s2 + $0x48] sm:$0xff] }
 0x146   : > { %v5012_v30 = vpop.f32.mrf.mxu1 }
 0x147   : > { %v474_v35 = vpop.f32.mrf.mxu0 }
 0x148   : > { %v575_v37 = vpop.f32.mrf.mxu1  ;;  %5033 = vmatprep.mubr.msk.f32.mxu1 %vm385_vm0, %v474_v35  ;;  %v1671_v35 = vmul.f32 %v1669_v28, %v5883_v7  ;;  %v6127_v28 = vld [vmem:[%s6733_s2 + $0x40] sm:$0xff] }
 0x149   : > { %5020 = vmatprep.mubr.msk.f32.mxu0 %vm385_vm0, %v575_v37  ;;  %5034 = vmatmul.mubr.msk.f32.gmra.mxu1 %vm385_vm0, %v5005_v29  ;;  %v6060_v29 = vld [vmem:[%s6733_s2 + $0x30] sm:$0xff]  ;;  %v6076_v37 = vld [vmem:[%s6733_s2 + $0x38] sm:$0xff] }
 0x14a   : > { %v5015_v40 = vpop.f32.mrf.mxu1  ;;  %5021 = vmatmul.mubr.msk.f32.vlgmr.msra.gmra.mxu0 %vm385_vm0, %v5012_v30  ;;  %v1253_v30 = vadd.f32 %v1251_v20, %v1247_v19  ;;  %v1673_v51 = vadd.f32 %v1671_v35, %v1667_v34  ;;  %v2101_v19 = vstv %s6093_s30  ;;  %v1678_v20 = vadd.f32 %v1676_v9, %v1672_v8  ;;  %s4653_s30 = sld [smem:[#allocation8 + $0x36]] }
 0x14b   : > { %5037 = vmatpush3.msra.mxu0 %v814_v13  ;;  %v1452_v13 = vadd.f32 %v1450_v62, %v1444_v61  ;;  %v1893_v61 = vmul.f32 %v1891_v55, %v5883_v7  ;;  %v1897_v62 = vstv %s6063_s27  ;;  %v2103_v25 = vmul.f32 %v2101_v19, %v5883_v7  ;;  %v6182_v55 = vld [vmem:[#allocation6 + $0x20] sm:$0xff]  ;;  %s4676_s27 = sld [smem:[#allocation8 + $0x2f]] }
 0x14c   : > { %v585_v53 = vpop.f32.mrf.mxu1  ;;  %5038 = vmatprep.subr.mxu0 %v813_v14  ;;  %v1679_v59 = vadd.f32 %v1677_v47, %v1673_v51  ;;  %v2109_v35 = vmul.f32 %v2107_v26, %v5891_v12  ;;  %v2108_v51 = vmul.f32 %v2107_v26, %v5888_v11 }
 0x14d   : > { %5023 = vmatprep.mubr.msk.f32.mxu0 %vm385_vm0, %v585_v53  ;;  %5039 = vmatpush3.msra.mxu0 %v813_v14  ;;  %v1456_v14 = vmul.f32 %v1454_v63, %v5883_v7  ;;  %v1887_v53 = vmul.f32 %v1885_v39, %v5877_v5  ;;  %v2089_v63 = vstv %s6069_s20  ;;  %s4677_s20 = sld [smem:[#allocation8 + $0x38]] }
 0x14e   : > { %5024 = vmatmul.mubr.msk.f32.gmra.mxu0 %vm385_vm0, %v5015_v40  ;;  %5056 = vmatprep.subr.mxu0 %v1032_v41  ;;  %v1457_v40 = vadd.f32 %v1455_v32, %v1451_v31  ;;  %v2091_v16 = vmul.f32 %v2089_v63, %v5871_v2  ;;  %v1898_v31 = vmul.f32 %v1897_v62, %v5888_v11 }
 0x14f   : > { %5040 = vmatprep.mubr.msk.f32.mxu0 %vm385_vm0, %v5855_v0  ;;  %v1458_v24 = vadd.f32 %v1456_v14, %v1452_v13  ;;  %v1889_v60 = vadd.f32 %v1887_v53, %v1881_v52  ;;  %v1886_v13 = vmul.f32 %v1885_v39, %v5874_v3  ;;  %v1899_v14 = vmul.f32 %v1897_v62, %v5891_v12  ;;  %v6178_v53 = vld [vmem:[#allocation6 + $0x28] sm:$0xff] }
 0x150   : > { %v2090_v32 = vmul.f32 %v2089_v63, %v5868_v1  ;;  %5046 = vmatprep.subr.mxu1 %v6178_v53 }
 0x151   : > { %v1464_v33 = vadd.f32 %v1462_v23, %v1458_v24  ;;  %5047 = vmatpush3.msra.mxu1 %v6178_v53 }
 0x152   : > { %5041 = vmatmul.mubr.msk.f32.vlgmr.msra.gmra.mxu0 %vm385_vm0, %v5910_v42  ;;  %5048 = vmatprep.subr.mxu1 %v6182_v55 }
 0x153   : > { %5057 = vmatpush3.msra.mxu0 %v1032_v41  ;;  %5043 = vmatprep.mubr.msk.f32.mxu0 %vm385_vm0, %v5917_v45  ;;  %v1461_v41 = vmul.f32 %v1460_v15, %v5888_v11  ;;  %v1895_v15 = vadd.f32 %v1893_v61, %v1889_v60  ;;  %v2390_v61 = vstv %s4653_s30  ;;  %s6325_s30 = sld [smem:[#allocation8 + $0x39]] }
 0x154   : > { %5058 = vmatprep.subr.mxu0 %v1031_v4  ;;  %5049 = vmatpush3.msra.mxu1 %v6182_v55  ;;  %v2392_v63 = vmul.f32 %v2390_v61, %v5883_v7 }
 0x155   : > { %5059 = vmatpush3.msra.mxu0 %v1031_v4  ;;  %v1463_v56 = vadd.f32 %v1461_v41, %v1457_v40  ;;  %v2095_v4 = vstv %s6080_s15  ;;  %v1901_v23 = vadd.f32 %v1899_v14, %v1895_v15  ;;  %v2102_v41 = vmul.f32 %v2101_v19, %v5880_v6  ;;  %5066 = vmatprep.subr.mxu1 %v5942_v50  ;;  %s4652_s15 = sld [smem:[#allocation8 + $0x2d]] }
 0x156   : > { %5044 = vmatmul.mubr.msk.f32.gmra.mxu0 %vm385_vm0, %v5929_v49  ;;  %5076 = vmatprep.subr.mxu0 %v1254_v10  ;;  %v2097_v17 = vmul.f32 %v2095_v4, %v5877_v5 }
 0x157   : > { %5060 = vmatprep.mubr.msk.f32.mxu0 %vm385_vm0, %v6037_v18 }
 0x158   : > { %v2099_v24 = vadd.f32 %v2097_v17, %v2091_v16 }
 0x15a   : > { %5061 = vmatmul.mubr.msk.f32.vlgmr.msra.gmra.mxu0 %vm385_vm0, %v6052_v27  ;;  %v2105_v34 = vadd.f32 %v2103_v25, %v2099_v24 }
 0x15b   : > { %5077 = vmatpush3.msra.mxu0 %v1254_v10  ;;  %5063 = vmatprep.mubr.msk.f32.mxu0 %vm385_vm0, %v6060_v29  ;;  %v1880_v10 = vmul.f32 %v1879_v38, %v5868_v1  ;;  %v6145_v38 = vld [vmem:[%s6733_s2 + $0x50] sm:$0xff] }
 0x15c   : > { %5078 = vmatprep.subr.mxu0 %v1253_v30  ;;  %v2111_v44 = vadd.f32 %v2109_v35, %v2105_v34 }
 0x15d   : > { %5079 = vmatpush3.msra.mxu0 %v1253_v30  ;;  %v1888_v21 = vadd.f32 %v1886_v13, %v1880_v10  ;;  %v2391_v13 = vmul.f32 %v2390_v61, %v5880_v6  ;;  %v2513_v61 = vstv %s6241_s17  ;;  %s6336_s17 = sld [smem:[#allocation8 + $0x31]] }
 0x15e   : > { %5064 = vmatmul.mubr.msk.f32.gmra.mxu0 %vm385_vm0, %v6076_v37  ;;  %5096 = vmatprep.subr.mxu0 %v1464_v33 }
 0x15f   : > { %5080 = vmatprep.mubr.msk.f32.mxu0 %vm385_vm0, %v6037_v18  ;;  %v1894_v30 = vadd.f32 %v1892_v22, %v1888_v21 }
 0x161   : > { %v1900_v39 = vadd.f32 %v1898_v31, %v1894_v30 }
 0x162   : > { %5081 = vmatmul.mubr.msk.f32.vlgmr.msra.gmra.mxu0 %vm385_vm0, %v6052_v27 }
 0x163   : > { %5097 = vmatpush3.msra.mxu0 %v1464_v33  ;;  %5083 = vmatprep.mubr.msk.f32.mxu0 %vm385_vm0, %v6060_v29  ;;  %v2096_v33 = vmul.f32 %v2095_v4, %v5874_v3  ;;  %v2396_v4 = vstv %s4654_s7  ;;  %s6328_s7 = sld [smem:[#allocation9]] }
 0x164   : > { %5098 = vmatprep.subr.mxu0 %v1463_v56  ;;  %v2398_v9 = vmul.f32 %v2396_v4, %v5891_v12  ;;  %v2397_v14 = vmul.f32 %v2396_v4, %v5888_v11 }
 0x165   : > { %5099 = vmatpush3.msra.mxu0 %v1463_v56  ;;  %v2098_v40 = vadd.f32 %v2096_v33, %v2090_v32  ;;  %v2378_v56 = vstv %s4651_s13  ;;  %s6319_s13 = sld [smem:[#allocation8 + $0x27]] }
 0x166   : > { %5084 = vmatmul.mubr.msk.f32.gmra.mxu0 %vm385_vm0, %v6076_v37  ;;  %5116 = vmatprep.subr.mxu0 %v1679_v59  ;;  %v2380_v57 = vmul.f32 %v2378_v56, %v5871_v2  ;;  %v2379_v58 = vmul.f32 %v2378_v56, %v5868_v1  ;;  %v2507_v56 = vstv %s6234_s10  ;;  %s6332_s10 = sld [smem:[#allocation8 + $0x28]] }
 0x167   : > { %5100 = vmatprep.mubr.msk.f32.mxu0 %vm385_vm0, %v6037_v18  ;;  %v2104_v47 = vadd.f32 %v2102_v41, %v2098_v40 }
 0x169   : > { %v2110_v52 = vadd.f32 %v2108_v51, %v2104_v47 }
 0x16a   : > { %5101 = vmatmul.mubr.msk.f32.vlgmr.msra.gmra.mxu0 %vm385_vm0, %v6052_v27 }
 0x16b   : > { %5117 = vmatpush3.msra.mxu0 %v1679_v59  ;;  %5103 = vmatprep.mubr.msk.f32.mxu0 %vm385_vm0, %v6060_v29  ;;  %v2384_v59 = vstv %s4652_s15  ;;  %s6321_s15 = sld [smem:[#allocation8 + $0x30]] }
 0x16c   : > { %5118 = vmatprep.subr.mxu0 %v1678_v20  ;;  %v2386_v60 = vmul.f32 %v2384_v59, %v5877_v5  ;;  %v2385_v62 = vmul.f32 %v2384_v59, %v5874_v3 }
 0x16d   : > { %5119 = vmatpush3.msra.mxu0 %v1678_v20 }
 0x16e   : > { %5104 = vmatmul.mubr.msk.f32.gmra.mxu0 %vm385_vm0, %v6076_v37  ;;  %5136 = vmatprep.subr.mxu0 %v1901_v23  ;;  %v2388_v8 = vadd.f32 %v2386_v60, %v2380_v57  ;;  %v2387_v10 = vadd.f32 %v2385_v62, %v2379_v58  ;;  %v2509_v60 = vmul.f32 %v2507_v56, %v5877_v5 }
 0x16f   : > { %5120 = vmatprep.mubr.msk.f32.mxu0 %vm385_vm0, %v6127_v28 }
 0x170   : > { %v2394_v15 = vadd.f32 %v2392_v63, %v2388_v8  ;;  %v2393_v16 = vadd.f32 %v2391_v13, %v2387_v10  ;;  %v2515_v8 = vmul.f32 %v2513_v61, %v5883_v7 }
 0x172   : > { %5121 = vmatmul.mubr.msk.f32.vlgmr.msra.gmra.mxu0 %vm385_vm0, %v6140_v36  ;;  %v2400_v17 = vadd.f32 %v2398_v9, %v2394_v15  ;;  %v2399_v19 = vadd.f32 %v2397_v14, %v2393_v16  ;;  %v2519_v9 = vstv %s6248_s14  ;;  %v2508_v14 = vmul.f32 %v2507_v56, %v5874_v3  ;;  %s6347_s14 = sld [smem:[#allocation8 + $0x3a]] }
 0x173   : > { %5137 = vmatpush3.msra.mxu0 %v1901_v23  ;;  %5123 = vmatprep.mubr.msk.f32.mxu0 %vm385_vm0, %v6145_v38 }
 0x174   : > { %5138 = vmatprep.subr.mxu0 %v1900_v39 }
 0x175   : > { %5139 = vmatpush3.msra.mxu0 %v1900_v39 }
 0x176   : > { %5124 = vmatmul.mubr.msk.f32.gmra.mxu0 %vm385_vm0, %v6155_v46  ;;  %5156 = vmatprep.subr.mxu0 %v2111_v44 }
 0x177   : > { %5140 = vmatprep.mubr.msk.f32.mxu0 %vm385_vm0, %v6127_v28 }
 0x17a   : > { %5141 = vmatmul.mubr.msk.f32.vlgmr.msra.gmra.mxu0 %vm385_vm0, %v6140_v36 }
 0x17b   : > { %5157 = vmatpush3.msra.mxu0 %v2111_v44  ;;  %5143 = vmatprep.mubr.msk.f32.mxu0 %vm385_vm0, %v6145_v38 }
 0x17c   : > { %5158 = vmatprep.subr.mxu0 %v2110_v52 }
 0x17d   : > { %5159 = vmatpush3.msra.mxu0 %v2110_v52  ;;  %v2501_v52 = vstv %s6231_s9  ;;  %s6330_s9 = sld [smem:[#allocation8 + $0x42]] }
 0x17e   : > { %5144 = vmatmul.mubr.msk.f32.gmra.mxu0 %vm385_vm0, %v6155_v46  ;;  %5176 = vmatprep.subr.mxu0 %v2400_v17  ;;  %v2503_v59 = vmul.f32 %v2501_v52, %v5871_v2  ;;  %v2502_v13 = vmul.f32 %v2501_v52, %v5868_v1 }
 0x17f   : > { %5160 = vmatprep.mubr.msk.f32.mxu0 %vm385_vm0, %v6127_v28 }
 0x180   : > { %v2511_v4 = vadd.f32 %v2509_v60, %v2503_v59 }
 0x182   : > { %5161 = vmatmul.mubr.msk.f32.vlgmr.msra.gmra.mxu0 %vm385_vm0, %v6140_v36  ;;  %v2517_v16 = vadd.f32 %v2515_v8, %v2511_v4 }
 0x183   : > { %5163 = vmatprep.mubr.msk.f32.mxu0 %vm385_vm0, %v6145_v38  ;;  %5177 = vmatpush3.msra.mxu0 %v2400_v17 }
 0x184   : > { %5178 = vmatprep.subr.mxu0 %v2399_v19 }
 0x185   : > { %5179 = vmatpush3.msra.mxu0 %v2399_v19  ;;  %v2510_v19 = vadd.f32 %v2508_v14, %v2502_v13 }
 0x186   : > { %5164 = vmatmul.mubr.msk.f32.gmra.mxu0 %vm385_vm0, %v6155_v46  ;;  %5196 = vmatprep.subr.mxu0 %v5912_v43 }
 0x187   : > { %5180 = vmatprep.mubr.msk.f32.mxu0 %vm385_vm0, %v5855_v0 }
 0x18a   : > { %5181 = vmatmul.mubr.msk.f32.vlgmr.msra.gmra.mxu0 %vm385_vm0, %v5910_v42 }
 0x18b   : > { %5183 = vmatprep.mubr.msk.f32.mxu0 %vm385_vm0, %v5917_v45  ;;  %5197 = vmatpush3.msra.mxu0 %v5912_v43 }
 0x18c   : > { %5198 = vmatprep.subr.mxu0 %v5922_v48 }
 0x18d   : > { %5199 = vmatpush3.msra.mxu0 %v5922_v48 }
 0x18e   : > { %5184 = vmatmul.mubr.msk.f32.gmra.mxu0 %vm385_vm0, %v5929_v49 }
 0x20a   : > { %v6205_v20 = vpop.f32.mrf.mxu0 }
 0x20c   : > { %v6207_v21 = vpop.f32.mrf.mxu0 }
 0x20e   : > { %v6209_v22 = vpop.f32.mrf.mxu0 }
 0x210   : > { %v6211_v23 = vpop.f32.mrf.mxu0 }
 0x212   : > { %v5042_v24 = vpop.f32.mrf.mxu0 }
 0x214   : > { %v881_v25 = vpop.f32.mrf.mxu0 }
 0x215   : > { %5050 = vmatprep.mubr.msk.f32.mxu1 %vm385_vm0, %v881_v25 }
 0x216   : > { %v5045_v26 = vpop.f32.mrf.mxu0  ;;  %5051 = vmatmul.mubr.msk.f32.vlgmr.msra.gmra.mxu1 %vm385_vm0, %v5042_v24  ;;  %v2514_v24 = vmul.f32 %v2513_v61, %v5880_v6 }
 0x217   : > { %5067 = vmatpush3.msra.mxu1 %v5942_v50 }
 0x218   : > { %v891_v30 = vpop.f32.mrf.mxu0  ;;  %5068 = vmatprep.subr.mxu1 %v5947_v54 }
 0x219   : > { %5053 = vmatprep.mubr.msk.f32.mxu1 %vm385_vm0, %v891_v30  ;;  %5069 = vmatpush3.msra.mxu1 %v5947_v54  ;;  %v2516_v30 = vadd.f32 %v2514_v24, %v2510_v19 }
 0x21a   : > { %5054 = vmatmul.mubr.msk.f32.gmra.mxu1 %vm385_vm0, %v5045_v26  ;;  %v5062_v31 = vpop.f32.mrf.mxu0  ;;  %5086 = vmatprep.subr.mxu1 %v5912_v43 }
 0x21c   : > { %v1111_v32 = vpop.f32.mrf.mxu0 }
 0x21d   : > { %5070 = vmatprep.mubr.msk.f32.mxu1 %vm385_vm0, %v1111_v32 }
 0x21e   : > { %v5065_v33 = vpop.f32.mrf.mxu0  ;;  %5071 = vmatmul.mubr.msk.f32.vlgmr.msra.gmra.mxu1 %vm385_vm0, %v5062_v31  ;;  %v2520_v31 = vmul.f32 %v2519_v9, %v5888_v11 }
 0x21f   : > { %5087 = vmatpush3.msra.mxu1 %v5912_v43 }
 0x220   : > { %v1121_v34 = vpop.f32.mrf.mxu0  ;;  %5088 = vmatprep.subr.mxu1 %v5922_v48 }
 0x221   : > { %5073 = vmatprep.mubr.msk.f32.mxu1 %vm385_vm0, %v1121_v34  ;;  %5089 = vmatpush3.msra.mxu1 %v5922_v48  ;;  %v2522_v34 = vadd.f32 %v2520_v31, %v2516_v30 }
 0x222   : > { %5074 = vmatmul.mubr.msk.f32.gmra.mxu1 %vm385_vm0, %v5065_v33  ;;  %v5082_v35 = vpop.f32.mrf.mxu0  ;;  %5106 = vmatprep.subr.mxu1 %v6178_v53 }
 0x224   : > { %v1321_v39 = vpop.f32.mrf.mxu0 }
 0x225   : > { %5090 = vmatprep.mubr.msk.f32.mxu1 %vm385_vm0, %v1321_v39 }
 0x226   : > { %v5085_v40 = vpop.f32.mrf.mxu0  ;;  %5091 = vmatmul.mubr.msk.f32.vlgmr.msra.gmra.mxu1 %vm385_vm0, %v5082_v35 }
 0x227   : > { %5107 = vmatpush3.msra.mxu1 %v6178_v53 }
 0x228   : > { %v1331_v41 = vpop.f32.mrf.mxu0  ;;  %5108 = vmatprep.subr.mxu1 %v6182_v55 }
 0x229   : > { %5093 = vmatprep.mubr.msk.f32.mxu1 %vm385_vm0, %v1331_v41  ;;  %5109 = vmatpush3.msra.mxu1 %v6182_v55  ;;  %v2818_v41 = vstv %s4677_s20  ;;  %s6365_s20 = sld [smem:[#allocation8 + $0x32]] }
 0x22a   : > { %5094 = vmatmul.mubr.msk.f32.gmra.mxu1 %vm385_vm0, %v5085_v40  ;;  %v5102_v44 = vpop.f32.mrf.mxu0  ;;  %5126 = vmatprep.subr.mxu1 %v5942_v50  ;;  %v2812_v40 = vstv %s4676_s27  ;;  %s6359_s27 = sld [smem:[#allocation8 + $0x29]] }
 0x22c   : > { %v1531_v47 = vpop.f32.mrf.mxu0 }
 0x22d   : > { %5110 = vmatprep.mubr.msk.f32.mxu1 %vm385_vm0, %v1531_v47  ;;  %v2813_v47 = vmul.f32 %v2812_v40, %v5874_v3 }
 0x22e   : > { %v5105_v51 = vpop.f32.mrf.mxu0  ;;  %5111 = vmatmul.mubr.msk.f32.vlgmr.msra.gmra.mxu1 %vm385_vm0, %v5102_v44  ;;  %v2820_v44 = vmul.f32 %v2818_v41, %v5883_v7  ;;  %v5032_v7 = vpop.f32.mrf.mxu1 }
 0x22f   : > { %5127 = vmatpush3.msra.mxu1 %v5942_v50 }
 0x230   : > { %v1541_v57 = vpop.f32.mrf.mxu0  ;;  %5128 = vmatprep.subr.mxu1 %v5947_v54 }
 0x231   : > { %5113 = vmatprep.mubr.msk.f32.mxu1 %vm385_vm0, %v1541_v57  ;;  %5129 = vmatpush3.msra.mxu1 %v5947_v54  ;;  %v2819_v57 = vmul.f32 %v2818_v41, %v5880_v6 }
 0x232   : > { %5114 = vmatmul.mubr.msk.f32.gmra.mxu1 %vm385_vm0, %v5105_v51  ;;  %v5122_v58 = vpop.f32.mrf.mxu0  ;;  %5146 = vmatprep.subr.mxu1 %v5912_v43  ;;  %v2824_v51 = vstv %s4678_s26  ;;  %s6390_s26 = sld [smem:[#allocation8 + $0x3b]] }
 0x233   : > { %v2826_v52 = vmul.f32 %v2824_v51, %v5891_v12  ;;  %v2825_v60 = vmul.f32 %v2824_v51, %v5888_v11  ;;  %v772_v11 = vpop.f32.mrf.mxu1  ;;  %v3028_v51 = vstv %s6321_s15  ;;  %s6408_s15 = sld [smem:[#allocation8 + $0x2a]] }
 0x234   : > { %v1758_v62 = vpop.f32.mrf.mxu0  ;;  %v773_v31 = vadd.f32 %v772_v11, %v6207_v21  ;;  %v6343_v11 = vld [vmem:[%s5865_s18 + $0x18] sm:$0xff] }
 0x235   : > { %5130 = vmatprep.mubr.msk.f32.mxu1 %vm385_vm0, %v1758_v62 }
 0x236   : > { %v5125_v63 = vpop.f32.mrf.mxu0  ;;  %5131 = vmatmul.mubr.msk.f32.vlgmr.msra.gmra.mxu1 %vm385_vm0, %v5122_v58 }
 0x237   : > { %5147 = vmatpush3.msra.mxu1 %v5912_v43  ;;  %v2521_v43 = vmul.f32 %v2519_v9, %v5891_v12  ;;  %v5035_v12 = vpop.f32.mrf.mxu1 }
 0x238   : > { %v1768_v10 = vpop.f32.mrf.mxu0  ;;  %5148 = vmatprep.subr.mxu1 %v5922_v48 }
 0x239   : > { %5133 = vmatprep.mubr.msk.f32.mxu1 %vm385_vm0, %v1768_v10  ;;  %5149 = vmatpush3.msra.mxu1 %v5922_v48  ;;  %v2523_v26 = vadd.f32 %v2521_v43, %v2517_v16  ;;  %v782_v62 = vpop.f32.mrf.mxu1 }
 0x23a   : > { %5134 = vmatmul.mubr.msk.f32.gmra.mxu1 %vm385_vm0, %v5125_v63  ;;  %v5142_v15 = vpop.f32.mrf.mxu0  ;;  %5166 = vmatprep.subr.mxu1 %v6178_v53 }
 0x23c   : > { %v1968_v17 = vpop.f32.mrf.mxu0 }
 0x23d   : > { %5150 = vmatprep.mubr.msk.f32.mxu1 %vm385_vm0, %v1968_v17 }
 0x23e   : > { %v5145_v25 = vpop.f32.mrf.mxu0  ;;  %5151 = vmatmul.mubr.msk.f32.vlgmr.msra.gmra.mxu1 %vm385_vm0, %v5142_v15 }
 0x23f   : > { %5167 = vmatpush3.msra.mxu1 %v6178_v53 }
 0x240   : > { %v1978_v48 = vpop.f32.mrf.mxu0  ;;  %5168 = vmatprep.subr.mxu1 %v6182_v55 }
 0x241   : > { %5153 = vmatprep.mubr.msk.f32.mxu1 %vm385_vm0, %v1978_v48  ;;  %5169 = vmatpush3.msra.mxu1 %v6182_v55  ;;  %v778_v48 = vadd.f32 %v5032_v7, %v6205_v20  ;;  %v783_v20 = vadd.f32 %v782_v62, %v6211_v23  ;;  %v3034_v62 = vstv %s6325_s30 }
 0x242   : > { %5154 = vmatmul.mubr.msk.f32.gmra.mxu1 %vm385_vm0, %v5145_v25  ;;  %v5162_v32 = vpop.f32.mrf.mxu0  ;;  %5186 = vmatprep.subr.mxu1 %v2523_v26 }
 0x244   : > { %v2178_v33 = vpop.f32.mrf.mxu0 }
 0x245   : > { %5170 = vmatprep.mubr.msk.f32.mxu1 %vm385_vm0, %v2178_v33 }
 0x246   : > { %v5165_v35 = vpop.f32.mrf.mxu0  ;;  %5171 = vmatmul.mubr.msk.f32.vlgmr.msra.gmra.mxu1 %vm385_vm0, %v5162_v32 }
 0x247   : > { %5187 = vmatpush3.msra.mxu1 %v2523_v26 }
 0x248   : > { %v2188_v39 = vpop.f32.mrf.mxu0  ;;  %5188 = vmatprep.subr.mxu1 %v2522_v34 }
 0x249   : > { %5173 = vmatprep.mubr.msk.f32.mxu1 %vm385_vm0, %v2188_v39  ;;  %5189 = vmatpush3.msra.mxu1 %v2522_v34  ;;  %v788_v34 = vadd.f32 %v5035_v12, %v6209_v22  ;;  %v3030_v12 = vmul.f32 %v6343_v11, %v3028_v51 }
 0x24a   : > { %5174 = vmatmul.mubr.msk.f32.gmra.mxu1 %vm385_vm0, %v5165_v35  ;;  %5206 = vmatprep.subr.mxu1 %v5942_v50  ;;  %v5182_v58 = vpop.f32.mrf.mxu0 }
 0x24b   : > { %5190 = vmatprep.mubr.msk.f32.mxu1 %vm385_vm0, %v5855_v0  ;;  %v2806_v0 = vstv %s4675_s29  ;;  %s6354_s29 = sld [smem:[#allocation8 + $0x43]] }
 0x24e   : > { %5191 = vmatmul.mubr.msk.f32.vlgmr.msra.gmra.mxu1 %vm385_vm0, %v5910_v42  ;;  %v2808_v42 = vmul.f32 %v2806_v0, %v5871_v2 }
 0x24f   : > { %5193 = vmatprep.mubr.msk.f32.mxu1 %vm385_vm0, %v5917_v45  ;;  %5207 = vmatpush3.msra.mxu1 %v5942_v50  ;;  %v2814_v45 = vmul.f32 %v2812_v40, %v5877_v5  ;;  %v2479_v5 = vpop.f32.mrf.mxu0 }
 0x250   : > { %5208 = vmatprep.subr.mxu1 %v5947_v54 }
 0x251   : > { %5209 = vmatpush3.msra.mxu1 %v5947_v54  ;;  %v2807_v54 = vmul.f32 %v2806_v0, %v5868_v1  ;;  %v5185_v3 = vpop.f32.mrf.mxu0 }
 0x252   : > { %5194 = vmatmul.mubr.msk.f32.gmra.mxu1 %vm385_vm0, %v5929_v49  ;;  %5226 = vmatprep.subr.mxu1 %v6178_v53  ;;  %v2816_v49 = vadd.f32 %v2814_v45, %v2808_v42 }
 0x253   : > { %v2815_v56 = vadd.f32 %v2813_v47, %v2807_v54  ;;  %5210 = vmatprep.mubr.msk.f32.mxu1 %vm385_vm0, %v2479_v5  ;;  %v2489_v6 = vpop.f32.mrf.mxu0 }
 0x254   : > { %v2822_v59 = vadd.f32 %v2820_v44, %v2816_v49  ;;  %v3022_v49 = vstv %s6319_s13  ;;  %s6403_s13 = sld [smem:[#allocation8 + $0x44]] }
 0x255   : > { %v2821_v2 = vadd.f32 %v2819_v57, %v2815_v56 }
 0x256   : > { %v6305_v61 = vadd.f32 %v2826_v52, %v2822_v59  ;;  %5211 = vmatmul.mubr.msk.f32.vlgmr.msra.gmra.mxu1 %vm385_vm0, %v5182_v58 }
 0x257   : > { %v6308_v1 = vadd.f32 %v2825_v60, %v2821_v2  ;;  %5227 = vmatpush3.msra.mxu1 %v6178_v53  ;;  %5213 = vmatprep.mubr.msk.f32.mxu1 %vm385_vm0, %v2489_v6  ;;  %v6339_v6 = vld [vmem:[%s5865_s18 + $0x8] sm:$0xff] }
 0x258   : > { %5216 = vmatprep.subr.mxu0 %v6305_v61  ;;  %5228 = vmatprep.subr.mxu1 %v6182_v55  ;;  %v3024_v7 = vmul.f32 %v6339_v6, %v3022_v49 }
 0x259   : > { %5229 = vmatpush3.msra.mxu1 %v6182_v55 }
 0x25a   : > { %5214 = vmatmul.mubr.msk.f32.gmra.mxu1 %vm385_vm0, %v5185_v3  ;;  %5246 = vmatprep.subr.mxu1 %v5942_v50 }
 0x2d6   : > { %v5052_v63 = vpop.f32.mrf.mxu1 }
 0x2d7   : > { %v1001_v32 = vadd.f32 %v5052_v63, %v778_v48 }
 0x2d8   : > { %v981_v4 = vpop.f32.mrf.mxu1 }
 0x2d9   : > { %v1000_v35 = vadd.f32 %v981_v4, %v773_v31 }
 0x2da   : > { %v5055_v8 = vpop.f32.mrf.mxu1 }
 0x2db   : > { %v1003_v42 = vadd.f32 %v5055_v8, %v788_v34  ;;  %v6372_v34 = vld [vmem:[%s5865_s18 + $0x10] sm:$0xff] }
 0x2dc   : > { %v991_v9 = vpop.f32.mrf.mxu1 }
 0x2dd   : > { %v1002_v21 = vadd.f32 %v991_v9, %v783_v20 }
 0x2de   : > { %v5072_v53 = vpop.f32.mrf.mxu1 }
 0x2df   : > { %v1228_v39 = vadd.f32 %v5072_v53, %v1001_v32  ;;  %v2299_v53 = vstv %s6328_s7  ;;  %v6368_v32 = vld [vmem:[%s5865_s18] sm:$0xff]  ;;  %s6474_s7 = sld [smem:[#allocation8 + $0x2c]] }
 0x2e0   : > { %v1208_v10 = vpop.f32.mrf.mxu1 }
 0x2e1   : > { %v1227_v40 = vadd.f32 %v1208_v10, %v1000_v35  ;;  %v3029_v35 = vmul.f32 %v6372_v34, %v3028_v51 }
 0x2e2   : > { %v5075_v13 = vpop.f32.mrf.mxu1 }
 0x2e3   : > { %v1230_v44 = vadd.f32 %v5075_v13, %v1003_v42 }
 0x2e4   : > { %v1218_v14 = vpop.f32.mrf.mxu1 }
 0x2e5   : > { %v1229_v23 = vadd.f32 %v1218_v14, %v1002_v21 }
 0x2e6   : > { %v5092_v15 = vpop.f32.mrf.mxu1 }
 0x2e7   : > { %v1438_v45 = vadd.f32 %v5092_v15, %v1228_v39 }
 0x2e8   : > { %v1418_v16 = vpop.f32.mrf.mxu1 }
 0x2e9   : > { %v1437_v22 = vadd.f32 %v1418_v16, %v1227_v40  ;;  %v6351_v16 = vld [vmem:[%s5865_s18 + $0x28] sm:$0xff]  ;;  %v6378_v40 = vld [vmem:[%s5865_s18 + $0x38] sm:$0xff] }
 0x2ea   : > { %v5095_v43 = vpop.f32.mrf.mxu1 }
 0x2eb   : > { %v1440_v52 = vadd.f32 %v5095_v43, %v1230_v44  ;;  %v3036_v43 = vmul.f32 %v6351_v16, %v3034_v62 }
 0x2ec   : > { %v1428_v55 = vpop.f32.mrf.mxu1 }
 0x2ed   : > { %v1439_v59 = vadd.f32 %v1428_v55, %v1229_v23 }
 0x2ee   : > { %v5112_v17 = vpop.f32.mrf.mxu1 }
 0x2ef   : > { %v1648_v54 = vadd.f32 %v5112_v17, %v1438_v45  ;;  %v3032_v17 = vadd.f32 %v3030_v12, %v3024_v7  ;;  %v3262_v7 = vstv %s6354_s29  ;;  %s6442_s29 = sld [smem:[#allocation8 + $0x2b]] }
 0x2f0   : > { %v1628_v19 = vpop.f32.mrf.mxu1 }
 0x2f1   : > { %v1647_v56 = vadd.f32 %v1628_v19, %v1437_v22  ;;  %v3040_v19 = vstv %s6330_s9  ;;  %v3038_v42 = vadd.f32 %v3036_v43, %v3032_v17  ;;  %v3466_v17 = vstv %s6390_s26  ;;  %s6431_s9 = sld [smem:[#allocation8 + $0x3c]] }
 0x2f2   : > { %v5115_v24 = vpop.f32.mrf.mxu1  ;;  %v3042_v45 = vmul.f32 %v6378_v40, %v3040_v19  ;;  %s6450_s26 = sld [smem:[#allocation8 + $0x34]] }
 0x2f3   : > { %v1650_v2 = vadd.f32 %v5115_v24, %v1440_v52  ;;  %v3244_v24 = vstv %s6332_s10  ;;  %v6393_v52 = vld [vmem:[%s5865_s18 + $0x20] sm:$0xff]  ;;  %s6434_s10 = sld [smem:[#allocation8 + $0x45]] }
 0x2f4   : > { %v1638_v50 = vpop.f32.mrf.mxu1 }
 0x2f5   : > { %v1649_v63 = vadd.f32 %v1638_v50, %v1439_v59  ;;  %v3250_v50 = vstv %s6336_s17 }
 0x2f6   : > { %v5132_v25 = vpop.f32.mrf.mxu1  ;;  %v3252_v21 = vmul.f32 %v6343_v11, %v3250_v50 }
 0x2f7   : > { %v1875_v57 = vadd.f32 %v5132_v25, %v1648_v54 }
 0x2f8   : > { %v1855_v26 = vpop.f32.mrf.mxu1 }
 0x2f9   : > { %v1874_v60 = vadd.f32 %v1855_v26, %v1647_v56  ;;  %v3035_v56 = vmul.f32 %v6393_v52, %v3034_v62  ;;  %v3044_v62 = vadd.f32 %v3042_v45, %v3038_v42 }
 0x2fa   : > { %v5135_v30 = vpop.f32.mrf.mxu1 }
 0x2fb   : > { %v1877_v4 = vadd.f32 %v5135_v30, %v1650_v2 }
 0x2fc   : > { %v1865_v33 = vpop.f32.mrf.mxu1 }
 0x2fd   : > { %v1876_v13 = vadd.f32 %v1865_v33, %v1649_v63  ;;  %v3023_v33 = vmul.f32 %v6368_v32, %v3022_v49  ;;  %v3454_v63 = vstv %s6359_s27  ;;  %s4529_s27 = sshll.u32 %s5829_s16, 7 }
 0x2fe   : > { %v5152_v0 = vpop.f32.mrf.mxu1  ;;  %v3455_v45 = vmul.f32 %v6368_v32, %v3454_v63 }
 0x2ff   : > { %v2085_v5 = vadd.f32 %v5152_v0, %v1875_v57  ;;  %v3031_v23 = vadd.f32 %v3029_v35, %v3023_v33  ;;  %v3472_v33 = vstv %s6403_s13  ;;  %v5463_v35 = vld [vmem:[%s6733_s2 + $0x10] sm:$0xff] }
 0x300   : > { %v2065_v41 = vpop.f32.mrf.mxu1 }
 0x301   : > { %v2084_v8 = vadd.f32 %v2065_v41, %v1874_v60  ;;  %v3246_v41 = vmul.f32 %v6339_v6, %v3244_v24 }
 0x302   : > { %v5155_v47 = vpop.f32.mrf.mxu1 }
 0x303   : > { %v2087_v14 = vadd.f32 %v5155_v47, %v1877_v4  ;;  %v3256_v47 = vstv %s6347_s14  ;;  %v3460_v4 = vstv %s6365_s20  ;;  %s6495_s14 = sld [smem:[#allocation8 + $0x3e]] }
 0x304   : > { %v2075_v58 = vpop.f32.mrf.mxu1  ;;  %v3462_v43 = vmul.f32 %v6343_v11, %v3460_v4  ;;  %s6508_s20 = sld [smem:[#allocation8 + $0x47]] }
 0x305   : > { %v2086_v25 = vadd.f32 %v2075_v58, %v1876_v13  ;;  %v6400_v58 = vld [vmem:[%s5865_s18 + $0x30] sm:$0xff]  ;;  %s6415_s18 = sld [smem:[#allocation8 + $0x33]]  ;;  %v3251_v13 = vmul.f32 %v6372_v34, %v3250_v50  ;;  %v5462_v50 = vld [vmem:[%s6733_s2 + $0x8] sm:$0xff] }
 0x306   : > { %v5172_v3 = vpop.f32.mrf.mxu1  ;;  %v3041_v59 = vmul.f32 %v6400_v58, %v3040_v19  ;;  %v3263_v42 = vmul.f32 %v6400_v58, %v3262_v7 }
 0x307   : > { %v2295_v9 = vadd.f32 %v5172_v3, %v2085_v5  ;;  %v3254_v5 = vadd.f32 %v3252_v21, %v3246_v41  ;;  %v3258_v3 = vmul.f32 %v6351_v16, %v3256_v47  ;;  %v3461_v41 = vmul.f32 %v6372_v34, %v3460_v4 }
 0x308   : > { %v2275_v10 = vpop.f32.mrf.mxu1  ;;  %v3474_v21 = vmul.f32 %v6378_v40, %v3472_v33 }
 0x309   : > { %v2294_v15 = vadd.f32 %v2275_v10, %v2084_v8  ;;  %v6361_v26 = vadd.f32 %v2299_v53, %v2295_v9  ;;  %v3245_v10 = vmul.f32 %v6368_v32, %v3244_v24  ;;  %v3257_v24 = vmul.f32 %v6393_v52, %v3256_v47 }
 0x30a   : > { %v5175_v55 = vpop.f32.mrf.mxu1 }
 0x30b   : > { %v6363_v48 = vadd.f32 %v2299_v53, %v2294_v15  ;;  %v2297_v30 = vadd.f32 %v5175_v55, %v2087_v14  ;;  %v2305_v44 = vsel %vm340_vm1, %v6361_v26, 0.0  ;;  %v3260_v14 = vadd.f32 %v3258_v3, %v3254_v5  ;;  %v5461_v55 = vld [vmem:[%s6733_s2] sm:$0xff] }
 0x30c   : > { %v2285_v31 = vpop.f32.mrf.mxu1  ;;  %v3456_v15 = vmul.f32 %v6339_v6, %v3454_v63  ;;  %v3253_v19 = vadd.f32 %v3251_v13, %v3245_v10  ;;  %v3686_v3 = vstv %s6434_s10  ;;  %v5465_v10 = vld [vmem:[%s6733_s2 + $0x20] sm:$0xff] }
 0x30d   : > { %v2304_v39 = vsel %vm340_vm1, %v6363_v48, 0.0  ;;  %v2296_v0 = vadd.f32 %v2285_v31, %v2086_v25  ;;  %v6385_v22 = vadd.f32 %v2299_v53, %v2297_v30  ;;  %v3468_v31 = vmul.f32 %v6351_v16, %v3466_v17 }
 0x30e   : > { %v5192_v20 = vpop.f32.mrf.mxu1  ;;  %v2306_v51 = vadd.f32 %v2305_v44, %v2304_v39  ;;  %v3464_v30 = vadd.f32 %v3462_v43, %v3456_v15  ;;  %v3668_v39 = vstv %s6408_s15  ;;  %v5464_v44 = vld [vmem:[%s6733_s2 + $0x18] sm:$0xff]  ;;  %s6465_s15 = sld [smem:[#allocation8 + $0x3d]] }
 0x30f   : > { %v6387_v54 = vadd.f32 %v2299_v53, %v2296_v0  ;;  %v2309_v12 = vsel %vm340_vm1, %v6385_v22, 0.0  ;;  %v3037_v53 = vadd.f32 %v3035_v56, %v3031_v23  ;;  %v3674_v0 = vstv %s6415_s18  ;;  %s6468_s18 = sld [smem:[#allocation8 + $0x46]] }
 0x310   : > { %v2590_v49 = vpop.f32.mrf.mxu1  ;;  %v3470_v47 = vadd.f32 %v3468_v31, %v3464_v30  ;;  %v3680_v23 = vstv %s6431_s9  ;;  %s6480_s9 = sld [smem:[#allocation8 + $0x35]]  ;;  %v3669_v63 = vmul.f32 %v6368_v32, %v3668_v39  ;;  %v3675_v4 = vmul.f32 %v6372_v34, %v3674_v0 }
 0x311   : > { %5200 = vmatprep.mubr.msk.f32.mxu0 %vm385_vm0, %v2590_v49  ;;  %v2307_v57 = vsel %vm340_vm1, %v6387_v54, 0.0  ;;  %v3670_v49 = vmul.f32 %v6339_v6, %v3668_v39  ;;  %v3682_v5 = vmul.f32 %v6351_v16, %v3680_v23  ;;  %v3681_v15 = vmul.f32 %v6393_v52, %v3680_v23 }
 0x312   : > { %v5195_v2 = vpop.f32.mrf.mxu1  ;;  %5201 = vmatmul.mubr.msk.f32.vlgmr.msra.gmra.mxu0 %vm385_vm0, %v5192_v20  ;;  %v2308_v60 = vadd.f32 %v2307_v57, %v2306_v51  ;;  %v3259_v20 = vadd.f32 %v3257_v24, %v3253_v19  ;;  %v3676_v51 = vmul.f32 %v6343_v11, %v3674_v0  ;;  %v3463_v57 = vadd.f32 %v3461_v41, %v3455_v45  ;;  %v5466_v19 = vld [vmem:[%s6733_s2 + $0x30] sm:$0xff] }
 0x313   : > { %5217 = vmatpush3.msra.mxu0 %v6305_v61  ;;  %v3264_v61 = vmul.f32 %v6378_v40, %v3262_v7  ;;  %v3896_v7 = vstv %s6450_s26  ;;  %v4100_v24 = vstv %s6474_s7 }
 0x314   : > { %v2600_v8 = vpop.f32.mrf.mxu1  ;;  %5218 = vmatprep.subr.mxu0 %v6308_v1  ;;  %v2310_v9 = vadd.f32 %v2309_v12, %v2308_v60  ;;  %v3265_v56 = vadd.f32 %v3263_v42, %v3259_v20  ;;  %v3678_v60 = vadd.f32 %v3676_v51, %v3670_v49  ;;  %v3902_v13 = vstv %s6465_s15 }
 0x315   : > { %5203 = vmatprep.mubr.msk.f32.mxu0 %vm385_vm0, %v2600_v8  ;;  %5219 = vmatpush3.msra.mxu0 %v6308_v1  ;;  %v3043_v1 = vadd.f32 %v3041_v59, %v3037_v53  ;;  %v3266_v25 = vadd.f32 %v3264_v61, %v3260_v14  ;;  %v3467_v59 = vmul.f32 %v6393_v52, %v3466_v17  ;;  %v4112_v20 = vstv %s6495_s14  ;;  %s4767_s14 = sld [smem:[#allocation9 + $0x1]] }
 0x316   : > { %5204 = vmatmul.mubr.msk.f32.gmra.mxu0 %vm385_vm0, %v5195_v2  ;;  %2311 = vadd.xlane.f32.xlu0 %v2310_v9  ;;  %v3476_v2 = vadd.f32 %v3474_v21, %v3470_v47  ;;  %v3688_v8 = vmul.f32 %v6378_v40, %v3686_v3  ;;  %v3898_v53 = vmul.f32 %v6343_v11, %v3896_v7  ;;  %v5467_v21 = vld [vmem:[%s6733_s2 + $0x28] sm:$0xff] }
 0x317   : > { %5220 = vmatprep.mubr.msk.f32.mxu0 %vm385_vm0, %v5461_v55  ;;  %5236 = vmatprep.subr.mxu0 %v3044_v62  ;;  %v3469_v12 = vadd.f32 %v3467_v59, %v3463_v57  ;;  %v3677_v14 = vadd.f32 %v3675_v4, %v3669_v63  ;;  %v3904_v17 = vmul.f32 %v6351_v16, %v3902_v13 }
 0x318   : > { %v3897_v31 = vmul.f32 %v6372_v34, %v3896_v7  ;;  %v4102_v39 = vmul.f32 %v6339_v6, %v4100_v24  ;;  %v3903_v41 = vmul.f32 %v6393_v52, %v3902_v13  ;;  %v4114_v47 = vmul.f32 %v6351_v16, %v4112_v20 }
 0x319   : > { %v4101_v51 = vmul.f32 %v6368_v32, %v4100_v24 }
 0x31a   : > { %5221 = vmatmul.mubr.msk.f32.vlgmr.msra.gmra.mxu0 %vm385_vm0, %v5462_v50  ;;  %v4106_v50 = vstv %s6480_s9 }
 0x31b   : > { %5237 = vmatpush3.msra.mxu0 %v3044_v62  ;;  %5223 = vmatprep.mubr.msk.f32.mxu0 %vm385_vm0, %v5463_v35  ;;  %v3473_v62 = vmul.f32 %v6400_v58, %v3472_v33  ;;  %v4108_v0 = vmul.f32 %v6343_v11, %v4106_v50  ;;  %v4107_v23 = vmul.f32 %v6372_v34, %v4106_v50 }
 0x31c   : > { %5238 = vmatprep.subr.mxu0 %v3043_v1 }
 0x31d   : > { %5239 = vmatpush3.msra.mxu0 %v3043_v1  ;;  %v3475_v61 = vadd.f32 %v3473_v62, %v3469_v12  ;;  %v3908_v1 = vstv %s6468_s18 }
 0x31e   : > { %5224 = vmatmul.mubr.msk.f32.gmra.mxu0 %vm385_vm0, %v5464_v44  ;;  %5256 = vmatprep.subr.mxu0 %v3266_v25  ;;  %v3910_v33 = vmul.f32 %v6378_v40, %v3908_v1  ;;  %v4110_v44 = vadd.f32 %v4108_v0, %v4102_v39  ;;  %v3909_v49 = vmul.f32 %v6400_v58, %v3908_v1  ;;  %v5473_v0 = vld [vmem:[#allocation6 + $0x28] sm:$0xff] }
 0x31f   : > { %5240 = vmatprep.mubr.msk.f32.mxu0 %vm385_vm0, %v6037_v18  ;;  %v3890_v18 = vstv %s6442_s29 }
 0x320   : > { %v3892_v9 = vmul.f32 %v6339_v6, %v3890_v18  ;;  %v3891_v30 = vmul.f32 %v6368_v32, %v3890_v18  ;;  %v4118_v6 = vstv %s6508_s20  ;;  %v4116_v16 = vadd.f32 %v4114_v47, %v4110_v44  ;;  %s6635_s20 = scalar_lea.vmem [#allocation11], %s4529_s27  ;;  %s5643_s27 = smov [#allocation11]  }
 0x321   : > { %v4120_v57 = vmul.f32 %v6378_v40, %v4118_v6  ;;  %v4113_v32 = vmul.f32 %v6393_v52, %v4112_v20 }
 0x322   : > { %5241 = vmatmul.mubr.msk.f32.vlgmr.msra.gmra.mxu0 %vm385_vm0, %v6052_v27  ;;  %v3900_v55 = vadd.f32 %v3898_v53, %v3892_v9  ;;  %v3899_v45 = vadd.f32 %v3897_v31, %v3891_v30  ;;  %v5472_v30 = vld [vmem:[#allocation6 + $0x10] sm:$0xff] }
 0x323   : > { %5257 = vmatpush3.msra.mxu0 %v3266_v25  ;;  %5243 = vmatprep.mubr.msk.f32.mxu0 %vm385_vm0, %v6060_v29  ;;  %v3684_v29 = vadd.f32 %v3682_v5, %v3678_v60  ;;  %v3683_v25 = vadd.f32 %v3681_v15, %v3677_v14  ;;  %v4122_v34 = vadd.f32 %v4120_v57, %v4116_v16 }
 0x324   : > { %5258 = vmatprep.subr.mxu0 %v3265_v56  ;;  %v3906_v35 = vadd.f32 %v3904_v17, %v3900_v55  ;;  %v3905_v11 = vadd.f32 %v3903_v41, %v3899_v45  ;;  %v4119_v5 = vmul.f32 %v6400_v58, %v4118_v6  ;;  %v5471_v17 = vld [vmem:[#allocation6 + $0x18] sm:$0xff]  ;;  %v5474_v41 = vld [vmem:[#allocation6 + $0x20] sm:$0xff] }
 0x325   : > { %5259 = vmatpush3.msra.mxu0 %v3265_v56  ;;  %v3690_v43 = vadd.f32 %v3688_v8, %v3684_v29  ;;  %v5468_v56 = vld [vmem:[%s6733_s2 + $0x38] sm:$0xff]  ;;  %v5469_v29 = vld [vmem:[#allocation6 + $0x8] sm:$0xff] }
 0x326   : > { %5244 = vmatmul.mubr.msk.f32.gmra.mxu0 %vm385_vm0, %v6076_v37  ;;  %5276 = vmatprep.subr.mxu0 %v3476_v2  ;;  %v3911_v59 = vadd.f32 %v3909_v49, %v3905_v11 }
 0x327   : > { %5260 = vmatprep.mubr.msk.f32.mxu0 %vm385_vm0, %v5465_v10 }
 0x32a   : > { %5261 = vmatmul.mubr.msk.f32.vlgmr.msra.gmra.mxu0 %vm385_vm0, %v6052_v27  ;;  %v3687_v27 = vmul.f32 %v6400_v58, %v3686_v3 }
 0x32b   : > { %5277 = vmatpush3.msra.mxu0 %v3476_v2  ;;  %5263 = vmatprep.mubr.msk.f32.mxu0 %vm385_vm0, %v5466_v19  ;;  %v4109_v2 = vadd.f32 %v4107_v23, %v4101_v51 }
 0x32c   : > { %5278 = vmatprep.subr.mxu0 %v3475_v61  ;;  %v3689_v42 = vadd.f32 %v3687_v27, %v3683_v25 }
 0x32d   : > { %5279 = vmatpush3.msra.mxu0 %v3475_v61  ;;  %v4115_v60 = vadd.f32 %v4113_v32, %v4109_v2 }
 0x32e   : > { %5264 = vmatmul.mubr.msk.f32.gmra.mxu0 %vm385_vm0, %v6076_v37  ;;  %5296 = vmatprep.subr.mxu0 %v3690_v43  ;;  %v3912_v37 = vadd.f32 %v3910_v33, %v3906_v35 }
 0x32f   : > { %5280 = vmatprep.mubr.msk.f32.mxu0 %vm385_vm0, %v5465_v10  ;;  %v4121_v40 = vadd.f32 %v4119_v5, %v4115_v60  ;;  %v5470_v10 = vld [vmem:[#allocation6] sm:$0xff] }
 0x332   : > { %5281 = vmatmul.mubr.msk.f32.vlgmr.msra.gmra.mxu0 %vm385_vm0, %v5467_v21 }
 0x333   : > { %5297 = vmatpush3.msra.mxu0 %v3690_v43  ;;  %5283 = vmatprep.mubr.msk.f32.mxu0 %vm385_vm0, %v5466_v19 }
 0x334   : > { %5298 = vmatprep.subr.mxu0 %v3689_v42 }
 0x335   : > { %5299 = vmatpush3.msra.mxu0 %v3689_v42 }
 0x336   : > { %5284 = vmatmul.mubr.msk.f32.gmra.mxu0 %vm385_vm0, %v5468_v56  ;;  %5316 = vmatprep.subr.mxu0 %v3912_v37 }
 0x337   : > { %5300 = vmatprep.mubr.msk.f32.mxu0 %vm385_vm0, %v6127_v28 }
 0x33a   : > { %5301 = vmatmul.mubr.msk.f32.vlgmr.msra.gmra.mxu0 %vm385_vm0, %v6140_v36 }
 0x33b   : > { %5317 = vmatpush3.msra.mxu0 %v3912_v37  ;;  %5303 = vmatprep.mubr.msk.f32.mxu0 %vm385_vm0, %v6145_v38 }
 0x33c   : > { %5318 = vmatprep.subr.mxu0 %v3911_v59 }
 0x33d   : > { %5319 = vmatpush3.msra.mxu0 %v3911_v59 }
 0x33e   : > { %5304 = vmatmul.mubr.msk.f32.gmra.mxu0 %vm385_vm0, %v6155_v46  ;;  %5336 = vmatprep.subr.mxu0 %v4122_v34 }
 0x33f   : > { %5320 = vmatprep.mubr.msk.f32.mxu0 %vm385_vm0, %v6127_v28 }
 0x342   : > { %5321 = vmatmul.mubr.msk.f32.vlgmr.msra.gmra.mxu0 %vm385_vm0, %v6140_v36 }
 0x343   : > { %5337 = vmatpush3.msra.mxu0 %v4122_v34  ;;  %5323 = vmatprep.mubr.msk.f32.mxu0 %vm385_vm0, %v6145_v38 }
 0x344   : > { %5338 = vmatprep.subr.mxu0 %v4121_v40 }
 0x345   : > { %5339 = vmatpush3.msra.mxu0 %v4121_v40 }
 0x346   : > { %5324 = vmatmul.mubr.msk.f32.gmra.mxu0 %vm385_vm0, %v6155_v46 }
 0x347   : > { %5340 = vmatprep.mubr.msk.f32.mxu0 %vm385_vm0, %v6127_v28 }
 0x34a   : > { %5341 = vmatmul.mubr.msk.f32.vlgmr.msra.gmra.mxu0 %vm385_vm0, %v6140_v36 }
 0x34b   : > { %5343 = vmatprep.mubr.msk.f32.mxu0 %vm385_vm0, %v6145_v38 }
 0x34e   : > { %5344 = vmatmul.mubr.msk.f32.gmra.mxu0 %vm385_vm0, %v6155_v46 }
 0x39f   : > { %v2312_v52 = vpop.xlane.xlu0 %2311 }
 0x3a0   : > { %v2313_v58 = vrot.slane %v2312_v52, 4 }
 0x3a2   : > { %v2314_v3 = vadd.f32 %v2313_v58, %v2312_v52 }
 0x3a4   : > { %v2315_v18 = vrot.slane %v2314_v3, 2 }
 0x3a6   : > { %v2316_v7 = vadd.f32 %v2315_v18, %v2314_v3 }
 0x3a8   : > { %v2317_v12 = vrot.slane %v2316_v7, 1 }
 0x3aa   : > { %v2318_v62 = vadd.f32 %v2317_v12, %v2316_v7  ;;  %v5212_v7 = vpop.f32.mrf.mxu1 }
 0x3ac   : > { %5356 = vpush %v2318_v62  ;;  %v2786_v12 = vpop.f32.mrf.mxu1 }
 0x3ae   : > { %v5215_v62 = vpop.f32.mrf.mxu1 }
 0x3d2   : > { %v6562_v63 = vpop.f32.mrf.mxu0 }
 0x3d4   : > { %v6564_v28 = vpop.f32.mrf.mxu0 }
 0x3d6   : > { %v6566_v4 = vpop.f32.mrf.mxu0 }
 0x3d8   : > { %v6568_v36 = vpop.f32.mrf.mxu0 }
 0x3da   : > { %v5222_v38 = vpop.f32.mrf.mxu0 }
 0x3dc   : > { %v2895_v8 = vpop.f32.mrf.mxu0 }
 0x3dd   : > { %s5357_s18 = spop %5356  ;;  %5230 = vmatprep.mubr.msk.f32.mxu1 %vm385_vm0, %v2895_v8 }
 0x3de   : > { %s2320_s7 = smul.f32 0.0009765625, %s5357_s18  ;;  %v5225_v46 = vpop.f32.mrf.mxu0  ;;  %5231 = vmatmul.mubr.msk.f32.vlgmr.msra.gmra.mxu1 %vm385_vm0, %v5222_v38  ;;  %v2796_v38 = vpop.f32.mrf.mxu1 }
 0x3df   : > { %5247 = vmatpush3.msra.mxu1 %v5469_v29 }
 0x3e0   : > { %v2321_v9 = vstv %s2320_s7  ;;  %v2905_v53 = vpop.f32.mrf.mxu0  ;;  %5248 = vmatprep.subr.mxu1 %v5470_v10  ;;  %s4779_s7 = sshll.u32 %s5702_s25, 11  ;;  %s4385_s25 = scalar_lea.sflag [#allocation4], %s5829_s16 }
 0x3e1   : > { %v6573_v13 = vsub.f32 %v6363_v48, %v2321_v9  ;;  %v6576_v61 = vsub.f32 %v6361_v26, %v2321_v9  ;;  %v6579_v14 = vsub.f32 %v6387_v54, %v2321_v9  ;;  %v6582_v15 = vsub.f32 %v6385_v22, %v2321_v9  ;;  %5233 = vmatprep.mubr.msk.f32.mxu1 %vm385_vm0, %v2905_v53 }
 0x3e2   : > { %5234 = vmatmul.mubr.msk.f32.gmra.mxu1 %vm385_vm0, %v5225_v46  ;;  %v5242_v43 = vpop.f32.mrf.mxu0 }
 0x3e3   : > { %v2326_v55 = vmul.f32 %v6573_v13, %v6573_v13  ;;  %v2327_v48 = vmul.f32 %v6576_v61, %v6576_v61  ;;  %5249 = vmatpush3.msra.mxu1 %v5470_v10  ;;  %v2328_v26 = vmul.f32 %v6579_v14, %v6579_v14  ;;  %v2329_v22 = vmul.f32 %v6582_v15, %v6582_v15 }
 0x3e4   : > { %v3123_v54 = vpop.f32.mrf.mxu0  ;;  %5266 = vmatprep.subr.mxu1 %v5471_v17 }
 0x3e5   : > { %5250 = vmatprep.mubr.msk.f32.mxu1 %vm385_vm0, %v3123_v54  ;;  %v2330_v1 = vsel %vm340_vm1, %v2326_v55, 0.0  ;;  %v2331_v19 = vsel %vm340_vm1, %v2327_v48, 0.0  ;;  %v2333_v25 = vsel %vm340_vm1, %v2328_v26, 0.0  ;;  %v2335_v33 = vsel %vm340_vm1, %v2329_v22, 0.0 }
 0x3e6   : > { %v5245_v24 = vpop.f32.mrf.mxu0  ;;  %5251 = vmatmul.mubr.msk.f32.vlgmr.msra.gmra.mxu1 %vm385_vm0, %v5242_v43  ;;  %v2332_v50 = vadd.f32 %v2331_v19, %v2330_v1 }
 0x3e7   : > { %5267 = vmatpush3.msra.mxu1 %v5471_v17 }
 0x3e8   : > { %v3133_v27 = vpop.f32.mrf.mxu0  ;;  %5268 = vmatprep.subr.mxu1 %v5472_v30  ;;  %v2334_v31 = vadd.f32 %v2333_v25, %v2332_v50 }
 0x3e9   : > { %5253 = vmatprep.mubr.msk.f32.mxu1 %vm385_vm0, %v3133_v27  ;;  %5269 = vmatpush3.msra.mxu1 %v5472_v30 }
 0x3ea   : > { %5254 = vmatmul.mubr.msk.f32.gmra.mxu1 %vm385_vm0, %v5245_v24  ;;  %v5262_v35 = vpop.f32.mrf.mxu0  ;;  %v2336_v39 = vadd.f32 %v2335_v33, %v2334_v31  ;;  %5286 = vmatprep.subr.mxu1 %v5473_v0  ;;  %v2787_v33 = vadd.f32 %v2786_v12, %v6564_v28 }
 0x3ec   : > { %v3333_v20 = vpop.f32.mrf.mxu0  ;;  %2337 = vadd.xlane.f32.xlu0 %v2336_v39 }
 0x3ed   : > { %5270 = vmatprep.mubr.msk.f32.mxu1 %vm385_vm0, %v3333_v20 }
 0x3ee   : > { %v5265_v42 = vpop.f32.mrf.mxu0  ;;  %5271 = vmatmul.mubr.msk.f32.vlgmr.msra.gmra.mxu1 %vm385_vm0, %v5262_v35 }
 0x3ef   : > { %5287 = vmatpush3.msra.mxu1 %v5473_v0 }
 0x3f0   : > { %v3343_v45 = vpop.f32.mrf.mxu0  ;;  %5288 = vmatprep.subr.mxu1 %v5474_v41 }
 0x3f1   : > { %5273 = vmatprep.mubr.msk.f32.mxu1 %vm385_vm0, %v3343_v45  ;;  %5289 = vmatpush3.msra.mxu1 %v5474_v41 }
 0x3f2   : > { %5274 = vmatmul.mubr.msk.f32.gmra.mxu1 %vm385_vm0, %v5265_v42  ;;  %v5282_v21 = vpop.f32.mrf.mxu0  ;;  %5306 = vmatprep.subr.mxu1 %v5469_v29 }
 0x3f4   : > { %v3543_v37 = vpop.f32.mrf.mxu0 }
 0x3f5   : > { %5290 = vmatprep.mubr.msk.f32.mxu1 %vm385_vm0, %v3543_v37 }
 0x3f6   : > { %v5285_v44 = vpop.f32.mrf.mxu0  ;;  %5291 = vmatmul.mubr.msk.f32.vlgmr.msra.gmra.mxu1 %vm385_vm0, %v5282_v21  ;;  %v2797_v21 = vadd.f32 %v2796_v38, %v6568_v36 }
 0x3f7   : > { %5307 = vmatpush3.msra.mxu1 %v5469_v29 }
 0x3f8   : > { %v3553_v47 = vpop.f32.mrf.mxu0  ;;  %5308 = vmatprep.subr.mxu1 %v5470_v10 }
 0x3f9   : > { %5293 = vmatprep.mubr.msk.f32.mxu1 %vm385_vm0, %v3553_v47  ;;  %5309 = vmatpush3.msra.mxu1 %v5470_v10 }
 0x3fa   : > { %5294 = vmatmul.mubr.msk.f32.gmra.mxu1 %vm385_vm0, %v5285_v44  ;;  %v5302_v6 = vpop.f32.mrf.mxu0  ;;  %5326 = vmatprep.subr.mxu1 %v5471_v17 }
 0x3fc   : > { %v3769_v11 = vpop.f32.mrf.mxu0 }
 0x3fd   : > { %5310 = vmatprep.mubr.msk.f32.mxu1 %vm385_vm0, %v3769_v11 }
 0x3fe   : > { %v5305_v49 = vpop.f32.mrf.mxu0  ;;  %5311 = vmatmul.mubr.msk.f32.vlgmr.msra.gmra.mxu1 %vm385_vm0, %v5302_v6 }
 0x3ff   : > { %5327 = vmatpush3.msra.mxu1 %v5471_v17 }
 0x400   : > { %v3779_v51 = vpop.f32.mrf.mxu0  ;;  %5328 = vmatprep.subr.mxu1 %v5472_v30 }
 0x401   : > { %5313 = vmatprep.mubr.msk.f32.mxu1 %vm385_vm0, %v3779_v51  ;;  %5329 = vmatpush3.msra.mxu1 %v5472_v30  ;;  %v2792_v30 = vadd.f32 %v5212_v7, %v6562_v63 }
 0x402   : > { %5314 = vmatmul.mubr.msk.f32.gmra.mxu1 %vm385_vm0, %v5305_v49  ;;  %v5322_v23 = vpop.f32.mrf.mxu0  ;;  %5346 = vmatprep.subr.mxu1 %v5473_v0 }
 0x404   : > { %v3979_v56 = vpop.f32.mrf.mxu0 }
 0x405   : > { %5330 = vmatprep.mubr.msk.f32.mxu1 %vm385_vm0, %v3979_v56 }
 0x406   : > { %v5325_v16 = vpop.f32.mrf.mxu0  ;;  %5331 = vmatmul.mubr.msk.f32.vlgmr.msra.gmra.mxu1 %vm385_vm0, %v5322_v23 }
 0x407   : > { %5347 = vmatpush3.msra.mxu1 %v5473_v0  ;;  %v2802_v0 = vadd.f32 %v5215_v62, %v6566_v4 }
 0x408   : > { %v3989_v57 = vpop.f32.mrf.mxu0  ;;  %5348 = vmatprep.subr.mxu1 %v5474_v41 }
 0x409   : > { %5333 = vmatprep.mubr.msk.f32.mxu1 %vm385_vm0, %v3989_v57  ;;  %5349 = vmatpush3.msra.mxu1 %v5474_v41 }
 0x40a   : > { %5334 = vmatmul.mubr.msk.f32.gmra.mxu1 %vm385_vm0, %v5325_v16  ;;  %v5342_v59 = vpop.f32.mrf.mxu0 }
 0x40c   : > { %v4189_v2 = vpop.f32.mrf.mxu0 }
 0x40d   : > { %5350 = vmatprep.mubr.msk.f32.mxu1 %vm385_vm0, %v4189_v2 }
 0x40e   : > { %v5345_v32 = vpop.f32.mrf.mxu0  ;;  %5351 = vmatmul.mubr.msk.f32.vlgmr.msra.gmra.mxu1 %vm385_vm0, %v5342_v59 }
 0x410   : > { %v4199_v34 = vpop.f32.mrf.mxu0 }
 0x411   : > { %5353 = vmatprep.mubr.msk.f32.mxu1 %vm385_vm0, %v4199_v34 }
 0x412   : > { %5354 = vmatmul.mubr.msk.f32.gmra.mxu1 %vm385_vm0, %v5345_v32 }
 0x475   : > { %v2338_v60 = vpop.xlane.xlu0 %2337 }
 0x476   : > { %v2339_v5 = vrot.slane %v2338_v60, 4 }
 0x478   : > { %v2340_v40 = vadd.f32 %v2339_v5, %v2338_v60 }
 0x47a   : > { %v2341_v52 = vrot.slane %v2340_v40, 2 }
 0x47c   : > { %v2342_v58 = vadd.f32 %v2341_v52, %v2340_v40 }
 0x47e   : > { %v2343_v3 = vrot.slane %v2342_v58, 1 }
 0x480   : > { %v2344_v18 = vadd.f32 %v2343_v3, %v2342_v58  ;;  %v4310_v58 = vstv %s4767_s14  ;;  %s6678_s14 = scalar_lea.hbm %s6737_s6, %s4779_s7 }
 0x482   : > { %5358 = vpush %v2344_v18 }
 0x49e   : > { %v5232_v8 = vpop.f32.mrf.mxu1 }
 0x49f   : > { %v3014_v35 = vadd.f32 %v5232_v8, %v2792_v30 }
 0x4a0   : > { %v2994_v46 = vpop.f32.mrf.mxu1 }
 0x4a1   : > { %v3013_v20 = vadd.f32 %v2994_v46, %v2787_v33 }
 0x4a2   : > { %v5235_v29 = vpop.f32.mrf.mxu1 }
 0x4a3   : > { %v3016_v37 = vadd.f32 %v5235_v29, %v2802_v0 }
 0x4a4   : > { %v3004_v9 = vpop.f32.mrf.mxu1 }
 0x4a5   : > { %v3015_v63 = vadd.f32 %v3004_v9, %v2797_v21 }
 0x4a6   : > { %v5252_v53 = vpop.f32.mrf.mxu1 }
 0x4a7   : > { %v3240_v42 = vadd.f32 %v5252_v53, %v3014_v35 }
 0x4a8   : > { %v3220_v10 = vpop.f32.mrf.mxu1 }
 0x4a9   : > { %v3239_v44 = vadd.f32 %v3220_v10, %v3013_v20 }
 0x4aa   : > { %v5255_v43 = vpop.f32.mrf.mxu1 }
 0x4ab   : > { %v3242_v11 = vadd.f32 %v5255_v43, %v3016_v37 }
 0x4ac   : > { %v3230_v55 = vpop.f32.mrf.mxu1 }
 0x4ad   : > { %v3241_v23 = vadd.f32 %v3230_v55, %v3015_v63 }
 0x4ae   : > { %v5272_v48 = vpop.f32.mrf.mxu1 }
 0x4af   : > { %v3450_v47 = vadd.f32 %v5272_v48, %v3240_v42 }
 0x4b0   : > { %v3430_v26 = vpop.f32.mrf.mxu1 }
 0x4b1   : > { %v3449_v49 = vadd.f32 %v3430_v26, %v3239_v44 }
 0x4b2   : > { %v5275_v54 = vpop.f32.mrf.mxu1 }
 0x4b3   : > { %s5359_s9 = spop %5358  ;;  %v3452_v56 = vadd.f32 %v5275_v54, %v3242_v11 }
 0x4b4   : > { %s2346_s10 = smul.f32 0.0009765625, %s5359_s9  ;;  %v3440_v17 = vpop.f32.mrf.mxu1  ;;  %s4398_s9 = sshll.u32 %s6635_s20, 4  ;;  %s6680_s9 = int_to_ptr.vmem [resolvable:$true] %s4398_s9 }
 0x4b5   : > { %v3451_v59 = vadd.f32 %v3440_v17, %v3241_v23 }
 0x4b6   : > { %s2347_s17 = sadd.f32 1e-05, %s2346_s10  ;;  %v5292_v22 = vpop.f32.mrf.mxu1 }
 0x4b7   : > { %v3660_v28 = vadd.f32 %v5292_v22, %v3450_v47 }
 0x4b8   : > { %v2348_v1 = vstv %s2347_s17  ;;  %v3640_v19 = vpop.f32.mrf.mxu1 }
 0x4b9   : > { %5449 = vrsqrt.f32 %v2348_v1  ;;  %v3659_v4 = vadd.f32 %v3640_v19, %v3449_v49 }
 0x4ba   : > { %v5295_v24 = vpop.f32.mrf.mxu1 }
 0x4bb   : > { %v3662_v2 = vadd.f32 %v5295_v24, %v3452_v56 }
 0x4bc   : > { %v3650_v50 = vpop.f32.mrf.mxu1 }
 0x4bd   : > { %v3661_v60 = vadd.f32 %v3650_v50, %v3451_v59 }
 0x4be   : > { %v5312_v25 = vpop.f32.mrf.mxu1 }
 0x4bf   : > { %v3886_v16 = vadd.f32 %v5312_v25, %v3660_v28 }
 0x4c0   : > { %v3866_v27 = vpop.f32.mrf.mxu1 }
 0x4c1   : > { %v3885_v32 = vadd.f32 %v3866_v27, %v3659_v4 }
 0x4c2   : > { %v5315_v31 = vpop.f32.mrf.mxu1 }
 0x4c3   : > { %v3888_v5 = vadd.f32 %v5315_v31, %v3662_v2 }
 0x4c4   : > { %v3876_v39 = vpop.f32.mrf.mxu1 }
 0x4c5   : > { %v3887_v18 = vadd.f32 %v3876_v39, %v3661_v60 }
 0x4c6   : > { %v5450_v45 = vpop.eup %5449  ;;  %v5332_v41 = vpop.f32.mrf.mxu1 }
 0x4c7   : > { %5360 = vpush %v5450_v45  ;;  %v4096_v36 = vadd.f32 %v5332_v41, %v3886_v16 }
 0x4c8   : > { %v4076_v6 = vpop.f32.mrf.mxu1 }
 0x4c9   : > { %v4095_v40 = vadd.f32 %v4076_v6, %v3885_v32 }
 0x4ca   : > { %v5335_v51 = vpop.f32.mrf.mxu1 }
 0x4cb   : > { %v4098_v7 = vadd.f32 %v5335_v51, %v3888_v5 }
 0x4cc   : > { %v4086_v57 = vpop.f32.mrf.mxu1 }
 0x4cd   : > { %v4097_v38 = vadd.f32 %v4086_v57, %v3887_v18  ;;  %v334_v18 = vld [vmem:[%s5833_s19 + $0x10] sm:$0xff] }
 0x4ce   : > { %v5352_v34 = vpop.f32.mrf.mxu1  ;;  %343 = vst.msk [vmem:[%s6635_s20 + $0x10] sm:$0xff] %vm340_vm1, %v334_v18 }
 0x4cf   : > { %v4306_v52 = vadd.f32 %v5352_v34, %v4096_v36 }
 0x4d0   : > { %v4286_v3 = vpop.f32.mrf.mxu1 }
 0x4d1   : > { %v4305_v12 = vadd.f32 %v4286_v3, %v4095_v40  ;;  %v4312_v8 = vadd.f32 %v4310_v58, %v4306_v52  ;;  %v333_v3 = vld [vmem:[%s5833_s19 + $0x8] sm:$0xff] }
 0x4d2   : > { %v5355_v62 = vpop.f32.mrf.mxu1  ;;  %342 = vst.msk [vmem:[%s6635_s20 + $0x8] sm:$0xff] %vm340_vm1, %v333_v3 }
 0x4d3   : > { %v4311_v46 = vadd.f32 %v4310_v58, %v4305_v12  ;;  %v4308_v29 = vadd.f32 %v5355_v62, %v4098_v7  ;;  %v4316_v43 = vsel %vm340_vm1, %v4312_v8, 0.0  ;;  %v335_v7 = vld [vmem:[%s5833_s19 + $0x18] sm:$0xff]  ;;  %v336_v12 = vld [vmem:[%s5833_s19 + $0x20] sm:$0xff]  ;;  %v337_v62 = vld [vmem:[%s5833_s19 + $0x28] sm:$0xff] }
 0x4d4   : > { %v4296_v9 = vpop.f32.mrf.mxu1  ;;  %344 = vst.msk [vmem:[%s6635_s20 + $0x18] sm:$0xff] %vm340_vm1, %v335_v7  ;;  %345 = vst.msk [vmem:[%s6635_s20 + $0x20] sm:$0xff] %vm340_vm1, %v336_v12 }
 0x4d5   : > { %v4315_v53 = vsel %vm340_vm1, %v4311_v46, 0.0  ;;  %v4307_v10 = vadd.f32 %v4296_v9, %v4097_v38  ;;  %v4314_v55 = vadd.f32 %v4310_v58, %v4308_v29  ;;  %v338_v38 = vld [vmem:[%s5833_s19 + $0x30] sm:$0xff]  ;;  %346 = vst.msk [vmem:[%s6635_s20 + $0x28] sm:$0xff] %vm340_vm1, %v337_v62 }
 0x4d6   : > { %v4317_v26 = vadd.f32 %v4316_v43, %v4315_v53  ;;  %347 = vst.msk [vmem:[%s6635_s20 + $0x30] sm:$0xff] %vm340_vm1, %v338_v38 }
 0x4d7   : > { %v4313_v48 = vadd.f32 %v4310_v58, %v4307_v10  ;;  %v4320_v22 = vsel %vm340_vm1, %v4314_v55, 0.0  ;;  %v332_v58 = vld [vmem:[%s5833_s19] sm:$0xff] }
 0x4d8   : > { %341 = vst.msk [vmem:[%s6635_s20] sm:$0xff] %vm340_vm1, %v332_v58 }
 0x4d9   : > { %v4318_v54 = vsel %vm340_vm1, %v4313_v48, 0.0 }
 0x4da   : > { %v4319_v17 = vadd.f32 %v4318_v54, %v4317_v26 }
 0x4dc   : > { %v4321_v1 = vadd.f32 %v4320_v22, %v4319_v17 }
 0x4de   : > { %4322 = vadd.xlane.f32.xlu1 %v4321_v1 }
 0x4f8   : > { %s5361_s29 = spop %5360 }
 0x4f9   : > { %v2351_v19 = vstv %s5361_s29  ;;  %s5559_s29 = scalar_lea.vmem %s6680_s9, 2048 }
 0x4fa   : > { %v2352_v24 = vmul.f32 %v2351_v19, %v6573_v13  ;;  %v2353_v50 = vmul.f32 %v2351_v19, %v6576_v61  ;;  %v2354_v25 = vmul.f32 %v2351_v19, %v6579_v14  ;;  %v2355_v27 = vmul.f32 %v2351_v19, %v6582_v15  ;;  %p5560_p12 = scmp.ne.s32.totalorder %s6680_s9, %s5559_s29 }
 0x4fc   : > { %vm2356_vm2 = vcmp.ge.f32.partialorder %v2352_v24, 0.0  ;;  %vm2357_vm3 = vcmp.ge.f32.partialorder %v2353_v50, 0.0  ;;  %vm2358_vm4 = vcmp.ge.f32.partialorder %v2354_v25, 0.0  ;;  %vm2359_vm5 = vcmp.ge.f32.partialorder %v2355_v27, 0.0  ;;  %p5561_p7 = pnand %p5560_p12, %p6761_p10 }
 0x4fd   : > { %v2360_v30 = vmul.f32 0.1, %v2352_v24  ;;  %v2361_v31 = vmul.f32 0.1, %v2353_v50  ;;  %v2362_v33 = vmul.f32 0.1, %v2354_v25 }
 0x4fe   : > { %v2363_v35 = vmul.f32 0.1, %v2355_v27  ;;  %p5562_p13 = pneg %p5561_p7 }
 0x4ff   : > { %v2364_v39 = vsel %vm2356_vm2, %v2352_v24, %v2360_v30  ;;  %v2365_v0 = vsel %vm2357_vm3, %v2353_v50, %v2361_v31  ;;  %v2366_v20 = vsel %vm2358_vm4, %v2354_v25, %v2362_v33 }
 0x500   : > { %v2367_v42 = vsel %vm2359_vm5, %v2355_v27, %v2363_v35  ;;  %4647 = vst.msk [vmem:[%s6635_s20 + $0x40] sm:$0xff] %vm340_vm1, %v2364_v39  ;;  %4648 = vst.msk [vmem:[%s6635_s20 + $0x48] sm:$0xff] %vm340_vm1, %v2365_v0 }
 0x501   : > { %4649 = vst.msk [vmem:[%s6635_s20 + $0x50] sm:$0xff] %vm340_vm1, %v2366_v20  ;;  %4650 = vst.msk [vmem:[%s6635_s20 + $0x58] sm:$0xff] %vm340_vm1, %v2367_v42 }
 0x567   : > { %v4323_v13 = vpop.xlane.xlu1 %4322 }
 0x568   : > { %v4324_v61 = vrot.slane %v4323_v13, 4 }
 0x56a   : > { %v4325_v14 = vadd.f32 %v4324_v61, %v4323_v13 }
 0x56c   : > { %v4326_v15 = vrot.slane %v4325_v14, 2 }
 0x56e   : > { %v4327_v45 = vadd.f32 %v4326_v15, %v4325_v14 }
 0x570   : > { %v4328_v41 = vrot.slane %v4327_v45, 1 }
 0x572   : > { %v4329_v21 = vadd.f32 %v4328_v41, %v4327_v45 }
 0x574   : > { %5362 = vpush %v4329_v21 }
 0x5a5   : > { %s5363_s26 = spop %5362 }
 0x5a6   : > { %s4331_s13 = smul.f32 0.0009765625, %s5363_s26  ;;  %s5563_s26 = sshll.u32 %s5643_s27, 4  ;;  %s5564_s26 = int_to_ptr.vmem [resolvable:$false] %s5563_s26 }
 0x5a7   : > { %p5566_p3 = scmp.lt.s32.totalorder %s6680_s9, %s5564_s26 }
 0x5a8   : > { %v4332_v37 = vstv %s4331_s13  ;;  %s5565_s13 = scalar_lea.vmem %s5564_s26, 4096 }
 0x5a9   : > { %v4333_v44 = vsub.f32 %v4311_v46, %v4332_v37  ;;  %v4334_v47 = vsub.f32 %v4312_v8, %v4332_v37  ;;  %v4335_v6 = vsub.f32 %v4313_v48, %v4332_v37  ;;  %v4336_v63 = vsub.f32 %v4314_v55, %v4332_v37  ;;  %v339_v8 = vld [vmem:[%s5833_s19 + $0x38] sm:$0xff]  ;;  %p5567_p0 = scmp.lt.s32.totalorder %s5565_s13, %s5559_s29 }
 0x5aa   : > { %348 = vst.msk [vmem:[%s6635_s20 + $0x38] sm:$0xff] %vm340_vm1, %v339_v8 }
 0x5ab   : > { %v4337_v11 = vmul.f32 %v4333_v44, %v4333_v44  ;;  %v4338_v49 = vmul.f32 %v4334_v47, %v4334_v47  ;;  %v4339_v28 = vmul.f32 %v4335_v6, %v4335_v6  ;;  %v4340_v51 = vmul.f32 %v4336_v63, %v4336_v63  ;;  %p5568_p4 = por %p5567_p0, %p5566_p3 }
 0x5ad   : > { %v4341_v23 = vsel %vm340_vm1, %v4337_v11, 0.0  ;;  %v4342_v56 = vsel %vm340_vm1, %v4338_v49, 0.0  ;;  %v4344_v16 = vsel %vm340_vm1, %v4339_v28, 0.0  ;;  %v4346_v59 = vsel %vm340_vm1, %v4340_v51, 0.0  ;;  %p5569_p8 = pnand %p5568_p4, %p5562_p13 }
 0x5ae   : > { %v4343_v4 = vadd.f32 %v4342_v56, %v4341_v23 }
 0x5b0   : > { %v4345_v57 = vadd.f32 %v4344_v16, %v4343_v4 }
 0x5b2   : > { %v4347_v2 = vadd.f32 %v4346_v59, %v4345_v57 }
 0x5b4   : > { %4348 = vadd.xlane.f32.xlu1 %v4347_v2 }
 0x63d   : > { %v4349_v32 = vpop.xlane.xlu1 %4348 }
 0x63e   : > { %v4350_v36 = vrot.slane %v4349_v32, 4 }
 0x640   : > { %v4351_v34 = vadd.f32 %v4350_v36, %v4349_v32 }
 0x642   : > { %v4352_v60 = vrot.slane %v4351_v34, 2 }
 0x644   : > { %v4353_v5 = vadd.f32 %v4352_v60, %v4351_v34 }
 0x646   : > { %v4354_v40 = vrot.slane %v4353_v5, 1 }
 0x648   : > { %v4355_v52 = vadd.f32 %v4354_v40, %v4353_v5 }
 0x64a   : > { %5364 = vpush %v4355_v52 }
 0x67b   : > { %s5365_s30 = spop %5364 }
 0x67c   : > { %s4357_s15 = smul.f32 0.0009765625, %s5365_s30 }
 0x67e   : > { %s4358_s18 = sadd.f32 1e-05, %s4357_s15 }
 0x680   : > { %v4359_v46 = vstv %s4358_s18 }
 0x681   : > { %5451 = vrsqrt.f32 %v4359_v46 }
 0x68e   : > { %v5452_v29 = vpop.eup %5451 }
 0x68f   : > { %5366 = vpush %v5452_v29 }
 0x6c0   : > { %s5367_s19 = spop %5366 }
 0x6c1   : > { %v4362_v9 = vstv %s5367_s19 }
 0x6c2   : > { %v4363_v53 = vmul.f32 %v4362_v9, %v4333_v44  ;;  %v4364_v10 = vmul.f32 %v4362_v9, %v4334_v47  ;;  %v4365_v43 = vmul.f32 %v4362_v9, %v4335_v6  ;;  %v4366_v55 = vmul.f32 %v4362_v9, %v4336_v63 }
 0x6c4   : > { %vm4367_vm6 = vcmp.ge.f32.partialorder %v4363_v53, 0.0  ;;  %vm4368_vm7 = vcmp.ge.f32.partialorder %v4364_v10, 0.0  ;;  %vm4369_vm8 = vcmp.ge.f32.partialorder %v4365_v43, 0.0  ;;  %vm4370_vm9 = vcmp.ge.f32.partialorder %v4366_v55, 0.0 }
 0x6c5   : > { %v4371_v48 = vmul.f32 0.1, %v4363_v53  ;;  %v4372_v26 = vmul.f32 0.1, %v4364_v10  ;;  %v4373_v54 = vmul.f32 0.1, %v4365_v43 }
 0x6c6   : > { %v4374_v17 = vmul.f32 0.1, %v4366_v55 }
 0x6c7   : > { %v4375_v22 = vsel %vm4367_vm6, %v4363_v53, %v4371_v48  ;;  %v4376_v1 = vsel %vm4368_vm7, %v4364_v10, %v4372_v26  ;;  %v4377_v19 = vsel %vm4369_vm8, %v4365_v43, %v4373_v54 }
 0x6c8   : > { %v4378_v24 = vsel %vm4370_vm9, %v4366_v55, %v4374_v17  ;;  %4768 = vst.msk [vmem:[%s6635_s20 + $0x60] sm:$0xff] %vm340_vm1, %v4375_v22  ;;  %4769 = vst.msk [vmem:[%s6635_s20 + $0x68] sm:$0xff] %vm340_vm1, %v4376_v1 }
 0x6c9   : > { %4770 = vst.msk [vmem:[%s6635_s20 + $0x70] sm:$0xff] %vm340_vm1, %v4377_v19  ;;  %4771 = vst.msk [vmem:[%s6635_s20 + $0x78] sm:$0xff] %vm340_vm1, %v4378_v24 }
 0x6ca   : > { %5572 = shalt.err (!%p5569_p8)
}
 0x6cb   : > { %s5573_s20 = scalar_lea.hbm %s6678_s14, 2048  ;;  %s5577_s18 = scalar_lea.hbm %s6737_s6, 4096 }
 0x6cc   : > { %p5574_p9 = scmp.ne.s32.totalorder %s6678_s14, %s5573_s20  ;;  %p5578_p1 = scmp.lt.s32.totalorder %s6678_s14, %s6737_s6 }
 0x6cd   : > { %p5579_p2 = scmp.lt.s32.totalorder %s5577_s18, %s5573_s20 }
 0x6ce   : > { %p5575_p11 = pnand %p5574_p9, %p6761_p10 }
 0x6cf   : > { %p5580_p6 = por %p5579_p2, %p5578_p1 }
 0x6d0   : > { %p5576_p5 = pneg %p5575_p11 }
 0x6d2   : > { %p5581_p12 = pnand %p5580_p6, %p5576_p5 }
 0x6d4   : > { %5584 = shalt.err (!%p5581_p12)
}
 0x6d5   : > { %s5644_s10 = smov 128   ;;  %s5645_s17 = smov 8  }
 0x6d6   : > { %5382 = dma.vmem_to_hbm [thread:$0]  (%p6761_p10), %s6680_s9, 2048, %s6678_s14, %s4385_s25, %s5644_s10, %s5644_s10, %s5645_s17  }
 0x6d7 PF: > { %s4413_s29 = sand.u32 1, %s5623_s21   ;;  %p6762_p7 = scmp.ne.s32.totalorder %s6745_s28, 0 }
 0x6d8   : > { %p6763_p13 = scmp.ge.s32.totalorder %s5635_s24, 2  ;;  %s4414_s27 = scalar_lea.sflag [#allocation4], %s4413_s29 }
 0x6da   : > { %p5399_p3 = pnand %p6763_p13, %p6762_p7 }
 0x6dc   : > { %p5400_p0 = pneg %p5399_p3 }
 0x6de   : > { %5618 = dma.done.wait (%p5400_p0), %s4414_s27, 2048  }
 0x6df   : > { %5620 = vsyncadd (%p5400_p0), %s4414_s27, 4294965248  ;;  %p22_p4 = scmp.ge.s32.totalorder %s5771_s8, 4   ;;  %s6764_s21 = smov %s5627_s22 }
 0x6e0   : > { %s6765_s22 = smov %s5631_s23  ;;  %s6766_s23 = smov %s5781_s11 }
 0x6e1   : > { %s6767_s24 = smov %s5771_s8  ;;  %24 = sbr.rel (!%p22_p4) target bundleno = 8 (0x8), region = 111 }
 0x6e6   :  { %4419 = vsyncpa [#allocation3], 1 }
 0x6e7   :  { %4421 = vsyncpa [#allocation3 + $0x1], 1 }
 0x6e8   :  { %4422 = vsyncpa [#allocation7], 1 }
 0x6e9   :  { %4423 = vsyncpa [#allocation4], 1 }
 0x6ea   :  { %4425 = vsyncpa [#allocation4 + $0x1], 1 }
 0x6eb   :  { %4426 = vsyncpa [#allocation5], 1 }
 0x6ec   :  { %4428 = vsyncpa [#allocation5 + $0x1], 1 }
 0x6ed   :  { %4429 = vsyncpa [#allocation10], 1 }

</bundles_post_ra>
